<compile_context>
chip_gen: v5e
topology: v5e:2x2
jax: 0.10.0
libtpu: 0.0.40
codegen_flags: <defaults>
</compile_context>

<pallas_src>
import functools

import jax
import jax.numpy as jnp
from jax.experimental import pallas as pl
from jax.experimental.pallas import tpu as pltpu

_LANES = 128


# ---------------------------------------------------------------------------
# Trace-time constant builders (wrapper side, tiny XLA ops).
# ---------------------------------------------------------------------------

def _toeplitz_weight(w_hwio, bn_scale, W, pad):
    """big[kh, win*Cin+ci, w*Cout+co] = scale[co]*w[kh, win-w+pad, ci, co].

    Horizontal SAME padding is baked into the weights (out-of-range taps are 0),
    so with the input row-flattened as (rows, W*Cin) the conv is
        out = sum_kh  x[kh : kh+R, :] @ big[kh]   -> (R, W*Cout).
    """
    KH, KW, Cin, Cout = w_hwio.shape
    w_scaled = (w_hwio * bn_scale[None, None, None, :]).astype(jnp.float32)
    kw_idx = jnp.arange(W)[:, None] - jnp.arange(W)[None, :] + pad      # (win, w)
    valid = (kw_idx >= 0) & (kw_idx < KW)
    blocks = w_scaled[:, jnp.clip(kw_idx, 0, KW - 1)]                   # (KH,W,W,Cin,Cout)
    blocks = jnp.where(valid[None, :, :, None, None], blocks, 0.0)
    big = blocks.transpose(0, 1, 3, 2, 4).reshape(KH, W * Cin, W * Cout)
    return big.astype(jnp.bfloat16)


def _pool_select_mats(W, Cout):
    """0/1 matrices (W*Cout, (W//2)*Cout) picking even / odd width-pairs."""
    Wh = W // 2
    eye = jnp.eye(Cout, dtype=jnp.float32)

    def sel(off):
        m = jnp.zeros((W, Wh), jnp.float32)
        m = m.at[2 * jnp.arange(Wh) + off, jnp.arange(Wh)].set(1.0)
        return (jnp.einsum("wv,cd->wcvd", m, eye)
                .reshape(W * Cout, Wh * Cout).astype(jnp.bfloat16))

    return sel(0), sel(1)


def _gp_place_mat(W, Cout, off):
    """(W*Cout, 128): sums width groups; result placed at lanes [off, off+Cout)."""
    g = jnp.tile(jnp.eye(Cout, dtype=jnp.float32), (W, 1))
    out = jnp.zeros((W * Cout, _LANES), jnp.float32).at[:, off:off + Cout].set(g)
    return out.astype(jnp.bfloat16)


def _mean_select(B, Hp, H):
    """(B, B*Hp) 0/1: row b selects the H valid conv-output rows of image b."""
    r = jnp.arange(B)[:, None]
    c = jnp.arange(B * Hp)[None, :]
    m = (c // Hp == r) & (c % Hp < H)
    return m.astype(jnp.bfloat16)


def _input_scatter(B, Hp, P, H):
    """(B*Hp + 2P, B*H) 0/1: places image row h at b*Hp+P+h; halo rows stay 0."""
    R, C = B * Hp + 2 * P, B * H
    r = jnp.arange(R)[:, None]
    c = jnp.arange(C)[None, :]
    h_r = r % Hp - P
    m = (r // Hp == c // H) & (h_r == c % H) & (h_r >= 0)
    return m.astype(jnp.bfloat16)


def _pool_scatter(B, Hp_out, P_out, H_out, Hp_in, parity):
    """(B*Hp_out + 2P_out, B*Hp_in) 0/1: pooled row j of image b reads conv-output
    row 2j+parity of image b and lands at b*Hp_out + P_out + j (halos stay 0)."""
    R, C = B * Hp_out + 2 * P_out, B * Hp_in
    r = jnp.arange(R)[:, None]
    c = jnp.arange(C)[None, :]
    j = r % Hp_out - P_out
    m = ((r // Hp_out == c // Hp_in) & (j >= 0) & (j < H_out)
         & (c % Hp_in == 2 * j + parity))
    return m.astype(jnp.bfloat16)


# ---------------------------------------------------------------------------
# Fused kernel: B_TILE batch elements per grid step, whole network in VMEM.
# ---------------------------------------------------------------------------

def _gp_lenet_kernel(x_ref,
                     sx_ref, w1_ref, sh1_ref, m1_ref, g1_ref, se1_ref, so1_ref,
                     ae1_ref, ao1_ref,
                     w2_ref, sh2_ref, m2_ref, g2_ref, se2_ref, so2_ref,
                     ae2_ref, ao2_ref,
                     w3_ref, sh3_ref, m3_ref, g3_ref,
                     wc_ref, bc_ref,
                     out_ref,
                     pad1_ref, pad2_ref, pad3_ref, *, dims):
    (R1, KH1, inv1), (R2, KH2, inv2), (R3, KH3, inv3) = dims
    f32, bf16 = jnp.float32, jnp.bfloat16

    def conv_bn_relu(pad_ref, w_ref, sh_ref, R, KH):
        acc = jnp.dot(pad_ref[0:R, :].astype(bf16), w_ref[0],
                      preferred_element_type=f32)
        for kh in range(1, KH):
            acc = acc + jnp.dot(pad_ref[kh:kh + R, :].astype(bf16), w_ref[kh],
                                preferred_element_type=f32)
        # BN shift + ReLU stay in f32 on the VPU; bf16 only feeds the MXU.
        return jnp.maximum(acc + sh_ref[...], 0.0).astype(bf16)   # (R, W*Cout)

    def global_mean(y_bf, m_ref, g_ref, inv_hw):
        row_sums = jnp.dot(m_ref[...], y_bf, preferred_element_type=f32)
        gp = jnp.dot(row_sums.astype(bf16), g_ref[...], preferred_element_type=f32)
        return gp * inv_hw                                        # (B_TILE, 128) f32

    def pool_into(y_bf, se_ref, so_ref, ae_ref, ao_ref, dst_ref):
        # width pairs via column selectors, row pairs fused with the scatter
        # into the next block's padded layout (halo rows implicitly zeroed).
        wm = jnp.maximum(
            jnp.dot(y_bf, se_ref[...], preferred_element_type=f32),
            jnp.dot(y_bf, so_ref[...], preferred_element_type=f32)).astype(bf16)
        dst_ref[...] = jnp.maximum(
            jnp.dot(ae_ref[...], wm, preferred_element_type=f32),
            jnp.dot(ao_ref[...], wm, preferred_element_type=f32)).astype(dst_ref.dtype)

    # ---- block 1: scatter-place inputs, conv5x5 + BN + ReLU, gp, 2x2 max-pool
    pad1_ref[...] = jnp.dot(sx_ref[...], x_ref[...],
                            preferred_element_type=f32).astype(pad1_ref.dtype)
    y1 = conv_bn_relu(pad1_ref, w1_ref, sh1_ref, R1, KH1)
    gp1 = global_mean(y1, m1_ref, g1_ref, inv1)
    pool_into(y1, se1_ref, so1_ref, ae1_ref, ao1_ref, pad2_ref)

    # ---- block 2 ----
    y2 = conv_bn_relu(pad2_ref, w2_ref, sh2_ref, R2, KH2)
    gp2 = global_mean(y2, m2_ref, g2_ref, inv2)
    pool_into(y2, se2_ref, so2_ref, ae2_ref, ao2_ref, pad3_ref)

    # ---- block 3 (its max-pool output is dead in the reference forward) ----
    y3 = conv_bn_relu(pad3_ref, w3_ref, sh3_ref, R3, KH3)
    gp3 = global_mean(y3, m3_ref, g3_ref, inv3)

    # ---- classifier + packed lane-dense output: [logits | gp1 | gp2 | gp3 | 0]
    gp_all = gp1 + gp2 + gp3                                      # disjoint lanes
    logits = jnp.dot(gp_all.astype(bf16), wc_ref[...],
                     preferred_element_type=f32) + bc_ref[...]
    out_ref[0] = (gp_all + logits).astype(out_ref.dtype)


def gp_lenet_forward(x_nchw, params, *, b_tile=4):
    """Returns (logits, gp1, gp2, gp3) exactly like GP_LeNet.forward."""
    N, Cin, H, W = x_nchw.shape
    w1, w2, w3 = params["w1"], params["w2"], params["w3"]
    C1, C2, C3 = w1.shape[-1], w2.shape[-1], w3.shape[-1]
    KH1, KH2, KH3 = w1.shape[0], w2.shape[0], w3.shape[0]
    P1, P2, P3 = KH1 // 2, KH2 // 2, KH3 // 2
    num_out = params["wc"].shape[1]
    assert H % 4 == 0 and W % 4 == 0, "two 2x2 max-pools need H, W divisible by 4"
    assert num_out + C1 + C2 + C3 <= _LANES, "packed output exceeds 128 lanes"

    H1, W1 = H, W
    H2, W2 = H1 // 2, W1 // 2
    H3, W3 = H2 // 2, W2 // 2
    Hp1, Hp2, Hp3 = H1 + 2 * P1, H2 + 2 * P2, H3 + 2 * P3

    B = int(b_tile)
    n_blk = -(-N // B)
    Np = n_blk * B
    R1, R2, R3 = B * Hp1, B * Hp2, B * Hp3                # conv-output rows / step
    Ri1, Ri2, Ri3 = R1 + 2 * P1, R2 + 2 * P2, R3 + 2 * P3  # padded-input rows / step
    K1, K2, K3 = W1 * Cin, W2 * C1, W3 * C2

    # lane offsets of the packed [logits | gp1 | gp2 | gp3] output
    o1 = num_out
    o2 = o1 + C1
    o3 = o2 + C2

    # NCHW -> row-flattened NHWC in bf16 (MXU operand); batch padded to Np.
    x = jnp.transpose(x_nchw, (0, 2, 3, 1))
    if Np != N:
        x = jnp.concatenate([x, jnp.zeros((Np - N, H, W, Cin), x.dtype)], axis=0)
    x = x.reshape(Np * H, W * Cin).astype(jnp.bfloat16)

    # Trace-time constants (BN scale folded into the Toeplitz conv weights).
    bw1 = _toeplitz_weight(w1, params["s1"], W1, P1)
    bw2 = _toeplitz_weight(w2, params["s2"], W2, P2)
    bw3 = _toeplitz_weight(w3, params["s3"], W3, P3)
    sh1 = jnp.tile(params["t1"].reshape(1, C1), (1, W1)).astype(jnp.float32)
    sh2 = jnp.tile(params["t2"].reshape(1, C2), (1, W2)).astype(jnp.float32)
    sh3 = jnp.tile(params["t3"].reshape(1, C3), (1, W3)).astype(jnp.float32)
    m1, m2, m3 = (_mean_select(B, Hp1, H1), _mean_select(B, Hp2, H2),
                  _mean_select(B, Hp3, H3))
    g1, g2, g3 = (_gp_place_mat(W1, C1, o1), _gp_place_mat(W2, C2, o2),
                  _gp_place_mat(W3, C3, o3))
    se1, so1 = _pool_select_mats(W1, C1)
    se2, so2 = _pool_select_mats(W2, C2)
    sx = _input_scatter(B, Hp1, P1, H1)
    ae1 = _pool_scatter(B, Hp2, P2, H2, Hp1, 0)
    ao1 = _pool_scatter(B, Hp2, P2, H2, Hp1, 1)
    ae2 = _pool_scatter(B, Hp3, P3, H3, Hp2, 0)
    ao2 = _pool_scatter(B, Hp3, P3, H3, Hp2, 1)
    wc = (jnp.zeros((_LANES, _LANES), jnp.float32)
          .at[o3:o3 + C3, 0:num_out].set(params["wc"]).astype(jnp.bfloat16))
    bc = jnp.zeros((1, _LANES), jnp.float32).at[0, 0:num_out].set(params["bc"])

    dims = ((R1, KH1, 1.0 / float(H1 * W1)),
            (R2, KH2, 1.0 / float(H2 * W2)),
            (R3, KH3, 1.0 / float(H3 * W3)))

    def full(a):
        return pl.BlockSpec(a.shape, lambda n, _nd=a.ndim: (0,) * _nd)

    kernel = functools.partial(_gp_lenet_kernel, dims=dims)
    packed = pl.pallas_call(
        kernel,
        out_shape=jax.ShapeDtypeStruct((n_blk, B, _LANES), jnp.float32),
        grid_spec=pltpu.PrefetchScalarGridSpec(
            num_scalar_prefetch=0,
            grid=(n_blk,),
            in_specs=[
                pl.BlockSpec((B * H, W * Cin), lambda n: (n, 0)),
                full(sx), full(bw1), full(sh1), full(m1), full(g1),
                full(se1), full(so1), full(ae1), full(ao1),
                full(bw2), full(sh2), full(m2), full(g2),
                full(se2), full(so2), full(ae2), full(ao2),
                full(bw3), full(sh3), full(m3), full(g3),
                full(wc), full(bc),
            ],
            out_specs=pl.BlockSpec((1, B, _LANES), lambda n: (n, 0, 0)),
            scratch_shapes=[
                pltpu.VMEM((Ri1, K1), jnp.float32),
                pltpu.VMEM((Ri2, K2), jnp.float32),
                pltpu.VMEM((Ri3, K3), jnp.float32),
            ],
        ),
        compiler_params=pltpu.CompilerParams(
            dimension_semantics=("parallel",)),
    )(x, sx, bw1, sh1, m1, g1, se1, so1, ae1, ao1,
      bw2, sh2, m2, g2, se2, so2, ae2, ao2,
      bw3, sh3, m3, g3, wc, bc)

    out = packed.reshape(Np, _LANES)[:N]
    return (out[:, 0:num_out], out[:, o1:o1 + C1],
            out[:, o2:o2 + C2], out[:, o3:o3 + C3])


# ---------------------------------------------------------------------------
# Pure-JAX reference (XLA, f32) for a correctness check, and parameter init.
# ---------------------------------------------------------------------------

def _reference_forward(x_nchw, params):
    def block(x, w_hwio, scale, shift, pad):
        y = jax.lax.conv_general_dilated(
            x, w_hwio, window_strides=(1, 1),
            padding=[(pad, pad), (pad, pad)],
            dimension_numbers=("NHWC", "HWIO", "NHWC"))
        y = jnp.maximum(y * scale + shift, 0.0)
        gp = jnp.mean(y, axis=(1, 2))
        p = jax.lax.reduce_window(y, -jnp.inf, jax.lax.max,
                                  (1, 2, 2, 1), (1, 2, 2, 1), "VALID")
        return p, gp

    x = jnp.transpose(x_nchw, (0, 2, 3, 1))
    p, gp1 = block(x, params["w1"], params["s1"], params["t1"], params["w1"].shape[0] // 2)
    p, gp2 = block(p, params["w2"], params["s2"], params["t2"], params["w2"].shape[0] // 2)
    _, gp3 = block(p, params["w3"], params["s3"], params["t3"], params["w3"].shape[0] // 2)
    logits = gp3 @ params["wc"] + params["bc"]
    return logits, gp1, gp2, gp3


def init_params(key, in_channels, channels, num_outputs):
    ks = jax.random.split(key, 5)

    def kaiming_conv(k, kh, kw, cin, cout):
        fan_in = cin * kh * kw
        bound = float(jnp.sqrt(6.0 / fan_in))                 # kaiming_uniform_, a=0
        w = jax.random.uniform(k, (cout, cin, kh, kw), jnp.float32, -bound, bound)
        return jnp.transpose(w, (2, 3, 1, 0))                 # OIHW -> HWIO

    c = channels
    w1 = kaiming_conv(ks[0], 5, 5, in_channels, c)
    w2 = kaiming_conv(ks[1], 3, 3, c, 2 * c)
    w3 = kaiming_conv(ks[2], 3, 3, 2 * c, 4 * c)

    eps = 1e-5

    def bn_fold(cout):
        gamma = jnp.ones((cout,), jnp.float32)
        beta = jnp.zeros((cout,), jnp.float32)
        mean = jnp.zeros((cout,), jnp.float32)
        var = jnp.ones((cout,), jnp.float32)
        scale = gamma / jnp.sqrt(var + eps)
        shift = beta - mean * scale
        return scale, shift

    s1, t1 = bn_fold(c)
    s2, t2 = bn_fold(2 * c)
    s3, t3 = bn_fold(4 * c)

    fan_in = 4 * c
    bw = float(jnp.sqrt(6.0 / fan_in))
    wc = jax.random.uniform(ks[3], (num_outputs, fan_in), jnp.float32, -bw, bw).T
    bb = 1.0 / float(jnp.sqrt(fan_in))
    bc = jax.random.uniform(ks[4], (num_outputs,), jnp.float32, -bb, bb)

    return dict(w1=w1, w2=w2, w3=w3, s1=s1, t1=t1, s2=s2, t2=t2, s3=s3, t3=t3,
                wc=wc, bc=bc)


if __name__ == "__main__":
    key = jax.random.PRNGKey(0)
    k_x, k_p = jax.random.split(key)

    N, Cin, H, W = 8, 3, 32, 32        # small NCHW input (PyTorch convention)
    channels, num_outputs = 8, 10      # args.channels, args.num_outputs

    x = jax.random.normal(k_x, (N, Cin, H, W), jnp.float32)
    params = init_params(k_p, Cin, channels, num_outputs)

    outs = jax.jit(gp_lenet_forward)(x, params)   # b_tile=4 -> grid of 2 steps
    jax.block_until_ready(outs)
    logits, gp1, gp2, gp3 = outs

    assert logits.shape == (N, num_outputs)
    assert gp1.shape == (N, channels)
    assert gp2.shape == (N, 2 * channels)
    assert gp3.shape == (N, 4 * channels)

    # Loose tolerance: the kernel feeds the MXU bf16 operands (f32 accumulate),
    # while the XLA reference is full f32.
    refs = _reference_forward(x, params)
    for got, ref in zip(outs, refs):
        err = float(jnp.max(jnp.abs(got - ref)))
        assert err < 1e-1, f"mismatch vs XLA reference: {err}"

    print("KERNEL_OK")
</pallas_src>

<mosaic_0001>
module attributes {stable_mosaic.version = 11 : i64} {
  func.func @_gp_lenet_kernel(%arg0: i32, %arg1: memref<128x96xbf16, #tpu.memory_space<vmem>>, %arg2: memref<148x128xbf16, #tpu.memory_space<vmem>>, %arg3: memref<5x96x256xbf16, #tpu.memory_space<vmem>>, %arg4: memref<1x256xf32, #tpu.memory_space<vmem>>, %arg5: memref<4x144xbf16, #tpu.memory_space<vmem>>, %arg6: memref<256x128xbf16, #tpu.memory_space<vmem>>, %arg7: memref<256x128xbf16, #tpu.memory_space<vmem>>, %arg8: memref<256x128xbf16, #tpu.memory_space<vmem>>, %arg9: memref<74x144xbf16, #tpu.memory_space<vmem>>, %arg10: memref<74x144xbf16, #tpu.memory_space<vmem>>, %arg11: memref<3x128x256xbf16, #tpu.memory_space<vmem>>, %arg12: memref<1x256xf32, #tpu.memory_space<vmem>>, %arg13: memref<4x72xbf16, #tpu.memory_space<vmem>>, %arg14: memref<256x128xbf16, #tpu.memory_space<vmem>>, %arg15: memref<256x128xbf16, #tpu.memory_space<vmem>>, %arg16: memref<256x128xbf16, #tpu.memory_space<vmem>>, %arg17: memref<42x72xbf16, #tpu.memory_space<vmem>>, %arg18: memref<42x72xbf16, #tpu.memory_space<vmem>>, %arg19: memref<3x128x256xbf16, #tpu.memory_space<vmem>>, %arg20: memref<1x256xf32, #tpu.memory_space<vmem>>, %arg21: memref<4x40xbf16, #tpu.memory_space<vmem>>, %arg22: memref<256x128xbf16, #tpu.memory_space<vmem>>, %arg23: memref<128x128xbf16, #tpu.memory_space<vmem>>, %arg24: memref<1x128xf32, #tpu.memory_space<vmem>>, %arg25: memref<1x4x128xf32, #tpu.memory_space<vmem>>, %arg26: memref<148x96xf32, #tpu.memory_space<vmem>>, %arg27: memref<74x128xf32, #tpu.memory_space<vmem>>, %arg28: memref<42x128xf32, #tpu.memory_space<vmem>>) attributes {dimension_semantics = [#tpu.dimension_semantics<parallel>], iteration_bounds = array<i64: 2>, scalar_prefetch = 0 : i64, scratch_operands = 3 : i64, tpu.core_type = #tpu.core_type<tc>, window_params = [{transform_indices = @transform_0, window_bounds = array<i64: 128, 96>}, {pipeline_mode = #tpu.pipeline_mode<synchronous>, transform_indices = @transform_1, window_bounds = array<i64: 148, 128>}, {pipeline_mode = #tpu.pipeline_mode<synchronous>, transform_indices = @transform_2, window_bounds = array<i64: 5, 96, 256>}, {pipeline_mode = #tpu.pipeline_mode<synchronous>, transform_indices = @transform_3, window_bounds = array<i64: 1, 256>}, {pipeline_mode = #tpu.pipeline_mode<synchronous>, transform_indices = @transform_4, window_bounds = array<i64: 4, 144>}, {pipeline_mode = #tpu.pipeline_mode<synchronous>, transform_indices = @transform_5, window_bounds = array<i64: 256, 128>}, {pipeline_mode = #tpu.pipeline_mode<synchronous>, transform_indices = @transform_6, window_bounds = array<i64: 256, 128>}, {pipeline_mode = #tpu.pipeline_mode<synchronous>, transform_indices = @transform_7, window_bounds = array<i64: 256, 128>}, {pipeline_mode = #tpu.pipeline_mode<synchronous>, transform_indices = @transform_8, window_bounds = array<i64: 74, 144>}, {pipeline_mode = #tpu.pipeline_mode<synchronous>, transform_indices = @transform_9, window_bounds = array<i64: 74, 144>}, {pipeline_mode = #tpu.pipeline_mode<synchronous>, transform_indices = @transform_10, window_bounds = array<i64: 3, 128, 256>}, {pipeline_mode = #tpu.pipeline_mode<synchronous>, transform_indices = @transform_11, window_bounds = array<i64: 1, 256>}, {pipeline_mode = #tpu.pipeline_mode<synchronous>, transform_indices = @transform_12, window_bounds = array<i64: 4, 72>}, {pipeline_mode = #tpu.pipeline_mode<synchronous>, transform_indices = @transform_13, window_bounds = array<i64: 256, 128>}, {pipeline_mode = #tpu.pipeline_mode<synchronous>, transform_indices = @transform_14, window_bounds = array<i64: 256, 128>}, {pipeline_mode = #tpu.pipeline_mode<synchronous>, transform_indices = @transform_15, window_bounds = array<i64: 256, 128>}, {pipeline_mode = #tpu.pipeline_mode<synchronous>, transform_indices = @transform_16, window_bounds = array<i64: 42, 72>}, {pipeline_mode = #tpu.pipeline_mode<synchronous>, transform_indices = @transform_17, window_bounds = array<i64: 42, 72>}, {pipeline_mode = #tpu.pipeline_mode<synchronous>, transform_indices = @transform_18, window_bounds = array<i64: 3, 128, 256>}, {pipeline_mode = #tpu.pipeline_mode<synchronous>, transform_indices = @transform_19, window_bounds = array<i64: 1, 256>}, {pipeline_mode = #tpu.pipeline_mode<synchronous>, transform_indices = @transform_20, window_bounds = array<i64: 4, 40>}, {pipeline_mode = #tpu.pipeline_mode<synchronous>, transform_indices = @transform_21, window_bounds = array<i64: 256, 128>}, {pipeline_mode = #tpu.pipeline_mode<synchronous>, transform_indices = @transform_22, window_bounds = array<i64: 128, 128>}, {pipeline_mode = #tpu.pipeline_mode<synchronous>, transform_indices = @transform_23, window_bounds = array<i64: 1, 128>}, {transform_indices = @transform_24, window_bounds = array<i64: 1, 4, 128>}]} {
    %c0 = arith.constant 0 : index
    %c0_0 = arith.constant 0 : index
    %0 = vector.load %arg2[%c0, %c0_0] : memref<148x128xbf16, #tpu.memory_space<vmem>>, vector<148x128xbf16>
    %c0_1 = arith.constant 0 : index
    %c0_2 = arith.constant 0 : index
    %1 = vector.load %arg1[%c0_1, %c0_2] : memref<128x96xbf16, #tpu.memory_space<vmem>>, vector<128x96xbf16>
    %cst = arith.constant dense<0.000000e+00> : vector<148x96xf32>
    %2 = tpu.matmul %0, %1, %cst {dimension_numbers = #tpu.dot_dimension_numbers<[1], [0], [0], [1], [0, 0, 1, 1], [], []>} : vector<148x128xbf16>, vector<128x96xbf16>, vector<148x96xf32> -> vector<148x96xf32>
    %c0_3 = arith.constant 0 : index
    %c0_4 = arith.constant 0 : index
    %3 = vector.load %arg26[%c0_3, %c0_4] : memref<148x96xf32, #tpu.memory_space<vmem>>, vector<148x96xf32>
    tpu.vector_store %arg26[%c0_3, %c0_4], %2 {strides = array<i32>} : memref<148x96xf32, #tpu.memory_space<vmem>>, vector<148x96xf32>,
    %c0_5 = arith.constant 0 : index
    %c0_6 = arith.constant 0 : index
    %4 = vector.load %arg26[%c0_5, %c0_6] : memref<148x96xf32, #tpu.memory_space<vmem>>, vector<144x96xf32>
    %5 = arith.truncf %4 : vector<144x96xf32> to vector<144x96xbf16>
    %c0_7 = arith.constant 0 : index
    %c0_8 = arith.constant 0 : index
    %c0_9 = arith.constant 0 : index
    %6 = vector.load %arg3[%c0_7, %c0_8, %c0_9] : memref<5x96x256xbf16, #tpu.memory_space<vmem>>, vector<1x96x256xbf16>
    %7 = vector.shape_cast %6 : vector<1x96x256xbf16> to vector<96x256xbf16>
    %cst_10 = arith.constant dense<0.000000e+00> : vector<144x256xf32>
    %8 = tpu.matmul %5, %7, %cst_10 {dimension_numbers = #tpu.dot_dimension_numbers<[1], [0], [0], [1], [0, 0, 1, 1], [], []>} : vector<144x96xbf16>, vector<96x256xbf16>, vector<144x256xf32> -> vector<144x256xf32>
    %c1 = arith.constant 1 : index
    %c0_11 = arith.constant 0 : index
    %9 = vector.load %arg26[%c1, %c0_11] : memref<148x96xf32, #tpu.memory_space<vmem>>, vector<144x96xf32>
    %10 = arith.truncf %9 : vector<144x96xf32> to vector<144x96xbf16>
    %c1_12 = arith.constant 1 : index
    %c0_13 = arith.constant 0 : index
    %c0_14 = arith.constant 0 : index
    %11 = vector.load %arg3[%c1_12, %c0_13, %c0_14] : memref<5x96x256xbf16, #tpu.memory_space<vmem>>, vector<1x96x256xbf16>
    %12 = vector.shape_cast %11 : vector<1x96x256xbf16> to vector<96x256xbf16>
    %cst_15 = arith.constant dense<0.000000e+00> : vector<144x256xf32>
    %13 = tpu.matmul %10, %12, %cst_15 {dimension_numbers = #tpu.dot_dimension_numbers<[1], [0], [0], [1], [0, 0, 1, 1], [], []>} : vector<144x96xbf16>, vector<96x256xbf16>, vector<144x256xf32> -> vector<144x256xf32>
    %14 = arith.addf %8, %13 : vector<144x256xf32>
    %c2 = arith.constant 2 : index
    %c0_16 = arith.constant 0 : index
    %15 = vector.load %arg26[%c2, %c0_16] : memref<148x96xf32, #tpu.memory_space<vmem>>, vector<144x96xf32>
    %16 = arith.truncf %15 : vector<144x96xf32> to vector<144x96xbf16>
    %c2_17 = arith.constant 2 : index
    %c0_18 = arith.constant 0 : index
    %c0_19 = arith.constant 0 : index
    %17 = vector.load %arg3[%c2_17, %c0_18, %c0_19] : memref<5x96x256xbf16, #tpu.memory_space<vmem>>, vector<1x96x256xbf16>
    %18 = vector.shape_cast %17 : vector<1x96x256xbf16> to vector<96x256xbf16>
    %cst_20 = arith.constant dense<0.000000e+00> : vector<144x256xf32>
    %19 = tpu.matmul %16, %18, %cst_20 {dimension_numbers = #tpu.dot_dimension_numbers<[1], [0], [0], [1], [0, 0, 1, 1], [], []>} : vector<144x96xbf16>, vector<96x256xbf16>, vector<144x256xf32> -> vector<144x256xf32>
    %20 = arith.addf %14, %19 : vector<144x256xf32>
    %c3 = arith.constant 3 : index
    %c0_21 = arith.constant 0 : index
    %21 = vector.load %arg26[%c3, %c0_21] : memref<148x96xf32, #tpu.memory_space<vmem>>, vector<144x96xf32>
    %22 = arith.truncf %21 : vector<144x96xf32> to vector<144x96xbf16>
    %c3_22 = arith.constant 3 : index
    %c0_23 = arith.constant 0 : index
    %c0_24 = arith.constant 0 : index
    %23 = vector.load %arg3[%c3_22, %c0_23, %c0_24] : memref<5x96x256xbf16, #tpu.memory_space<vmem>>, vector<1x96x256xbf16>
    %24 = vector.shape_cast %23 : vector<1x96x256xbf16> to vector<96x256xbf16>
    %cst_25 = arith.constant dense<0.000000e+00> : vector<144x256xf32>
    %25 = tpu.matmul %22, %24, %cst_25 {dimension_numbers = #tpu.dot_dimension_numbers<[1], [0], [0], [1], [0, 0, 1, 1], [], []>} : vector<144x96xbf16>, vector<96x256xbf16>, vector<144x256xf32> -> vector<144x256xf32>
    %26 = arith.addf %20, %25 : vector<144x256xf32>
    %c4 = arith.constant 4 : index
    %c0_26 = arith.constant 0 : index
    %27 = vector.load %arg26[%c4, %c0_26] : memref<148x96xf32, #tpu.memory_space<vmem>>, vector<144x96xf32>
    %28 = arith.truncf %27 : vector<144x96xf32> to vector<144x96xbf16>
    %c4_27 = arith.constant 4 : index
    %c0_28 = arith.constant 0 : index
    %c0_29 = arith.constant 0 : index
    %29 = vector.load %arg3[%c4_27, %c0_28, %c0_29] : memref<5x96x256xbf16, #tpu.memory_space<vmem>>, vector<1x96x256xbf16>
    %30 = vector.shape_cast %29 : vector<1x96x256xbf16> to vector<96x256xbf16>
    %cst_30 = arith.constant dense<0.000000e+00> : vector<144x256xf32>
    %31 = tpu.matmul %28, %30, %cst_30 {dimension_numbers = #tpu.dot_dimension_numbers<[1], [0], [0], [1], [0, 0, 1, 1], [], []>} : vector<144x96xbf16>, vector<96x256xbf16>, vector<144x256xf32> -> vector<144x256xf32>
    %32 = arith.addf %26, %31 : vector<144x256xf32>
    %c0_31 = arith.constant 0 : index
    %c0_32 = arith.constant 0 : index
    %33 = vector.load %arg4[%c0_31, %c0_32] : memref<1x256xf32, #tpu.memory_space<vmem>>, vector<1x256xf32>
    %34 = vector.broadcast %33 : vector<1x256xf32> to vector<144x256xf32>
    %35 = arith.addf %32, %34 : vector<144x256xf32>
    %cst_33 = arith.constant 0.000000e+00 : f32
    %36 = vector.broadcast %cst_33 : f32 to vector<144x256xf32>
    %37 = arith.maximumf %35, %36 : vector<144x256xf32>
    %38 = arith.truncf %37 : vector<144x256xf32> to vector<144x256xbf16>
    %c0_34 = arith.constant 0 : index
    %c0_35 = arith.constant 0 : index
    %39 = vector.load %arg5[%c0_34, %c0_35] : memref<4x144xbf16, #tpu.memory_space<vmem>>, vector<4x144xbf16>
    %cst_36 = arith.constant dense<0.000000e+00> : vector<4x256xf32>
    %40 = tpu.matmul %39, %38, %cst_36 {dimension_numbers = #tpu.dot_dimension_numbers<[1], [0], [0], [1], [0, 0, 1, 1], [], []>} : vector<4x144xbf16>, vector<144x256xbf16>, vector<4x256xf32> -> vector<4x256xf32>
    %41 = arith.truncf %40 : vector<4x256xf32> to vector<4x256xbf16>
    %c0_37 = arith.constant 0 : index
    %c0_38 = arith.constant 0 : index
    %42 = vector.load %arg6[%c0_37, %c0_38] : memref<256x128xbf16, #tpu.memory_space<vmem>>, vector<256x128xbf16>
    %cst_39 = arith.constant dense<0.000000e+00> : vector<4x128xf32>
    %43 = tpu.matmul %41, %42, %cst_39 {dimension_numbers = #tpu.dot_dimension_numbers<[1], [0], [0], [1], [0, 0, 1, 1], [], []>} : vector<4x256xbf16>, vector<256x128xbf16>, vector<4x128xf32> -> vector<4x128xf32>
    %cst_40 = arith.constant 9.765625E-4 : f32
    %44 = vector.broadcast %cst_40 : f32 to vector<4x128xf32>
    %45 = arith.mulf %43, %44 : vector<4x128xf32>
    %c0_41 = arith.constant 0 : index
    %c0_42 = arith.constant 0 : index
    %46 = vector.load %arg7[%c0_41, %c0_42] : memref<256x128xbf16, #tpu.memory_space<vmem>>, vector<256x128xbf16>
    %cst_43 = arith.constant dense<0.000000e+00> : vector<144x128xf32>
    %47 = tpu.matmul %38, %46, %cst_43 {dimension_numbers = #tpu.dot_dimension_numbers<[1], [0], [0], [1], [0, 0, 1, 1], [], []>} : vector<144x256xbf16>, vector<256x128xbf16>, vector<144x128xf32> -> vector<144x128xf32>
    %c0_44 = arith.constant 0 : index
    %c0_45 = arith.constant 0 : index
    %48 = vector.load %arg8[%c0_44, %c0_45] : memref<256x128xbf16, #tpu.memory_space<vmem>>, vector<256x128xbf16>
    %cst_46 = arith.constant dense<0.000000e+00> : vector<144x128xf32>
    %49 = tpu.matmul %38, %48, %cst_46 {dimension_numbers = #tpu.dot_dimension_numbers<[1], [0], [0], [1], [0, 0, 1, 1], [], []>} : vector<144x256xbf16>, vector<256x128xbf16>, vector<144x128xf32> -> vector<144x128xf32>
    %50 = arith.maximumf %47, %49 : vector<144x128xf32>
    %51 = arith.truncf %50 : vector<144x128xf32> to vector<144x128xbf16>
    %c0_47 = arith.constant 0 : index
    %c0_48 = arith.constant 0 : index
    %52 = vector.load %arg9[%c0_47, %c0_48] : memref<74x144xbf16, #tpu.memory_space<vmem>>, vector<74x144xbf16>
    %cst_49 = arith.constant dense<0.000000e+00> : vector<74x128xf32>
    %53 = tpu.matmul %52, %51, %cst_49 {dimension_numbers = #tpu.dot_dimension_numbers<[1], [0], [0], [1], [0, 0, 1, 1], [], []>} : vector<74x144xbf16>, vector<144x128xbf16>, vector<74x128xf32> -> vector<74x128xf32>
    %c0_50 = arith.constant 0 : index
    %c0_51 = arith.constant 0 : index
    %54 = vector.load %arg10[%c0_50, %c0_51] : memref<74x144xbf16, #tpu.memory_space<vmem>>, vector<74x144xbf16>
    %cst_52 = arith.constant dense<0.000000e+00> : vector<74x128xf32>
    %55 = tpu.matmul %54, %51, %cst_52 {dimension_numbers = #tpu.dot_dimension_numbers<[1], [0], [0], [1], [0, 0, 1, 1], [], []>} : vector<74x144xbf16>, vector<144x128xbf16>, vector<74x128xf32> -> vector<74x128xf32>
    %56 = arith.maximumf %53, %55 : vector<74x128xf32>
    %c0_53 = arith.constant 0 : index
    %c0_54 = arith.constant 0 : index
    %57 = vector.load %arg27[%c0_53, %c0_54] : memref<74x128xf32, #tpu.memory_space<vmem>>, vector<74x128xf32>
    tpu.vector_store %arg27[%c0_53, %c0_54], %56 {strides = array<i32>} : memref<74x128xf32, #tpu.memory_space<vmem>>, vector<74x128xf32>,
    %c0_55 = arith.constant 0 : index
    %c0_56 = arith.constant 0 : index
    %58 = vector.load %arg27[%c0_55, %c0_56] : memref<74x128xf32, #tpu.memory_space<vmem>>, vector<72x128xf32>
    %59 = arith.truncf %58 : vector<72x128xf32> to vector<72x128xbf16>
    %c0_57 = arith.constant 0 : index
    %c0_58 = arith.constant 0 : index
    %c0_59 = arith.constant 0 : index
    %60 = vector.load %arg11[%c0_57, %c0_58, %c0_59] : memref<3x128x256xbf16, #tpu.memory_space<vmem>>, vector<1x128x256xbf16>
    %61 = vector.shape_cast %60 : vector<1x128x256xbf16> to vector<128x256xbf16>
    %cst_60 = arith.constant dense<0.000000e+00> : vector<72x256xf32>
    %62 = tpu.matmul %59, %61, %cst_60 {dimension_numbers = #tpu.dot_dimension_numbers<[1], [0], [0], [1], [0, 0, 1, 1], [], []>} : vector<72x128xbf16>, vector<128x256xbf16>, vector<72x256xf32> -> vector<72x256xf32>
    %c1_61 = arith.constant 1 : index
    %c0_62 = arith.constant 0 : index
    %63 = vector.load %arg27[%c1_61, %c0_62] : memref<74x128xf32, #tpu.memory_space<vmem>>, vector<72x128xf32>
    %64 = arith.truncf %63 : vector<72x128xf32> to vector<72x128xbf16>
    %c1_63 = arith.constant 1 : index
    %c0_64 = arith.constant 0 : index
    %c0_65 = arith.constant 0 : index
    %65 = vector.load %arg11[%c1_63, %c0_64, %c0_65] : memref<3x128x256xbf16, #tpu.memory_space<vmem>>, vector<1x128x256xbf16>
    %66 = vector.shape_cast %65 : vector<1x128x256xbf16> to vector<128x256xbf16>
    %cst_66 = arith.constant dense<0.000000e+00> : vector<72x256xf32>
    %67 = tpu.matmul %64, %66, %cst_66 {dimension_numbers = #tpu.dot_dimension_numbers<[1], [0], [0], [1], [0, 0, 1, 1], [], []>} : vector<72x128xbf16>, vector<128x256xbf16>, vector<72x256xf32> -> vector<72x256xf32>
    %68 = arith.addf %62, %67 : vector<72x256xf32>
    %c2_67 = arith.constant 2 : index
    %c0_68 = arith.constant 0 : index
    %69 = vector.load %arg27[%c2_67, %c0_68] : memref<74x128xf32, #tpu.memory_space<vmem>>, vector<72x128xf32>
    %70 = arith.truncf %69 : vector<72x128xf32> to vector<72x128xbf16>
    %c2_69 = arith.constant 2 : index
    %c0_70 = arith.constant 0 : index
    %c0_71 = arith.constant 0 : index
    %71 = vector.load %arg11[%c2_69, %c0_70, %c0_71] : memref<3x128x256xbf16, #tpu.memory_space<vmem>>, vector<1x128x256xbf16>
    %72 = vector.shape_cast %71 : vector<1x128x256xbf16> to vector<128x256xbf16>
    %cst_72 = arith.constant dense<0.000000e+00> : vector<72x256xf32>
    %73 = tpu.matmul %70, %72, %cst_72 {dimension_numbers = #tpu.dot_dimension_numbers<[1], [0], [0], [1], [0, 0, 1, 1], [], []>} : vector<72x128xbf16>, vector<128x256xbf16>, vector<72x256xf32> -> vector<72x256xf32>
    %74 = arith.addf %68, %73 : vector<72x256xf32>
    %c0_73 = arith.constant 0 : index
    %c0_74 = arith.constant 0 : index
    %75 = vector.load %arg12[%c0_73, %c0_74] : memref<1x256xf32, #tpu.memory_space<vmem>>, vector<1x256xf32>
    %76 = vector.broadcast %75 : vector<1x256xf32> to vector<72x256xf32>
    %77 = arith.addf %74, %76 : vector<72x256xf32>
    %cst_75 = arith.constant 0.000000e+00 : f32
    %78 = vector.broadcast %cst_75 : f32 to vector<72x256xf32>
    %79 = arith.maximumf %77, %78 : vector<72x256xf32>
    %80 = arith.truncf %79 : vector<72x256xf32> to vector<72x256xbf16>
    %c0_76 = arith.constant 0 : index
    %c0_77 = arith.constant 0 : index
    %81 = vector.load %arg13[%c0_76, %c0_77] : memref<4x72xbf16, #tpu.memory_space<vmem>>, vector<4x72xbf16>
    %cst_78 = arith.constant dense<0.000000e+00> : vector<4x256xf32>
    %82 = tpu.matmul %81, %80, %cst_78 {dimension_numbers = #tpu.dot_dimension_numbers<[1], [0], [0], [1], [0, 0, 1, 1], [], []>} : vector<4x72xbf16>, vector<72x256xbf16>, vector<4x256xf32> -> vector<4x256xf32>
    %83 = arith.truncf %82 : vector<4x256xf32> to vector<4x256xbf16>
    %c0_79 = arith.constant 0 : index
    %c0_80 = arith.constant 0 : index
    %84 = vector.load %arg14[%c0_79, %c0_80] : memref<256x128xbf16, #tpu.memory_space<vmem>>, vector<256x128xbf16>
    %cst_81 = arith.constant dense<0.000000e+00> : vector<4x128xf32>
    %85 = tpu.matmul %83, %84, %cst_81 {dimension_numbers = #tpu.dot_dimension_numbers<[1], [0], [0], [1], [0, 0, 1, 1], [], []>} : vector<4x256xbf16>, vector<256x128xbf16>, vector<4x128xf32> -> vector<4x128xf32>
    %cst_82 = arith.constant 3.906250e-03 : f32
    %86 = vector.broadcast %cst_82 : f32 to vector<4x128xf32>
    %87 = arith.mulf %85, %86 : vector<4x128xf32>
    %c0_83 = arith.constant 0 : index
    %c0_84 = arith.constant 0 : index
    %88 = vector.load %arg15[%c0_83, %c0_84] : memref<256x128xbf16, #tpu.memory_space<vmem>>, vector<256x128xbf16>
    %cst_85 = arith.constant dense<0.000000e+00> : vector<72x128xf32>
    %89 = tpu.matmul %80, %88, %cst_85 {dimension_numbers = #tpu.dot_dimension_numbers<[1], [0], [0], [1], [0, 0, 1, 1], [], []>} : vector<72x256xbf16>, vector<256x128xbf16>, vector<72x128xf32> -> vector<72x128xf32>
    %c0_86 = arith.constant 0 : index
    %c0_87 = arith.constant 0 : index
    %90 = vector.load %arg16[%c0_86, %c0_87] : memref<256x128xbf16, #tpu.memory_space<vmem>>, vector<256x128xbf16>
    %cst_88 = arith.constant dense<0.000000e+00> : vector<72x128xf32>
    %91 = tpu.matmul %80, %90, %cst_88 {dimension_numbers = #tpu.dot_dimension_numbers<[1], [0], [0], [1], [0, 0, 1, 1], [], []>} : vector<72x256xbf16>, vector<256x128xbf16>, vector<72x128xf32> -> vector<72x128xf32>
    %92 = arith.maximumf %89, %91 : vector<72x128xf32>
    %93 = arith.truncf %92 : vector<72x128xf32> to vector<72x128xbf16>
    %c0_89 = arith.constant 0 : index
    %c0_90 = arith.constant 0 : index
    %94 = vector.load %arg17[%c0_89, %c0_90] : memref<42x72xbf16, #tpu.memory_space<vmem>>, vector<42x72xbf16>
    %cst_91 = arith.constant dense<0.000000e+00> : vector<42x128xf32>
    %95 = tpu.matmul %94, %93, %cst_91 {dimension_numbers = #tpu.dot_dimension_numbers<[1], [0], [0], [1], [0, 0, 1, 1], [], []>} : vector<42x72xbf16>, vector<72x128xbf16>, vector<42x128xf32> -> vector<42x128xf32>
    %c0_92 = arith.constant 0 : index
    %c0_93 = arith.constant 0 : index
    %96 = vector.load %arg18[%c0_92, %c0_93] : memref<42x72xbf16, #tpu.memory_space<vmem>>, vector<42x72xbf16>
    %cst_94 = arith.constant dense<0.000000e+00> : vector<42x128xf32>
    %97 = tpu.matmul %96, %93, %cst_94 {dimension_numbers = #tpu.dot_dimension_numbers<[1], [0], [0], [1], [0, 0, 1, 1], [], []>} : vector<42x72xbf16>, vector<72x128xbf16>, vector<42x128xf32> -> vector<42x128xf32>
    %98 = arith.maximumf %95, %97 : vector<42x128xf32>
    %c0_95 = arith.constant 0 : index
    %c0_96 = arith.constant 0 : index
    %99 = vector.load %arg28[%c0_95, %c0_96] : memref<42x128xf32, #tpu.memory_space<vmem>>, vector<42x128xf32>
    tpu.vector_store %arg28[%c0_95, %c0_96], %98 {strides = array<i32>} : memref<42x128xf32, #tpu.memory_space<vmem>>, vector<42x128xf32>,
    %c0_97 = arith.constant 0 : index
    %c0_98 = arith.constant 0 : index
    %100 = vector.load %arg28[%c0_97, %c0_98] : memref<42x128xf32, #tpu.memory_space<vmem>>, vector<40x128xf32>
    %101 = arith.truncf %100 : vector<40x128xf32> to vector<40x128xbf16>
    %c0_99 = arith.constant 0 : index
    %c0_100 = arith.constant 0 : index
    %c0_101 = arith.constant 0 : index
    %102 = vector.load %arg19[%c0_99, %c0_100, %c0_101] : memref<3x128x256xbf16, #tpu.memory_space<vmem>>, vector<1x128x256xbf16>
    %103 = vector.shape_cast %102 : vector<1x128x256xbf16> to vector<128x256xbf16>
    %cst_102 = arith.constant dense<0.000000e+00> : vector<40x256xf32>
    %104 = tpu.matmul %101, %103, %cst_102 {dimension_numbers = #tpu.dot_dimension_numbers<[1], [0], [0], [1], [0, 0, 1, 1], [], []>} : vector<40x128xbf16>, vector<128x256xbf16>, vector<40x256xf32> -> vector<40x256xf32>
    %c1_103 = arith.constant 1 : index
    %c0_104 = arith.constant 0 : index
    %105 = vector.load %arg28[%c1_103, %c0_104] : memref<42x128xf32, #tpu.memory_space<vmem>>, vector<40x128xf32>
    %106 = arith.truncf %105 : vector<40x128xf32> to vector<40x128xbf16>
    %c1_105 = arith.constant 1 : index
    %c0_106 = arith.constant 0 : index
    %c0_107 = arith.constant 0 : index
    %107 = vector.load %arg19[%c1_105, %c0_106, %c0_107] : memref<3x128x256xbf16, #tpu.memory_space<vmem>>, vector<1x128x256xbf16>
    %108 = vector.shape_cast %107 : vector<1x128x256xbf16> to vector<128x256xbf16>
    %cst_108 = arith.constant dense<0.000000e+00> : vector<40x256xf32>
    %109 = tpu.matmul %106, %108, %cst_108 {dimension_numbers = #tpu.dot_dimension_numbers<[1], [0], [0], [1], [0, 0, 1, 1], [], []>} : vector<40x128xbf16>, vector<128x256xbf16>, vector<40x256xf32> -> vector<40x256xf32>
    %110 = arith.addf %104, %109 : vector<40x256xf32>
    %c2_109 = arith.constant 2 : index
    %c0_110 = arith.constant 0 : index
    %111 = vector.load %arg28[%c2_109, %c0_110] : memref<42x128xf32, #tpu.memory_space<vmem>>, vector<40x128xf32>
    %112 = arith.truncf %111 : vector<40x128xf32> to vector<40x128xbf16>
    %c2_111 = arith.constant 2 : index
    %c0_112 = arith.constant 0 : index
    %c0_113 = arith.constant 0 : index
    %113 = vector.load %arg19[%c2_111, %c0_112, %c0_113] : memref<3x128x256xbf16, #tpu.memory_space<vmem>>, vector<1x128x256xbf16>
    %114 = vector.shape_cast %113 : vector<1x128x256xbf16> to vector<128x256xbf16>
    %cst_114 = arith.constant dense<0.000000e+00> : vector<40x256xf32>
    %115 = tpu.matmul %112, %114, %cst_114 {dimension_numbers = #tpu.dot_dimension_numbers<[1], [0], [0], [1], [0, 0, 1, 1], [], []>} : vector<40x128xbf16>, vector<128x256xbf16>, vector<40x256xf32> -> vector<40x256xf32>
    %116 = arith.addf %110, %115 : vector<40x256xf32>
    %c0_115 = arith.constant 0 : index
    %c0_116 = arith.constant 0 : index
    %117 = vector.load %arg20[%c0_115, %c0_116] : memref<1x256xf32, #tpu.memory_space<vmem>>, vector<1x256xf32>
    %118 = vector.broadcast %117 : vector<1x256xf32> to vector<40x256xf32>
    %119 = arith.addf %116, %118 : vector<40x256xf32>
    %cst_117 = arith.constant 0.000000e+00 : f32
    %120 = vector.broadcast %cst_117 : f32 to vector<40x256xf32>
    %121 = arith.maximumf %119, %120 : vector<40x256xf32>
    %122 = arith.truncf %121 : vector<40x256xf32> to vector<40x256xbf16>
    %c0_118 = arith.constant 0 : index
    %c0_119 = arith.constant 0 : index
    %123 = vector.load %arg21[%c0_118, %c0_119] : memref<4x40xbf16, #tpu.memory_space<vmem>>, vector<4x40xbf16>
    %cst_120 = arith.constant dense<0.000000e+00> : vector<4x256xf32>
    %124 = tpu.matmul %123, %122, %cst_120 {dimension_numbers = #tpu.dot_dimension_numbers<[1], [0], [0], [1], [0, 0, 1, 1], [], []>} : vector<4x40xbf16>, vector<40x256xbf16>, vector<4x256xf32> -> vector<4x256xf32>
    %125 = arith.truncf %124 : vector<4x256xf32> to vector<4x256xbf16>
    %c0_121 = arith.constant 0 : index
    %c0_122 = arith.constant 0 : index
    %126 = vector.load %arg22[%c0_121, %c0_122] : memref<256x128xbf16, #tpu.memory_space<vmem>>, vector<256x128xbf16>
    %cst_123 = arith.constant dense<0.000000e+00> : vector<4x128xf32>
    %127 = tpu.matmul %125, %126, %cst_123 {dimension_numbers = #tpu.dot_dimension_numbers<[1], [0], [0], [1], [0, 0, 1, 1], [], []>} : vector<4x256xbf16>, vector<256x128xbf16>, vector<4x128xf32> -> vector<4x128xf32>
    %cst_124 = arith.constant 1.562500e-02 : f32
    %128 = vector.broadcast %cst_124 : f32 to vector<4x128xf32>
    %129 = arith.mulf %127, %128 : vector<4x128xf32>
    %130 = arith.addf %45, %87 : vector<4x128xf32>
    %131 = arith.addf %130, %129 : vector<4x128xf32>
    %132 = arith.truncf %131 : vector<4x128xf32> to vector<4x128xbf16>
    %c0_125 = arith.constant 0 : index
    %c0_126 = arith.constant 0 : index
    %133 = vector.load %arg23[%c0_125, %c0_126] : memref<128x128xbf16, #tpu.memory_space<vmem>>, vector<128x128xbf16>
    %cst_127 = arith.constant dense<0.000000e+00> : vector<4x128xf32>
    %134 = tpu.matmul %132, %133, %cst_127 {dimension_numbers = #tpu.dot_dimension_numbers<[1], [0], [0], [1], [0, 0, 1, 1], [], []>} : vector<4x128xbf16>, vector<128x128xbf16>, vector<4x128xf32> -> vector<4x128xf32>
    %c0_128 = arith.constant 0 : index
    %c0_129 = arith.constant 0 : index
    %135 = vector.load %arg24[%c0_128, %c0_129] : memref<1x128xf32, #tpu.memory_space<vmem>>, vector<1x128xf32>
    %136 = vector.broadcast %135 : vector<1x128xf32> to vector<4x128xf32>
    %137 = arith.addf %134, %136 : vector<4x128xf32>
    %138 = arith.addf %131, %137 : vector<4x128xf32>
    %c0_130 = arith.constant 0 : index
    %c0_131 = arith.constant 0 : index
    %c0_132 = arith.constant 0 : index
    %139 = vector.load %arg25[%c0_130, %c0_131, %c0_132] : memref<1x4x128xf32, #tpu.memory_space<vmem>>, vector<1x4x128xf32>
    %140 = vector.shape_cast %139 : vector<1x4x128xf32> to vector<4x128xf32>
    %141 = vector.shape_cast %138 : vector<4x128xf32> to vector<1x4x128xf32>
    tpu.vector_store %arg25[%c0_130, %c0_131, %c0_132], %141 {strides = array<i32>} : memref<1x4x128xf32, #tpu.memory_space<vmem>>, vector<1x4x128xf32>,
    return
  }
  func.func @transform_0(%arg0: i32) -> (i32, i32) {
    %c0_i32 = arith.constant 0 : i32
    %c0_i32_0 = arith.constant 0 : i32
    return %arg0, %c0_i32 : i32, i32
  }
  func.func @transform_1(%arg0: i32) -> (i32, i32) {
    %c0_i32 = arith.constant 0 : i32
    %c0_i32_0 = arith.constant 0 : i32
    %c0_i32_1 = arith.constant 0 : i32
    return %c0_i32, %c0_i32_0 : i32, i32
  }
  func.func @transform_2(%arg0: i32) -> (i32, i32, i32) {
    %c0_i32 = arith.constant 0 : i32
    %c0_i32_0 = arith.constant 0 : i32
    %c0_i32_1 = arith.constant 0 : i32
    %c0_i32_2 = arith.constant 0 : i32
    return %c0_i32, %c0_i32_0, %c0_i32_1 : i32, i32, i32
  }
  func.func @transform_3(%arg0: i32) -> (i32, i32) {
    %c0_i32 = arith.constant 0 : i32
    %c0_i32_0 = arith.constant 0 : i32
    %c0_i32_1 = arith.constant 0 : i32
    return %c0_i32, %c0_i32_0 : i32, i32
  }
  func.func @transform_4(%arg0: i32) -> (i32, i32) {
    %c0_i32 = arith.constant 0 : i32
    %c0_i32_0 = arith.constant 0 : i32
    %c0_i32_1 = arith.constant 0 : i32
    return %c0_i32, %c0_i32_0 : i32, i32
  }
  func.func @transform_5(%arg0: i32) -> (i32, i32) {
    %c0_i32 = arith.constant 0 : i32
    %c0_i32_0 = arith.constant 0 : i32
    %c0_i32_1 = arith.constant 0 : i32
    return %c0_i32, %c0_i32_0 : i32, i32
  }
  func.func @transform_6(%arg0: i32) -> (i32, i32) {
    %c0_i32 = arith.constant 0 : i32
    %c0_i32_0 = arith.constant 0 : i32
    %c0_i32_1 = arith.constant 0 : i32
    return %c0_i32, %c0_i32_0 : i32, i32
  }
  func.func @transform_7(%arg0: i32) -> (i32, i32) {
    %c0_i32 = arith.constant 0 : i32
    %c0_i32_0 = arith.constant 0 : i32
    %c0_i32_1 = arith.constant 0 : i32
    return %c0_i32, %c0_i32_0 : i32, i32
  }
  func.func @transform_8(%arg0: i32) -> (i32, i32) {
    %c0_i32 = arith.constant 0 : i32
    %c0_i32_0 = arith.constant 0 : i32
    %c0_i32_1 = arith.constant 0 : i32
    return %c0_i32, %c0_i32_0 : i32, i32
  }
  func.func @transform_9(%arg0: i32) -> (i32, i32) {
    %c0_i32 = arith.constant 0 : i32
    %c0_i32_0 = arith.constant 0 : i32
    %c0_i32_1 = arith.constant 0 : i32
    return %c0_i32, %c0_i32_0 : i32, i32
  }
  func.func @transform_10(%arg0: i32) -> (i32, i32, i32) {
    %c0_i32 = arith.constant 0 : i32
    %c0_i32_0 = arith.constant 0 : i32
    %c0_i32_1 = arith.constant 0 : i32
    %c0_i32_2 = arith.constant 0 : i32
    return %c0_i32, %c0_i32_0, %c0_i32_1 : i32, i32, i32
  }
  func.func @transform_11(%arg0: i32) -> (i32, i32) {
    %c0_i32 = arith.constant 0 : i32
    %c0_i32_0 = arith.constant 0 : i32
    %c0_i32_1 = arith.constant 0 : i32
    return %c0_i32, %c0_i32_0 : i32, i32
  }
  func.func @transform_12(%arg0: i32) -> (i32, i32) {
    %c0_i32 = arith.constant 0 : i32
    %c0_i32_0 = arith.constant 0 : i32
    %c0_i32_1 = arith.constant 0 : i32
    return %c0_i32, %c0_i32_0 : i32, i32
  }
  func.func @transform_13(%arg0: i32) -> (i32, i32) {
    %c0_i32 = arith.constant 0 : i32
    %c0_i32_0 = arith.constant 0 : i32
    %c0_i32_1 = arith.constant 0 : i32
    return %c0_i32, %c0_i32_0 : i32, i32
  }
  func.func @transform_14(%arg0: i32) -> (i32, i32) {
    %c0_i32 = arith.constant 0 : i32
    %c0_i32_0 = arith.constant 0 : i32
    %c0_i32_1 = arith.constant 0 : i32
    return %c0_i32, %c0_i32_0 : i32, i32
  }
  func.func @transform_15(%arg0: i32) -> (i32, i32) {
    %c0_i32 = arith.constant 0 : i32
    %c0_i32_0 = arith.constant 0 : i32
    %c0_i32_1 = arith.constant 0 : i32
    return %c0_i32, %c0_i32_0 : i32, i32
  }
  func.func @transform_16(%arg0: i32) -> (i32, i32) {
    %c0_i32 = arith.constant 0 : i32
    %c0_i32_0 = arith.constant 0 : i32
    %c0_i32_1 = arith.constant 0 : i32
    return %c0_i32, %c0_i32_0 : i32, i32
  }
  func.func @transform_17(%arg0: i32) -> (i32, i32) {
    %c0_i32 = arith.constant 0 : i32
    %c0_i32_0 = arith.constant 0 : i32
    %c0_i32_1 = arith.constant 0 : i32
    return %c0_i32, %c0_i32_0 : i32, i32
  }
  func.func @transform_18(%arg0: i32) -> (i32, i32, i32) {
    %c0_i32 = arith.constant 0 : i32
    %c0_i32_0 = arith.constant 0 : i32
    %c0_i32_1 = arith.constant 0 : i32
    %c0_i32_2 = arith.constant 0 : i32
    return %c0_i32, %c0_i32_0, %c0_i32_1 : i32, i32, i32
  }
  func.func @transform_19(%arg0: i32) -> (i32, i32) {
    %c0_i32 = arith.constant 0 : i32
    %c0_i32_0 = arith.constant 0 : i32
    %c0_i32_1 = arith.constant 0 : i32
    return %c0_i32, %c0_i32_0 : i32, i32
  }
  func.func @transform_20(%arg0: i32) -> (i32, i32) {
    %c0_i32 = arith.constant 0 : i32
    %c0_i32_0 = arith.constant 0 : i32
    %c0_i32_1 = arith.constant 0 : i32
    return %c0_i32, %c0_i32_0 : i32, i32
  }
  func.func @transform_21(%arg0: i32) -> (i32, i32) {
    %c0_i32 = arith.constant 0 : i32
    %c0_i32_0 = arith.constant 0 : i32
    %c0_i32_1 = arith.constant 0 : i32
    return %c0_i32, %c0_i32_0 : i32, i32
  }
  func.func @transform_22(%arg0: i32) -> (i32, i32) {
    %c0_i32 = arith.constant 0 : i32
    %c0_i32_0 = arith.constant 0 : i32
    %c0_i32_1 = arith.constant 0 : i32
    return %c0_i32, %c0_i32_0 : i32, i32
  }
  func.func @transform_23(%arg0: i32) -> (i32, i32) {
    %c0_i32 = arith.constant 0 : i32
    %c0_i32_0 = arith.constant 0 : i32
    %c0_i32_1 = arith.constant 0 : i32
    return %c0_i32, %c0_i32_0 : i32, i32
  }
  func.func @transform_24(%arg0: i32) -> (i32, i32, i32) {
    %c0_i32 = arith.constant 0 : i32
    %c0_i32_0 = arith.constant 0 : i32
    %c0_i32_1 = arith.constant 0 : i32
    return %arg0, %c0_i32, %c0_i32_0 : i32, i32, i32
  }
}

</mosaic_0001>

<bundles_post_ra>
// kernel: gp_lenet_forward.1
= control target key start
LH: loop header
LB: loop body
LE: loop exit
PB: predicated region body
PF: predicated region fallthrough
CT: control target
= control target key end

     0   :  { %s9844_s0 = inlined_call_operand.vmem [shape: bf16[256,96], index: 0, kind: input, shape index: {}]   ;;  %s9845_s1 = inlined_call_operand.vmem [shape: bf16[148,128], index: 1, kind: input, shape index: {}]   ;;  %s9846_s2 = inlined_call_operand.vmem [shape: bf16[5,96,256], index: 2, kind: input, shape index: {}]   ;;  %s9847_s3 = inlined_call_operand.vmem [shape: f32[1,256], index: 3, kind: input, shape index: {}]   ;;  %s9848_s4 = inlined_call_operand.vmem [shape: bf16[4,144], index: 4, kind: input, shape index: {}]   ;;  %s9849_s5 = inlined_call_operand.vmem [shape: bf16[256,128], index: 5, kind: input, shape index: {}]   ;;  %s9850_s6 = inlined_call_operand.vmem [shape: bf16[256,128], index: 6, kind: input, shape index: {}]   ;;  %s9851_s7 = inlined_call_operand.vmem [shape: bf16[256,128], index: 7, kind: input, shape index: {}]   ;;  %s9852_s8 = inlined_call_operand.vmem [shape: bf16[74,144], index: 8, kind: input, shape index: {}]   ;;  %s9853_s9 = inlined_call_operand.vmem [shape: bf16[74,144], index: 9, kind: input, shape index: {}]   ;;  %s9854_s10 = inlined_call_operand.vmem [shape: bf16[3,128,256], index: 10, kind: input, shape index: {}]   ;;  %s9855_s11 = inlined_call_operand.vmem [shape: f32[1,256], index: 11, kind: input, shape index: {}]   ;;  %s9856_s12 = inlined_call_operand.vmem [shape: bf16[4,72], index: 12, kind: input, shape index: {}]   ;;  %s9857_s13 = inlined_call_operand.vmem [shape: bf16[256,128], index: 13, kind: input, shape index: {}]   ;;  %s9858_s14 = inlined_call_operand.vmem [shape: bf16[256,128], index: 14, kind: input, shape index: {}]   ;;  %s9859_s15 = inlined_call_operand.vmem [shape: bf16[256,128], index: 15, kind: input, shape index: {}]   ;;  %s9860_s16 = inlined_call_operand.vmem [shape: bf16[42,72], index: 16, kind: input, shape index: {}]   ;;  %s9861_s17 = inlined_call_operand.vmem [shape: bf16[42,72], index: 17, kind: input, shape index: {}]   ;;  %s9862_s18 = inlined_call_operand.vmem [shape: bf16[3,128,256], index: 18, kind: input, shape index: {}]   ;;  %s9863_s19 = inlined_call_operand.vmem [shape: f32[1,256], index: 19, kind: input, shape index: {}]   ;;  %s9864_s20 = inlined_call_operand.vmem [shape: bf16[4,40], index: 20, kind: input, shape index: {}]   ;;  %s9865_s21 = inlined_call_operand.vmem [shape: bf16[256,128], index: 21, kind: input, shape index: {}]   ;;  %s9866_s22 = inlined_call_operand.vmem [shape: bf16[128,128], index: 22, kind: input, shape index: {}]   ;;  %s9867_s23 = inlined_call_operand.vmem [shape: f32[1,128], index: 23, kind: input, shape index: {}]   ;;  %s9868_s24 = inlined_call_operand.vmem [shape: f32[2,4,128], index: 24, kind: output, shape index: {}]  }
   0x1   :  { %9884 = sst [smem:[#allocation15_spill]] %s9844_s0 }
   0x2   :  { %9885 = sst [smem:[#allocation16_spill]] %s9845_s1 }
   0x3   :  { %9886 = sst [smem:[#allocation17_spill]] %s9846_s2 }
   0x4   :  { %9887 = sst [smem:[#allocation18_spill]] %s9847_s3 }
   0x5   :  { %9888 = sst [smem:[#allocation19_spill]] %s9848_s4 }
   0x6   :  { %9889 = sst [smem:[#allocation20_spill]] %s9849_s5  ;;  %s7468_s5 = smov 0  }
   0x7   :  { %9890 = sst [smem:[#allocation21_spill]] %s9850_s6 }
   0x8   :  { %9891 = sst [smem:[#allocation22_spill]] %s9851_s7 }
   0x9   :  { %9892 = sst [smem:[#allocation23_spill]] %s9852_s8 }
   0xa   :  { %9893 = sst [smem:[#allocation24_spill]] %s9853_s9 }
   0xb LB: > { %s7474_s26 = sadd.s32 4294967295, %s7341_s5   ;;  %p5501_p0 = scmp.ge.s32.totalorder %s7341_s5, 1  ;;  %s7341_s5 = sphi %s7468_s5, %s34_s5  }
   0xc   : > { %p663_p1 = scmp.lt.s32.totalorder %s7341_s5, 3 }
   0xe   : > { %p664_p2 = pnand %p5501_p0, %p663_p1 }
  0x10   : > { %667 = sbr.rel (%p664_p2) target bundleno = 2928 (0xb70), region = 116 }
  0x15   : > { %s5502_s27 = sshll.u32 %s7474_s26, 4  ;;  %s9894_s29 = sld [smem:[#allocation15_spill]]  ;;  %vm938_vm0 = vcmask 785408   ;;  %vm957_vm1 = vcmask 781312   ;;  %vm2343_vm2 = vcmask 130048   ;;  %vm3955_vm3 = vcmask 1043456  }
  0x16   : > { %p729_p3 = scmp.lt.s32.totalorder %s5502_s27, 31  ;;  %s9895_s3 = sld [smem:[#allocation16_spill]]  ;;  %vm3951_vm4 = vcmask 588800   ;;  %vm5165_vm5 = vcmask 326656  }
  0x17   : > { %s9896_s25 = sld [smem:[#allocation17_spill]]  ;;  %p734_p4 = scmp.lt.s32.totalorder %s7474_s26, 1 }
  0x18   : > { %s9934_s27 = smov (!%p729_p3, %s5502_s27), 31  ;;  %s9897_s2 = sld [smem:[#allocation21_spill]] }
  0x19   : > { %s5503_s28 = sshll.u32 %s9934_s27, 2  ;;  %s9900_s7 = sld [smem:[#allocation18_spill]] }
  0x1a   : > { %s9901_s4 = sld [smem:[#allocation19_spill]]  ;;  %s9936_s26 = smov (!%p734_p4, %s7474_s26), 1 }
  0x1b   : > { %s732_s0 = scalar_lea.vmem %s9894_s29, %s5503_s28  ;;  %s9909_s28 = sld [smem:[#allocation20_spill]] }
  0x1c   : > { %v7023_v0 = vld [vmem:[%s732_s0 + $0x38] sm:$0xff]  ;;  %v7022_v1 = vld [vmem:[%s732_s0 + $0x30] sm:$0xff]  ;;  %v7021_v2 = vld [vmem:[%s732_s0 + $0x28] sm:$0xff]  ;;  %s9917_s30 = sld [smem:[#allocation23_spill]] }
  0x1d   : > { %880 = vmatpush.bf16.msra.mxu0 %v7023_v0  ;;  %v7020_v3 = vld [vmem:[%s732_s0 + $0x20] sm:$0xff]  ;;  %v7019_v4 = vld [vmem:[%s732_s0 + $0x18] sm:$0xff]  ;;  %v7018_v5 = vld [vmem:[%s732_s0 + $0x10] sm:$0xff]  ;;  %s9918_s9 = sld [smem:[#allocation24_spill]] }
  0x1e   : > { %v7017_v6 = vld [vmem:[%s732_s0 + $0x8] sm:$0xff]  ;;  %v7016_v7 = vld [vmem:[%s732_s0] sm:$0xff]  ;;  %v7009_v10 = vld [vmem:[%s9895_s3 + $0x10] sm:$0xff]  ;;  %s5504_s0 = sshll.u32 %s9936_s26, 2 }
  0x1f   : > { %v7007_v8 = vld [vmem:[%s9895_s3] sm:$0xff]  ;;  %v7008_v9 = vld [vmem:[%s9895_s3 + $0x8] sm:$0xff]  ;;  %v7010_v11 = vld [vmem:[%s9895_s3 + $0x18] sm:$0xff] }
  0x20   : > { %v7011_v12 = vld [vmem:[%s9895_s3 + $0x20] sm:$0xff]  ;;  %v7012_v13 = vld [vmem:[%s9895_s3 + $0x28] sm:$0xff]  ;;  %v5693_v14 = vld [vmem:[%s9896_s25 + $0x50] sm:$0xf] }
  0x21   : > { %881 = vmatpush.bf16.msra.mxu0 %v7022_v1  ;;  %v7035_v15 = vld [vmem:[%s9896_s25 + $0x54] sm:$0xf0]  ;;  %v5685_v17 = vld [vmem:[%s9896_s25 + $0x40] sm:$0xf]  ;;  %v7033_v18 = vld [vmem:[%s9896_s25 + $0x44] sm:$0xf0] }
  0x22   : > { %v5694_v16 = vor.u32 %v7035_v15, %v5693_v14  ;;  %v5686_v19 = vor.u32 %v7033_v18, %v5685_v17  ;;  %v7013_v20 = vld [vmem:[%s9895_s3 + $0x30] sm:$0xff]  ;;  %v7047_v22 = vld [vmem:[%s9896_s25 + $0xb4] sm:$0xf0]  ;;  %v5629_v25 = vld [vmem:[%s9896_s25 + $0xb8] sm:$0xf0] }
  0x23   : > { %v5627_v21 = vld [vmem:[%s9896_s25 + $0xb0] sm:$0xf]  ;;  %v7046_v24 = vld [vmem:[%s9896_s25 + $0xb4] sm:$0xf]  ;;  %v7031_v28 = vld [vmem:[%s9896_s25 + $0x34] sm:$0xf0] }
  0x24   : > { %1322 = vmatpush.bf16.msra.mxu3 %v5694_v16  ;;  %v5628_v23 = vor.u32 %v7047_v22, %v5627_v21  ;;  %v5677_v26 = vld [vmem:[%s9896_s25 + $0x30] sm:$0xf]  ;;  %v5632_v27 = vor.u32 %v7046_v24, %v5629_v25  ;;  %v5619_v30 = vld [vmem:[%s9896_s25 + $0xa0] sm:$0xf]  ;;  %v7045_v31 = vld [vmem:[%s9896_s25 + $0xa4] sm:$0xf0] }
  0x25   : > { %882 = vmatpush.bf16.msra.mxu0 %v7021_v2  ;;  %v5678_v29 = vor.u32 %v7031_v28, %v5677_v26  ;;  %v7044_v32 = vld [vmem:[%s9896_s25 + $0xa4] sm:$0xf]  ;;  %v5620_v33 = vor.u32 %v7045_v31, %v5619_v30  ;;  %v5621_v34 = vld [vmem:[%s9896_s25 + $0xa8] sm:$0xf0]  ;;  %v5669_v35 = vld [vmem:[%s9896_s25 + $0x20] sm:$0xf] }
  0x26   : > { %1127 = vmatpush.bf16.msra.mxu1 %v5628_v23  ;;  %1181 = vmatpush.bf16.msra.mxu2 %v5632_v27  ;;  %v7029_v36 = vld [vmem:[%s9896_s25 + $0x24] sm:$0xf0]  ;;  %v5624_v37 = vor.u32 %v7044_v32, %v5621_v34  ;;  %v5611_v39 = vld [vmem:[%s9896_s25 + $0x90] sm:$0xf]  ;;  %v7043_v40 = vld [vmem:[%s9896_s25 + $0x94] sm:$0xf0] }
  0x27   : > { %v5670_v38 = vor.u32 %v7029_v36, %v5669_v35  ;;  %v7042_v41 = vld [vmem:[%s9896_s25 + $0x94] sm:$0xf]  ;;  %v5612_v42 = vor.u32 %v7043_v40, %v5611_v39  ;;  %v5613_v43 = vld [vmem:[%s9896_s25 + $0x98] sm:$0xf0]  ;;  %v5661_v44 = vld [vmem:[%s9896_s25 + $0x10] sm:$0xf] }
  0x28   : > { %1323 = vmatpush.bf16.msra.mxu3 %v5686_v19  ;;  %v7027_v45 = vld [vmem:[%s9896_s25 + $0x14] sm:$0xf0]  ;;  %v5616_v46 = vor.u32 %v7042_v41, %v5613_v43  ;;  %v5849_v48 = vld [vmem:[%s9896_s25 + $0x170] sm:$0xf]  ;;  %v5603_v51 = vld [vmem:[%s9896_s25 + $0x80] sm:$0xf] }
  0x29   : > { %883 = vmatpush.bf16.msra.mxu0 %v7020_v3  ;;  %v5662_v47 = vor.u32 %v7027_v45, %v5661_v44  ;;  %v7071_v49 = vld [vmem:[%s9896_s25 + $0x174] sm:$0xf0]  ;;  %v7041_v52 = vld [vmem:[%s9896_s25 + $0x84] sm:$0xf0]  ;;  %v7040_v53 = vld [vmem:[%s9896_s25 + $0x84] sm:$0xf] }
  0x2a   : > { %1128 = vmatpush.bf16.msra.mxu1 %v5620_v33  ;;  %1182 = vmatpush.bf16.msra.mxu2 %v5624_v37  ;;  %v5850_v50 = vor.u32 %v7071_v49, %v5849_v48  ;;  %v5604_v54 = vor.u32 %v7041_v52, %v5603_v51  ;;  %v5605_v55 = vld [vmem:[%s9896_s25 + $0x88] sm:$0xf0]  ;;  %v5653_v56 = vld [vmem:[%s9896_s25] sm:$0xf]  ;;  %v7025_v57 = vld [vmem:[%s9896_s25 + $0x4] sm:$0xf0] }
  0x2b   : > { %v7014_v58 = vld [vmem:[%s9895_s3 + $0x38] sm:$0xff]  ;;  %v5608_v59 = vor.u32 %v7040_v53, %v5605_v55  ;;  %v5654_v60 = vor.u32 %v7025_v57, %v5653_v56  ;;  %v5841_v61 = vld [vmem:[%s9896_s25 + $0x160] sm:$0xf]  ;;  %v7069_v62 = vld [vmem:[%s9896_s25 + $0x164] sm:$0xf0] }
  0x2c   : > { %1324 = vmatpush.bf16.msra.mxu3 %v5678_v29  ;;  %v5842_v63 = vor.u32 %v7069_v62, %v5841_v61  ;;  %v5595_v0 = vld [vmem:[%s9896_s25 + $0x70] sm:$0xf]  ;;  %v7039_v1 = vld [vmem:[%s9896_s25 + $0x74] sm:$0xf0]  ;;  %v7038_v2 = vld [vmem:[%s9896_s25 + $0x74] sm:$0xf] }
  0x2d   : > { %884 = vmatpush.bf16.msra.mxu0 %v7019_v4  ;;  %v5596_v3 = vor.u32 %v7039_v1, %v5595_v0  ;;  %v5597_v4 = vld [vmem:[%s9896_s25 + $0x78] sm:$0xf0]  ;;  %v5825_v14 = vld [vmem:[%s9896_s25 + $0x140] sm:$0xf]  ;;  %v7065_v15 = vld [vmem:[%s9896_s25 + $0x144] sm:$0xf0] }
  0x2e   : > { %1129 = vmatpush.bf16.msra.mxu1 %v5612_v42  ;;  %1183 = vmatpush.bf16.msra.mxu2 %v5616_v46  ;;  %v5826_v17 = vor.u32 %v7065_v15, %v5825_v14  ;;  %v5817_v18 = vld [vmem:[%s9896_s25 + $0x130] sm:$0xf]  ;;  %v7063_v19 = vld [vmem:[%s9896_s25 + $0x134] sm:$0xf0]  ;;  %v5809_v21 = vld [vmem:[%s9896_s25 + $0x120] sm:$0xf] }
  0x2f   : > { %v7061_v22 = vld [vmem:[%s9896_s25 + $0x124] sm:$0xf0]  ;;  %v7015_v24 = vld [vmem:[%s9895_s3 + $0x40] sm:$0xff] }
  0x30   : > { %1325 = vmatpush.bf16.msra.mxu3 %v5670_v38  ;;  %v5810_v23 = vor.u32 %v7061_v22, %v5809_v21  ;;  %v757_v27 = vld [vmem:[%s9895_s3 + $0x48] sm:$0x3]  ;;  %s9910_s3 = sld [smem:[#allocation22_spill]] }
  0x31   : > { %885 = vmatpush.bf16.msra.mxu0 %v7018_v5  ;;  %v5833_v5 = vld [vmem:[%s9896_s25 + $0x150] sm:$0xf]  ;;  %v811_v28 = vunpack.c.l.b16 %v757_v27 }
  0x32   : > { %1130 = vmatpush.bf16.msra.mxu1 %v5604_v54  ;;  %1184 = vmatpush.bf16.msra.mxu2 %v5608_v59 }
  0x33   : > { %v821_v29 = vpack.c.b16 %v811_v28, %v811_v28 }
  0x34   : > { %1326 = vmatpush.bf16.msra.mxu3 %v5662_v47 }
  0x35   : > { %886 = vmatpush.bf16.msra.mxu0 %v7017_v6  ;;  %v7067_v6 = vld [vmem:[%s9896_s25 + $0x154] sm:$0xf0] }
  0x36   : > { %1131 = vmatpush.bf16.msra.mxu1 %v5596_v3 }
  0x38   : > { %1327 = vmatpush.bf16.msra.mxu3 %v5654_v60 }
  0x39   : > { %887 = vmatpush.bf16.msra.mxu0 %v7016_v7  ;;  %v5600_v7 = vor.u32 %v7038_v2, %v5597_v4 }
  0x3b   : > { %1185 = vmatpush.bf16.msra.mxu2 %v5600_v7 }
  0x3c   : > { %888 = vmatmul.bf16.vlgmr.msra.gmra.mxu0 %v7007_v8  ;;  %v5834_v8 = vor.u32 %v7067_v6, %v5833_v5 }
  0x3d   : > { %1828 = vmatpush.bf16.msrb.mxu0 %v5850_v50 }
  0x41   : > { %1829 = vmatpush.bf16.msrb.mxu0 %v5842_v63 }
  0x45   : > { %1830 = vmatpush.bf16.msrb.mxu0 %v5834_v8 }
  0x49   : > { %1831 = vmatpush.bf16.msrb.mxu0 %v5826_v17 }
  0x4c   : > { %893 = vmatmul.bf16.gmra.mxu0 %v7008_v9  ;;  %v5587_v9 = vld [vmem:[%s9896_s25 + $0x60] sm:$0xf] }
  0x5c   : > { %898 = vmatmul.bf16.gmra.mxu0 %v7009_v10  ;;  %v7037_v10 = vld [vmem:[%s9896_s25 + $0x64] sm:$0xf0] }
  0x6c   : > { %903 = vmatmul.bf16.gmra.mxu0 %v7010_v11  ;;  %v7036_v11 = vld [vmem:[%s9896_s25 + $0x64] sm:$0xf] }
  0x7c   : > { %908 = vmatmul.bf16.gmra.mxu0 %v7011_v12  ;;  %v5588_v12 = vor.u32 %v7037_v10, %v5587_v9 }
  0x7e   : > { %1132 = vmatpush.bf16.msra.mxu1 %v5588_v12 }
  0x8c   : > { %913 = vmatmul.bf16.gmra.mxu0 %v7012_v13  ;;  %v5589_v13 = vld [vmem:[%s9896_s25 + $0x68] sm:$0xf0] }
  0x8d   : > { %v5592_v16 = vor.u32 %v7036_v11, %v5589_v13 }
  0x8f   : > { %1186 = vmatpush.bf16.msra.mxu2 %v5592_v16 }
  0x9c   : > { %918 = vmatmul.bf16.gmra.mxu0 %v7013_v20  ;;  %v5818_v20 = vor.u32 %v7063_v19, %v5817_v18 }
  0x9e   : > { %1832 = vmatpush.bf16.msrb.mxu0 %v5818_v20 }
  0xa2   : > { %1833 = vmatpush.bf16.msrb.mxu0 %v5810_v23 }
  0xac   : > { %923 = vmatmul.bf16.gmra.mxu0 %v7014_v58 }
  0xb9   : > { %v889_v25 = vpop.f32.mrf.mxu0 }
  0xba   : > { %939 = vst.msk [vmem:[#allocation2] sm:$0xff] %vm938_vm0, %v889_v25 }
  0xbc   : > { %928 = vmatmul.bf16.gmra.mxu0 %v7015_v24 }
  0xc1   : > { %v891_v26 = vpop.f32.mrf.mxu0  ;;  %v959_v31 = vld [vmem:[#allocation2] sm:$0xff] }
  0xc2   : > { %940 = vst.msk [vmem:[#allocation2 + $0x8] sm:$0xff] %vm938_vm0, %v891_v26 }
  0xc9   : > { %v894_v30 = vpop.f32.mrf.mxu0  ;;  %v960_v32 = vld [vmem:[#allocation2 + $0x8] sm:$0xff] }
  0xca   : > { %941 = vst.msk [vmem:[#allocation2 + $0x10] sm:$0xff] %vm938_vm0, %v894_v30  ;;  %v7659_v33 = vpack.c.bf16 %v960_v32, %v959_v31  ;;  %v998_v35 = vld [vmem:[#allocation2 + $0x1] sm:$0xff]  ;;  %v5773_v30 = vld [vmem:[%s9896_s25 + $0x118] sm:$0xf0]  ;;  %v7056_v32 = vld [vmem:[%s9896_s25 + $0x104] sm:$0xf] }
  0xcb   : > { %v1699_v42 = vld [vmem:[#allocation2 + $0x3] sm:$0xff] }
  0xcc   : > { %933 = vmatmul.bf16.gmra.mxu0 %v821_v29  ;;  %5699 = vmatmul.msk.bf16.vlgmr.msra.gmra.mxu3 %vm938_vm0, %v7659_v33  ;;  %v7058_v29 = vld [vmem:[%s9896_s25 + $0x114] sm:$0xf] }
  0xcd   : > { %v5776_v31 = vor.u32 %v7058_v29, %v5773_v30 }
  0xcf   : > { %1611 = vmatpush.bf16.msrb.mxu3 %v5776_v31 }
  0xd1   : > { %v896_v34 = vpop.f32.mrf.mxu0  ;;  %v999_v36 = vld [vmem:[#allocation2 + $0x9] sm:$0xff] }
  0xd2   : > { %942 = vst.msk [vmem:[#allocation2 + $0x18] sm:$0xff] %vm938_vm0, %v896_v34  ;;  %v1016_v37 = vpack.c.bf16 %v999_v36, %v998_v35  ;;  %v1700_v38 = vld [vmem:[#allocation2 + $0xb] sm:$0xff]  ;;  %v5765_v34 = vld [vmem:[%s9896_s25 + $0x108] sm:$0xf0] }
  0xd3   : > { %v961_v40 = vld [vmem:[#allocation2 + $0x10] sm:$0xff]  ;;  %v7669_v44 = vpack.c.bf16 %v1700_v38, %v1699_v42  ;;  %v5768_v36 = vor.u32 %v7056_v32, %v5765_v34 }
  0xd4   : > { %5633 = vmatmul.msk.bf16.vlgmr.msra.gmra.mxu1 %vm938_vm0, %v1016_v37  ;;  %5642 = vmatmul.msk.bf16.vlgmr.msra.gmra.mxu2 %vm938_vm0, %v1016_v37 }
  0xd5   : > { %1612 = vmatpush.bf16.msrb.mxu3 %v5768_v36 }
  0xd9   : > { %v899_v39 = vpop.f32.mrf.mxu0  ;;  %v962_v41 = vld [vmem:[#allocation2 + $0x18] sm:$0xff] }
  0xda   : > { %943 = vst.msk [vmem:[#allocation2 + $0x20] sm:$0xff] %vm938_vm0, %v899_v39  ;;  %v7667_v43 = vpack.c.bf16 %v962_v41, %v961_v40  ;;  %v1000_v46 = vld [vmem:[#allocation2 + $0x11] sm:$0xff] }
  0xdb   : > { %v1701_v53 = vld [vmem:[#allocation2 + $0x13] sm:$0xff] }
  0xdc   : > { %5700 = vmatmul.msk.bf16.gmra.mxu3 %vm938_vm0, %v7667_v43  ;;  %5855 = vmatmul.msk.bf16.vlgmr.msrb.gmra.mxu0 %vm938_vm0, %v7669_v44 }
  0xe1   : > { %v901_v45 = vpop.f32.mrf.mxu0  ;;  %v1001_v47 = vld [vmem:[#allocation2 + $0x19] sm:$0xff] }
  0xe2   : > { %944 = vst.msk [vmem:[#allocation2 + $0x28] sm:$0xff] %vm938_vm0, %v901_v45  ;;  %v1017_v48 = vpack.c.bf16 %v1001_v47, %v1000_v46  ;;  %v1702_v49 = vld [vmem:[#allocation2 + $0x1b] sm:$0xff]  ;;  %v7034_v45 = vld [vmem:[%s9896_s25 + $0x54] sm:$0xf]  ;;  %v5695_v46 = vld [vmem:[%s9896_s25 + $0x58] sm:$0xf0] }
  0xe3   : > { %v963_v51 = vld [vmem:[#allocation2 + $0x20] sm:$0xff]  ;;  %v7681_v55 = vpack.c.bf16 %v1702_v49, %v1701_v53  ;;  %v5698_v47 = vor.u32 %v7034_v45, %v5695_v46  ;;  %v7059_v49 = vld [vmem:[%s9896_s25 + $0x114] sm:$0xf0] }
  0xe4   : > { %5634 = vmatmul.msk.bf16.gmra.mxu1 %vm938_vm0, %v1017_v48  ;;  %5643 = vmatmul.msk.bf16.gmra.mxu2 %vm938_vm0, %v1017_v48  ;;  %v5771_v48 = vld [vmem:[%s9896_s25 + $0x110] sm:$0xf]  ;;  %v7051_v45 = vld [vmem:[%s9896_s25 + $0xd4] sm:$0xf0] }
  0xe5   : > { %1376 = vmatpush.bf16.msrb.mxu1 %v5698_v47  ;;  %v7024_v47 = vld [vmem:[%s9896_s25 + $0x4] sm:$0xf] }
  0xe9   : > { %v904_v50 = vpop.f32.mrf.mxu0  ;;  %v964_v52 = vld [vmem:[#allocation2 + $0x28] sm:$0xff] }
  0xea   : > { %945 = vst.msk [vmem:[#allocation2 + $0x30] sm:$0xff] %vm938_vm0, %v904_v50  ;;  %v7679_v54 = vpack.c.bf16 %v964_v52, %v963_v51  ;;  %v1002_v57 = vld [vmem:[#allocation2 + $0x21] sm:$0xff]  ;;  %v7054_v50 = vld [vmem:[%s9896_s25 + $0xf4] sm:$0xf]  ;;  %v5772_v51 = vor.u32 %v7059_v49, %v5771_v48  ;;  %v5757_v52 = vld [vmem:[%s9896_s25 + $0xf8] sm:$0xf0] }
  0xeb   : > { %v1703_v0 = vld [vmem:[#allocation2 + $0x23] sm:$0xff]  ;;  %v5760_v53 = vor.u32 %v7054_v50, %v5757_v52  ;;  %v5731_v49 = vld [vmem:[%s9896_s25 + $0xc0] sm:$0xf] }
  0xec   : > { %5701 = vmatmul.msk.bf16.gmra.mxu3 %vm938_vm0, %v7679_v54  ;;  %5856 = vmatmul.msk.bf16.gmra.mxu0 %vm938_vm0, %v7681_v55  ;;  %v5655_v48 = vld [vmem:[%s9896_s25 + $0x8] sm:$0xf0] }
  0xed   : > { %1557 = vmatpush.bf16.msrb.mxu2 %v5772_v51  ;;  %1613 = vmatpush.bf16.msrb.mxu3 %v5760_v53  ;;  %v5658_v50 = vor.u32 %v7024_v47, %v5655_v48  ;;  %v7049_v51 = vld [vmem:[%s9896_s25 + $0xc4] sm:$0xf0] }
  0xf1   : > { %v906_v56 = vpop.f32.mrf.mxu0  ;;  %v1003_v58 = vld [vmem:[#allocation2 + $0x29] sm:$0xff] }
  0xf2   : > { %946 = vst.msk [vmem:[#allocation2 + $0x38] sm:$0xff] %vm938_vm0, %v906_v56  ;;  %v1018_v59 = vpack.c.bf16 %v1003_v58, %v1002_v57  ;;  %v1704_v60 = vld [vmem:[#allocation2 + $0x2b] sm:$0xff]  ;;  %v7032_v56 = vld [vmem:[%s9896_s25 + $0x44] sm:$0xf]  ;;  %v5687_v57 = vld [vmem:[%s9896_s25 + $0x48] sm:$0xf0] }
  0xf3   : > { %v965_v62 = vld [vmem:[#allocation2 + $0x30] sm:$0xff]  ;;  %v7693_v2 = vpack.c.bf16 %v1704_v60, %v1703_v0  ;;  %v5763_v58 = vld [vmem:[%s9896_s25 + $0x100] sm:$0xf]  ;;  %v7057_v60 = vld [vmem:[%s9896_s25 + $0x104] sm:$0xf0] }
  0xf4   : > { %5635 = vmatmul.msk.bf16.gmra.mxu1 %vm938_vm0, %v1018_v59  ;;  %5644 = vmatmul.msk.bf16.gmra.mxu2 %vm938_vm0, %v1018_v59  ;;  %v5690_v59 = vor.u32 %v7032_v56, %v5687_v57  ;;  %v5732_v57 = vor.u32 %v7049_v51, %v5731_v49  ;;  %v1433_v48 = vld [vmem:[#allocation2 + $0x2a] sm:$0xff] }
  0xf6   : > { %1377 = vmatpush.bf16.msrb.mxu1 %v5690_v59 }
  0xf9   : > { %v909_v61 = vpop.f32.mrf.mxu0  ;;  %v966_v63 = vld [vmem:[#allocation2 + $0x38] sm:$0xff] }
  0xfa   : > { %947 = vst.msk [vmem:[#allocation2 + $0x40] sm:$0xff] %vm938_vm0, %v909_v61  ;;  %v7691_v1 = vpack.c.bf16 %v966_v63, %v965_v62  ;;  %v1004_v4 = vld [vmem:[#allocation2 + $0x31] sm:$0xff]  ;;  %v7052_v61 = vld [vmem:[%s9896_s25 + $0xe4] sm:$0xf]  ;;  %v5749_v62 = vld [vmem:[%s9896_s25 + $0xe8] sm:$0xf0]  ;;  %v5764_v63 = vor.u32 %v7057_v60, %v5763_v58 }
  0xfb   : > { %v1705_v11 = vld [vmem:[#allocation2 + $0x33] sm:$0xff]  ;;  %v5752_v0 = vor.u32 %v7052_v61, %v5749_v62 }
  0xfc   : > { %5702 = vmatmul.msk.bf16.gmra.mxu3 %vm938_vm0, %v7691_v1  ;;  %5857 = vmatmul.msk.bf16.gmra.mxu0 %vm938_vm0, %v7693_v2 }
  0xfd   : > { %1558 = vmatpush.bf16.msrb.mxu2 %v5764_v63  ;;  %1614 = vmatpush.bf16.msrb.mxu3 %v5752_v0 }
 0x101   : > { %v911_v3 = vpop.f32.mrf.mxu0  ;;  %v1005_v5 = vld [vmem:[#allocation2 + $0x39] sm:$0xff] }
 0x102   : > { %948 = vst.msk [vmem:[#allocation2 + $0x48] sm:$0xff] %vm938_vm0, %v911_v3  ;;  %v1019_v6 = vpack.c.bf16 %v1005_v5, %v1004_v4  ;;  %v1706_v7 = vld [vmem:[#allocation2 + $0x3b] sm:$0xff] }
 0x103   : > { %v967_v9 = vld [vmem:[#allocation2 + $0x40] sm:$0xff]  ;;  %v7705_v13 = vpack.c.bf16 %v1706_v7, %v1705_v11  ;;  %v7030_v7 = vld [vmem:[%s9896_s25 + $0x34] sm:$0xf]  ;;  %v7055_v11 = vld [vmem:[%s9896_s25 + $0xf4] sm:$0xf0] }
 0x104   : > { %5636 = vmatmul.msk.bf16.gmra.mxu1 %vm938_vm0, %v1019_v6  ;;  %5645 = vmatmul.msk.bf16.gmra.mxu2 %vm938_vm0, %v1019_v6 }
 0x109   : > { %v914_v8 = vpop.f32.mrf.mxu0  ;;  %v968_v10 = vld [vmem:[#allocation2 + $0x48] sm:$0xff] }
 0x10a   : > { %949 = vst.msk [vmem:[#allocation2 + $0x50] sm:$0xff] %vm938_vm0, %v914_v8  ;;  %v7703_v12 = vpack.c.bf16 %v968_v10, %v967_v9  ;;  %v1006_v15 = vld [vmem:[#allocation2 + $0x41] sm:$0xff]  ;;  %v5679_v8 = vld [vmem:[%s9896_s25 + $0x38] sm:$0xf0] }
 0x10b   : > { %v1707_v22 = vld [vmem:[#allocation2 + $0x43] sm:$0xff]  ;;  %v5682_v9 = vor.u32 %v7030_v7, %v5679_v8 }
 0x10c   : > { %5703 = vmatmul.msk.bf16.gmra.mxu3 %vm938_vm0, %v7703_v12  ;;  %5858 = vmatmul.msk.bf16.gmra.mxu0 %vm938_vm0, %v7705_v13  ;;  %v5755_v10 = vld [vmem:[%s9896_s25 + $0xf0] sm:$0xf] }
 0x10d   : > { %1378 = vmatpush.bf16.msrb.mxu1 %v5682_v9 }
 0x111   : > { %v916_v14 = vpop.f32.mrf.mxu0  ;;  %v1007_v16 = vld [vmem:[#allocation2 + $0x49] sm:$0xff] }
 0x112   : > { %950 = vst.msk [vmem:[#allocation2 + $0x58] sm:$0xff] %vm938_vm0, %v916_v14  ;;  %v1020_v17 = vpack.c.bf16 %v1007_v16, %v1006_v15  ;;  %v1708_v18 = vld [vmem:[#allocation2 + $0x4b] sm:$0xff]  ;;  %v5756_v15 = vor.u32 %v7055_v11, %v5755_v10  ;;  %v5741_v16 = vld [vmem:[%s9896_s25 + $0xd8] sm:$0xf0] }
 0x113   : > { %v969_v20 = vld [vmem:[#allocation2 + $0x50] sm:$0xff]  ;;  %v7717_v24 = vpack.c.bf16 %v1708_v18, %v1707_v22  ;;  %v7050_v14 = vld [vmem:[%s9896_s25 + $0xd4] sm:$0xf] }
 0x114   : > { %5637 = vmatmul.msk.bf16.gmra.mxu1 %vm938_vm0, %v1020_v17  ;;  %5646 = vmatmul.msk.bf16.gmra.mxu2 %vm938_vm0, %v1020_v17  ;;  %v5744_v18 = vor.u32 %v7050_v14, %v5741_v16 }
 0x115   : > { %1559 = vmatpush.bf16.msrb.mxu2 %v5756_v15  ;;  %v1429_v15 = vld [vmem:[#allocation2 + $0xa] sm:$0xff] }
 0x116   : > { %1615 = vmatpush.bf16.msrb.mxu3 %v5744_v18  ;;  %v1428_v18 = vld [vmem:[#allocation2 + $0x2] sm:$0xff] }
 0x119   : > { %v919_v19 = vpop.f32.mrf.mxu0  ;;  %v970_v21 = vld [vmem:[#allocation2 + $0x58] sm:$0xff] }
 0x11a   : > { %951 = vst.msk [vmem:[#allocation2 + $0x60] sm:$0xff] %vm938_vm0, %v919_v19  ;;  %v7715_v23 = vpack.c.bf16 %v970_v21, %v969_v20  ;;  %v1008_v26 = vld [vmem:[#allocation2 + $0x51] sm:$0xff]  ;;  %v7028_v19 = vld [vmem:[%s9896_s25 + $0x24] sm:$0xf]  ;;  %v5671_v20 = vld [vmem:[%s9896_s25 + $0x28] sm:$0xf0] }
 0x11b   : > { %v1709_v40 = vld [vmem:[#allocation2 + $0x53] sm:$0xff]  ;;  %v5674_v22 = vor.u32 %v7028_v19, %v5671_v20 }
 0x11c   : > { %5704 = vmatmul.msk.bf16.gmra.mxu3 %vm938_vm0, %v7715_v23  ;;  %5859 = vmatmul.msk.bf16.gmra.mxu0 %vm938_vm0, %v7717_v24  ;;  %v5747_v21 = vld [vmem:[%s9896_s25 + $0xe0] sm:$0xf] }
 0x11d   : > { %1379 = vmatpush.bf16.msrb.mxu1 %v5674_v22 }
 0x121   : > { %v921_v25 = vpop.f32.mrf.mxu0  ;;  %v1009_v27 = vld [vmem:[#allocation2 + $0x59] sm:$0xff] }
 0x122   : > { %952 = vst.msk [vmem:[#allocation2 + $0x68] sm:$0xff] %vm938_vm0, %v921_v25  ;;  %v1021_v28 = vpack.c.bf16 %v1009_v27, %v1008_v26  ;;  %v1710_v35 = vld [vmem:[#allocation2 + $0x5b] sm:$0xff]  ;;  %v5733_v27 = vld [vmem:[%s9896_s25 + $0xc8] sm:$0xf0] }
 0x123   : > { %v971_v38 = vld [vmem:[#allocation2 + $0x60] sm:$0xff]  ;;  %v7741_v42 = vpack.c.bf16 %v1710_v35, %v1709_v40  ;;  %v7048_v26 = vld [vmem:[%s9896_s25 + $0xc4] sm:$0xf] }
 0x124   : > { %5638 = vmatmul.msk.bf16.gmra.mxu1 %vm938_vm0, %v1021_v28  ;;  %5647 = vmatmul.msk.bf16.gmra.mxu2 %vm938_vm0, %v1021_v28  ;;  %v7053_v25 = vld [vmem:[%s9896_s25 + $0xe4] sm:$0xf0]  ;;  %v5736_v29 = vor.u32 %v7048_v26, %v5733_v27 }
 0x125   : > { %v5748_v28 = vor.u32 %v7053_v25, %v5747_v21  ;;  %v1446_v21 = vpack.c.bf16 %v1429_v15, %v1428_v18 }
 0x126   : > { %1616 = vmatpush.bf16.msrb.mxu3 %v5736_v29 }
 0x127   : > { %1560 = vmatpush.bf16.msrb.mxu2 %v5748_v28 }
 0x129   : > { %v924_v37 = vpop.f32.mrf.mxu0  ;;  %v972_v39 = vld [vmem:[#allocation2 + $0x68] sm:$0xff] }
 0x12a   : > { %953 = vst.msk [vmem:[#allocation2 + $0x70] sm:$0xff] %vm938_vm0, %v924_v37  ;;  %v7739_v41 = vpack.c.bf16 %v972_v39, %v971_v38  ;;  %v1010_v4 = vld [vmem:[#allocation2 + $0x61] sm:$0xff]  ;;  %v7026_v37 = vld [vmem:[%s9896_s25 + $0x14] sm:$0xf]  ;;  %v5663_v38 = vld [vmem:[%s9896_s25 + $0x18] sm:$0xf0] }
 0x12b   : > { %v1711_v34 = vld [vmem:[#allocation2 + $0x63] sm:$0xff]  ;;  %v5666_v40 = vor.u32 %v7026_v37, %v5663_v38 }
 0x12c   : > { %5705 = vmatmul.msk.bf16.gmra.mxu3 %vm938_vm0, %v7739_v41  ;;  %5860 = vmatmul.msk.bf16.gmra.mxu0 %vm938_vm0, %v7741_v42  ;;  %v5739_v39 = vld [vmem:[%s9896_s25 + $0xd0] sm:$0xf] }
 0x12d   : > { %v5740_v46 = vor.u32 %v7051_v45, %v5739_v39  ;;  %1380 = vmatpush.bf16.msrb.mxu1 %v5666_v40 }
 0x12f   : > { %1561 = vmatpush.bf16.msrb.mxu2 %v5740_v46 }
 0x131   : > { %v926_v3 = vpop.f32.mrf.mxu0  ;;  %v1011_v5 = vld [vmem:[#allocation2 + $0x69] sm:$0xff]  ;;  %1381 = vmatpush.bf16.msrb.mxu1 %v5658_v50 }
 0x132   : > { %954 = vst.msk [vmem:[#allocation2 + $0x78] sm:$0xff] %vm938_vm0, %v926_v3  ;;  %v1022_v6 = vpack.c.bf16 %v1011_v5, %v1010_v4  ;;  %v1712_v17 = vld [vmem:[#allocation2 + $0x6b] sm:$0xff]  ;;  %v1432_v50 = vld [vmem:[#allocation2 + $0x22] sm:$0xff] }
 0x133   : > { %v973_v31 = vld [vmem:[#allocation2 + $0x70] sm:$0xff]  ;;  %v7825_v36 = vpack.c.bf16 %v1712_v17, %v1711_v34  ;;  %1562 = vmatpush.bf16.msrb.mxu2 %v5732_v57 }
 0x134   : > { %5639 = vmatmul.msk.bf16.gmra.mxu1 %vm938_vm0, %v1022_v6  ;;  %5648 = vmatmul.msk.bf16.gmra.mxu2 %vm938_vm0, %v1022_v6  ;;  %v1430_v34 = vld [vmem:[#allocation2 + $0x12] sm:$0xff] }
 0x139   : > { %v929_v30 = vpop.f32.mrf.mxu0  ;;  %v974_v32 = vld [vmem:[#allocation2 + $0x78] sm:$0xff] }
 0x13a   : > { %955 = vst.msk [vmem:[#allocation2 + $0x80] sm:$0xff] %vm938_vm0, %v929_v30  ;;  %v7823_v35 = vpack.c.bf16 %v974_v32, %v973_v31  ;;  %v1012_v53 = vld [vmem:[#allocation2 + $0x71] sm:$0xff]  ;;  %v1431_v31 = vld [vmem:[#allocation2 + $0x1a] sm:$0xff] }
 0x13b   : > { %v1713_v63 = vld [vmem:[#allocation2 + $0x73] sm:$0xff]  ;;  %v1447_v38 = vpack.c.bf16 %v1431_v31, %v1430_v34 }
 0x13c   : > { %5706 = vmatmul.msk.bf16.gmra.mxu3 %vm938_vm0, %v7823_v35  ;;  %5861 = vmatmul.msk.bf16.gmra.mxu0 %vm938_vm0, %v7825_v36  ;;  %v1439_v31 = vld [vmem:[#allocation2 + $0x5a] sm:$0xff]  ;;  %v1438_v34 = vld [vmem:[#allocation2 + $0x52] sm:$0xff] }
 0x141   : > { %v931_v52 = vpop.f32.mrf.mxu0  ;;  %v1013_v56 = vld [vmem:[#allocation2 + $0x79] sm:$0xff] }
 0x142   : > { %956 = vst.msk [vmem:[#allocation2 + $0x88] sm:$0xff] %vm938_vm0, %v931_v52  ;;  %v1023_v58 = vpack.c.bf16 %v1013_v56, %v1012_v53  ;;  %v1714_v59 = vld [vmem:[#allocation2 + $0x7b] sm:$0xff]  ;;  %v1448_v52 = vpack.c.bf16 %v1433_v48, %v1432_v50  ;;  %v5929_v50 = vld [vmem:[%s9896_s25 + $0x1d8] sm:$0xf0] }
 0x143   : > { %v975_v61 = vld [vmem:[#allocation2 + $0x80] sm:$0xff]  ;;  %v7860_v3 = vpack.c.bf16 %v1714_v59, %v1713_v63 }
 0x144   : > { %5640 = vmatmul.msk.bf16.gmra.mxu1 %vm938_vm0, %v1023_v58  ;;  %5649 = vmatmul.msk.bf16.gmra.mxu2 %vm938_vm0, %v1023_v58 }
 0x149   : > { %v934_v60 = vpop.f32.mrf.mxu0  ;;  %v976_v62 = vld [vmem:[#allocation2 + $0x88] sm:$0xff] }
 0x14a   : > { %958 = vst.msk [vmem:[#allocation2 + $0x90] sm:$0xf] %vm957_vm1, %v934_v60  ;;  %v7858_v0 = vpack.c.bf16 %v976_v62, %v975_v61  ;;  %v1014_v7 = vld [vmem:[#allocation2 + $0x81] sm:$0xff]  ;;  %v1434_v62 = vld [vmem:[#allocation2 + $0x32] sm:$0xff] }
 0x14b   : > { %v1715_v19 = vld [vmem:[#allocation2 + $0x83] sm:$0xff]  ;;  %v1435_v60 = vld [vmem:[#allocation2 + $0x3a] sm:$0xff] }
 0x14c   : > { %5707 = vmatmul.msk.bf16.gmra.mxu3 %vm938_vm0, %v7858_v0  ;;  %5862 = vmatmul.msk.bf16.gmra.mxu0 %vm938_vm0, %v7860_v3 }
 0x14f   : > { %v1329_v4 = vpop.f32.mrf.mxu3 }
 0x151   : > { %v936_v5 = vpop.f32.mrf.mxu0  ;;  %v1134_v6 = vpop.f32.mrf.mxu1  ;;  %v1015_v8 = vld [vmem:[#allocation2 + $0x89] sm:$0xff] }
 0x152   : > { %v7866_v9 = vadd.f32 %v1329_v4, %v1134_v6  ;;  %v1024_v10 = vpack.c.bf16 %v1015_v8, %v1014_v7  ;;  %v1716_v16 = vld [vmem:[#allocation2 + $0x8b] sm:$0xff]  ;;  %v1449_v4 = vpack.c.bf16 %v1435_v60, %v1434_v62  ;;  %v7080_v60 = vld [vmem:[%s9896_s25 + $0x1c4] sm:$0xf] }
 0x153   : > { %v7874_v22 = vpack.c.bf16 %v1716_v16, %v1715_v19  ;;  %v1436_v16 = vld [vmem:[#allocation2 + $0x42] sm:$0xff] }
 0x154   : > { %5641 = vmatmul.msk.bf16.gmra.mxu1 %vm938_vm0, %v1024_v10  ;;  %5650 = vmatmul.msk.bf16.gmra.mxu2 %vm938_vm0, %v1024_v10 }
 0x157   : > { %v7870_v11 = vpop.f32.mrf.mxu2  ;;  %v1331_v14 = vpop.f32.mrf.mxu3 }
 0x159   : > { %v1136_v17 = vpop.f32.mrf.mxu1 }
 0x15a   : > { %v7872_v20 = vadd.f32 %v1331_v14, %v1136_v17  ;;  %v1437_v14 = vld [vmem:[#allocation2 + $0x4a] sm:$0xff] }
 0x15b   : > { %v1450_v18 = vpack.c.bf16 %v1437_v14, %v1436_v16  ;;  %v5851_v14 = vld [vmem:[%s9896_s25 + $0x178] sm:$0xf0] }
 0x15c   : > { %5786 = vmatmul.msk.bf16.vlgmr.msrb.gmra.mxu3 %vm938_vm0, %v1446_v21  ;;  %5863 = vmatmul.msk.bf16.gmra.mxu0 %vm938_vm0, %v7874_v22 }
 0x15f   : > { %v7879_v25 = vpop.f32.mrf.mxu2  ;;  %v1334_v26 = vpop.f32.mrf.mxu3 }
 0x161   : > { %v1139_v27 = vpop.f32.mrf.mxu1 }
 0x162   : > { %v7881_v28 = vadd.f32 %v1334_v26, %v1139_v27 }
 0x164   : > { %5708 = vmatmul.msk.bf16.vlgmr.msrb.gmra.mxu1 %vm938_vm0, %v7659_v33  ;;  %5777 = vmatmul.msk.bf16.vlgmr.msrb.gmra.mxu2 %vm938_vm0, %v1446_v21 }
 0x167   : > { %v7886_v29 = vpop.f32.mrf.mxu2  ;;  %v1336_v30 = vpop.f32.mrf.mxu3 }
 0x169   : > { %v1141_v32 = vpop.f32.mrf.mxu1 }
 0x16a   : > { %v7888_v37 = vadd.f32 %v1336_v30, %v1141_v32 }
 0x16c   : > { %5787 = vmatmul.msk.bf16.gmra.mxu3 %vm938_vm0, %v1447_v38 }
 0x16f   : > { %v7891_v39 = vpop.f32.mrf.mxu2  ;;  %v1339_v40 = vpop.f32.mrf.mxu3 }
 0x171   : > { %v1144_v45 = vpop.f32.mrf.mxu1 }
 0x172   : > { %v7893_v46 = vadd.f32 %v1339_v40, %v1144_v45  ;;  %v1451_v40 = vpack.c.bf16 %v1439_v31, %v1438_v34 }
 0x174   : > { %5709 = vmatmul.msk.bf16.gmra.mxu1 %vm938_vm0, %v7667_v43  ;;  %5778 = vmatmul.msk.bf16.gmra.mxu2 %vm938_vm0, %v1447_v38 }
 0x177   : > { %v7898_v33 = vpop.f32.mrf.mxu2  ;;  %v1341_v47 = vpop.f32.mrf.mxu3 }
 0x179   : > { %v1146_v49 = vpop.f32.mrf.mxu1 }
 0x17a   : > { %v7900_v51 = vadd.f32 %v1341_v47, %v1146_v49 }
 0x17c   : > { %5788 = vmatmul.msk.bf16.gmra.mxu3 %vm938_vm0, %v1448_v52 }
 0x17f   : > { %v7903_v53 = vpop.f32.mrf.mxu2  ;;  %v1344_v56 = vpop.f32.mrf.mxu3 }
 0x181   : > { %v1149_v57 = vpop.f32.mrf.mxu1 }
 0x182   : > { %v7905_v58 = vadd.f32 %v1344_v56, %v1149_v57 }
 0x184   : > { %5710 = vmatmul.msk.bf16.gmra.mxu1 %vm938_vm0, %v7679_v54  ;;  %5779 = vmatmul.msk.bf16.gmra.mxu2 %vm938_vm0, %v1448_v52 }
 0x187   : > { %v7910_v43 = vpop.f32.mrf.mxu2  ;;  %v1346_v59 = vpop.f32.mrf.mxu3 }
 0x189   : > { %v1151_v61 = vpop.f32.mrf.mxu1 }
 0x18a   : > { %v7912_v63 = vadd.f32 %v1346_v59, %v1151_v61  ;;  %v1441_v59 = vld [vmem:[#allocation2 + $0x6a] sm:$0xff]  ;;  %v5921_v61 = vld [vmem:[%s9896_s25 + $0x1c8] sm:$0xf0] }
 0x18b   : > { %v5924_v62 = vor.u32 %v7080_v60, %v5921_v61 }
 0x18c   : > { %5789 = vmatmul.msk.bf16.gmra.mxu3 %vm938_vm0, %v1449_v4 }
 0x18f   : > { %v7915_v5 = vpop.f32.mrf.mxu2  ;;  %v1349_v6 = vpop.f32.mrf.mxu3 }
 0x191   : > { %v1154_v7 = vpop.f32.mrf.mxu1 }
 0x192   : > { %v7917_v8 = vadd.f32 %v1349_v6, %v1154_v7  ;;  %v1440_v6 = vld [vmem:[#allocation2 + $0x62] sm:$0xff] }
 0x193   : > { %v1452_v7 = vpack.c.bf16 %v1441_v59, %v1440_v6  ;;  %v5835_v6 = vld [vmem:[%s9896_s25 + $0x158] sm:$0xf0] }
 0x194   : > { %5711 = vmatmul.msk.bf16.gmra.mxu1 %vm938_vm0, %v7691_v1  ;;  %5780 = vmatmul.msk.bf16.gmra.mxu2 %vm938_vm0, %v1449_v4 }
 0x197   : > { %v7922_v54 = vpop.f32.mrf.mxu2  ;;  %v1351_v10 = vpop.f32.mrf.mxu3 }
 0x199   : > { %v1156_v15 = vpop.f32.mrf.mxu1 }
 0x19a   : > { %v7924_v17 = vadd.f32 %v1351_v10, %v1156_v15  ;;  %v7070_v10 = vld [vmem:[%s9896_s25 + $0x174] sm:$0xf]  ;;  %v5927_v15 = vld [vmem:[%s9896_s25 + $0x1d0] sm:$0xf] }
 0x19b   : > { %v5854_v16 = vor.u32 %v7070_v10, %v5851_v14  ;;  %v5911_v10 = vld [vmem:[%s9896_s25 + $0x1b0] sm:$0xf] }
 0x19c   : > { %5790 = vmatmul.msk.bf16.gmra.mxu3 %vm938_vm0, %v1450_v18 }
 0x19d   : > { %1882 = vmatpush.bf16.msra.mxu1 %v5854_v16  ;;  %v7074_v16 = vld [vmem:[%s9896_s25 + $0x194] sm:$0xf] }
 0x19f   : > { %v7927_v19 = vpop.f32.mrf.mxu2  ;;  %v1354_v21 = vpop.f32.mrf.mxu3 }
 0x1a1   : > { %v1159_v26 = vpop.f32.mrf.mxu1 }
 0x1a2   : > { %v7929_v27 = vadd.f32 %v1354_v21, %v1159_v26  ;;  %v7078_v21 = vld [vmem:[%s9896_s25 + $0x1b4] sm:$0xf]  ;;  %v5913_v26 = vld [vmem:[%s9896_s25 + $0x1b8] sm:$0xf0] }
 0x1a3   : > { %v5916_v31 = vor.u32 %v7078_v21, %v5913_v26 }
 0x1a4   : > { %5712 = vmatmul.msk.bf16.gmra.mxu1 %vm938_vm0, %v7703_v12  ;;  %5781 = vmatmul.msk.bf16.gmra.mxu2 %vm938_vm0, %v1450_v18  ;;  %v7082_v12 = vld [vmem:[%s9896_s25 + $0x1d4] sm:$0xf]  ;;  %v7083_v18 = vld [vmem:[%s9896_s25 + $0x1d4] sm:$0xf0] }
 0x1a5   : > { %v5932_v52 = vor.u32 %v7082_v12, %v5929_v50  ;;  %v7081_v50 = vld [vmem:[%s9896_s25 + $0x1c4] sm:$0xf0] }
 0x1a7   : > { %v7934_v1 = vpop.f32.mrf.mxu2  ;;  %v1356_v30 = vpop.f32.mrf.mxu3  ;;  %2153 = vmatpush.bf16.msra.mxu3 %v5932_v52  ;;  %v7076_v52 = vld [vmem:[%s9896_s25 + $0x1a4] sm:$0xf] }
 0x1a9   : > { %v1161_v32 = vpop.f32.mrf.mxu1 }
 0x1aa   : > { %v7936_v38 = vadd.f32 %v1356_v30, %v1161_v32  ;;  %v5928_v30 = vor.u32 %v7083_v18, %v5927_v15  ;;  %v7079_v15 = vld [vmem:[%s9896_s25 + $0x1b4] sm:$0xf0]  ;;  %v5897_v18 = vld [vmem:[%s9896_s25 + $0x198] sm:$0xf0] }
 0x1ab   : > { %2154 = vmatpush.bf16.msra.mxu3 %v5924_v62  ;;  %v5912_v21 = vor.u32 %v7079_v15, %v5911_v10  ;;  %v5900_v26 = vor.u32 %v7074_v16, %v5897_v18  ;;  %v5819_v10 = vld [vmem:[%s9896_s25 + $0x138] sm:$0xf0]  ;;  %v7075_v16 = vld [vmem:[%s9896_s25 + $0x194] sm:$0xf0] }
 0x1ac   : > { %5791 = vmatmul.msk.bf16.gmra.mxu3 %vm938_vm0, %v1451_v40  ;;  %2099 = vmatpush.bf16.msra.mxu2 %v5928_v30  ;;  %v1443_v30 = vld [vmem:[#allocation2 + $0x7a] sm:$0xff] }
 0x1af   : > { %v7939_v45 = vpop.f32.mrf.mxu2  ;;  %v1359_v47 = vpop.f32.mrf.mxu3  ;;  %2155 = vmatpush.bf16.msra.mxu3 %v5916_v31  ;;  %v7064_v31 = vld [vmem:[%s9896_s25 + $0x144] sm:$0xf] }
 0x1b1   : > { %v1164_v48 = vpop.f32.mrf.mxu1 }
 0x1b2   : > { %v7941_v49 = vadd.f32 %v1359_v47, %v1164_v48  ;;  %v5843_v47 = vld [vmem:[%s9896_s25 + $0x168] sm:$0xf0]  ;;  %v5919_v48 = vld [vmem:[%s9896_s25 + $0x1c0] sm:$0xf] }
 0x1b3   : > { %v5920_v60 = vor.u32 %v7081_v50, %v5919_v48  ;;  %v7077_v48 = vld [vmem:[%s9896_s25 + $0x1a4] sm:$0xf0]  ;;  %v5889_v50 = vld [vmem:[%s9896_s25 + $0x188] sm:$0xf0] }
 0x1b4   : > { %5713 = vmatmul.msk.bf16.gmra.mxu1 %vm938_vm0, %v7715_v23  ;;  %5782 = vmatmul.msk.bf16.gmra.mxu2 %vm938_vm0, %v1451_v40  ;;  %v7068_v40 = vld [vmem:[%s9896_s25 + $0x164] sm:$0xf] }
 0x1b5   : > { %v5846_v12 = vor.u32 %v7068_v40, %v5843_v47  ;;  %2100 = vmatpush.bf16.msra.mxu2 %v5920_v60  ;;  %v5903_v40 = vld [vmem:[%s9896_s25 + $0x1a0] sm:$0xf] }
 0x1b7   : > { %v7952_v56 = vpop.f32.mrf.mxu2  ;;  %v1361_v57 = vpop.f32.mrf.mxu3  ;;  %1883 = vmatpush.bf16.msra.mxu1 %v5846_v12  ;;  %v7072_v12 = vld [vmem:[%s9896_s25 + $0x184] sm:$0xf] }
 0x1b8   : > { %v5892_v60 = vor.u32 %v7072_v12, %v5889_v50 }
 0x1b9   : > { %v1166_v4 = vpop.f32.mrf.mxu1  ;;  %2101 = vmatpush.bf16.msra.mxu2 %v5912_v21 }
 0x1ba   : > { %v7960_v23 = vadd.f32 %v1361_v57, %v1166_v4  ;;  %v5905_v57 = vld [vmem:[%s9896_s25 + $0x1a8] sm:$0xf0]  ;;  %v7066_v4 = vld [vmem:[%s9896_s25 + $0x154] sm:$0xf] }
 0x1bb   : > { %v5908_v61 = vor.u32 %v7076_v52, %v5905_v57  ;;  %v5838_v14 = vor.u32 %v7066_v4, %v5835_v6  ;;  %v1442_v57 = vld [vmem:[#allocation2 + $0x72] sm:$0xff]  ;;  %v7062_v6 = vld [vmem:[%s9896_s25 + $0x134] sm:$0xf] }
 0x1bc   : > { %5792 = vmatmul.msk.bf16.gmra.mxu3 %vm938_vm0, %v1452_v7  ;;  %v1453_v4 = vpack.c.bf16 %v1443_v30, %v1442_v57  ;;  %v5822_v15 = vor.u32 %v7062_v6, %v5819_v10  ;;  %v7060_v30 = vld [vmem:[%s9896_s25 + $0x124] sm:$0xf]  ;;  %v1445_v57 = vld [vmem:[#allocation2 + $0x8a] sm:$0xff] }
 0x1bd   : > { %2156 = vmatpush.bf16.msra.mxu3 %v5908_v61  ;;  %1884 = vmatpush.bf16.msra.mxu1 %v5838_v14  ;;  %v5895_v14 = vld [vmem:[%s9896_s25 + $0x190] sm:$0xf] }
 0x1be   : > { %v5896_v18 = vor.u32 %v7075_v16, %v5895_v14 }
 0x1bf   : > { %v7981_v32 = vpop.f32.mrf.mxu2  ;;  %v1364_v34 = vpop.f32.mrf.mxu3 }
 0x1c1   : > { %v1169_v59 = vpop.f32.mrf.mxu1  ;;  %2157 = vmatpush.bf16.msra.mxu3 %v5900_v26 }
 0x1c2   : > { %v8001_v62 = vadd.f32 %v1364_v34, %v1169_v59  ;;  %v5827_v34 = vld [vmem:[%s9896_s25 + $0x148] sm:$0xf0]  ;;  %v5904_v59 = vor.u32 %v7077_v48, %v5903_v40  ;;  %v7073_v40 = vld [vmem:[%s9896_s25 + $0x184] sm:$0xf0] }
 0x1c3   : > { %v5830_v47 = vor.u32 %v7064_v31, %v5827_v34  ;;  %v5887_v31 = vld [vmem:[%s9896_s25 + $0x180] sm:$0xf] }
 0x1c4   : > { %5714 = vmatmul.msk.bf16.gmra.mxu1 %vm938_vm0, %v7739_v41  ;;  %5783 = vmatmul.msk.bf16.gmra.mxu2 %vm938_vm0, %v1452_v7  ;;  %v5888_v48 = vor.u32 %v7073_v40, %v5887_v31 }
 0x1c5   : > { %1885 = vmatpush.bf16.msra.mxu1 %v5830_v47  ;;  %2102 = vmatpush.bf16.msra.mxu2 %v5904_v59 }
 0x1c6   : > { %2158 = vmatpush.bf16.msra.mxu3 %v5892_v60  ;;  %v1444_v60 = vld [vmem:[#allocation2 + $0x82] sm:$0xff] }
 0x1c7   : > { %v8024_v41 = vpop.f32.mrf.mxu2  ;;  %v1366_v7 = vpop.f32.mrf.mxu3  ;;  %v1454_v10 = vpack.c.bf16 %v1445_v57, %v1444_v60 }
 0x1c9   : > { %v1171_v52 = vpop.f32.mrf.mxu1  ;;  %1886 = vmatpush.bf16.msra.mxu1 %v5822_v15  ;;  %2103 = vmatpush.bf16.msra.mxu2 %v5896_v18 }
 0x1ca   : > { %v8044_v61 = vadd.f32 %v1366_v7, %v1171_v52  ;;  %v5811_v7 = vld [vmem:[%s9896_s25 + $0x128] sm:$0xf0] }
 0x1cb   : > { %v5814_v34 = vor.u32 %v7060_v30, %v5811_v7  ;;  %v1971_v30 = vld [vmem:[#allocation2 + $0xc] sm:$0xff] }
 0x1cc   : > { %5793 = vmatmul.msk.bf16.gmra.mxu3 %vm938_vm0, %v1453_v4 }
 0x1cd   : > { %1887 = vmatpush.bf16.msra.mxu1 %v5814_v34  ;;  %2104 = vmatpush.bf16.msra.mxu2 %v5888_v48  ;;  %v1970_v34 = vld [vmem:[#allocation2 + $0x4] sm:$0xff] }
 0x1cf   : > { %v8059_v21 = vpop.f32.mrf.mxu2  ;;  %v1369_v26 = vpop.f32.mrf.mxu3 }
 0x1d1   : > { %v1174_v47 = vpop.f32.mrf.mxu1 }
 0x1d2   : > { %v8073_v12 = vadd.f32 %v1369_v26, %v1174_v47  ;;  %v1988_v47 = vpack.c.bf16 %v1971_v30, %v1970_v34 }
 0x1d4   : > { %5715 = vmatmul.msk.bf16.gmra.mxu1 %vm938_vm0, %v7823_v35  ;;  %5784 = vmatmul.msk.bf16.gmra.mxu2 %vm938_vm0, %v1453_v4 }
 0x1d7   : > { %v8078_v50 = vpop.f32.mrf.mxu2  ;;  %v1371_v52 = vpop.f32.mrf.mxu3 }
 0x1d9   : > { %v1176_v59 = vpop.f32.mrf.mxu1 }
 0x1da   : > { %v8080_v6 = vadd.f32 %v1371_v52, %v1176_v59 }
 0x1dc   : > { %5794 = vmatmul.msk.bf16.gmra.mxu3 %vm938_vm0, %v1454_v10 }
 0x1df   : > { %v8083_v14 = vpop.f32.mrf.mxu2  ;;  %v1618_v15 = vpop.f32.mrf.mxu3 }
 0x1e1   : > { %v1383_v16 = vpop.f32.mrf.mxu1 }
 0x1e2   : > { %v1384_v18 = vadd.f32 %v1383_v16, %v7870_v11 }
 0x1e4   : > { %5716 = vmatmul.msk.bf16.gmra.mxu1 %vm938_vm0, %v7858_v0  ;;  %5785 = vmatmul.msk.bf16.gmra.mxu2 %vm938_vm0, %v1454_v10  ;;  %v8089_v35 = vadd.f32 %v1618_v15, %v1384_v18  ;;  %v1973_v10 = vld [vmem:[#allocation2 + $0x1c] sm:$0xff]  ;;  %v1972_v18 = vld [vmem:[#allocation2 + $0x14] sm:$0xff] }
 0x1e7   : > { %v1564_v4 = vpop.f32.mrf.mxu2  ;;  %v1620_v26 = vpop.f32.mrf.mxu3 }
 0x1e8   : > { %v8092_v7 = vadd.f32 %v1564_v4, %v7866_v9  ;;  %v1989_v4 = vpack.c.bf16 %v1973_v10, %v1972_v18 }
 0x1e9   : > { %v1385_v31 = vpop.f32.mrf.mxu1 }
 0x1ea   : > { %v1386_v40 = vadd.f32 %v1385_v31, %v7879_v25 }
 0x1ec   : > { %5942 = vmatmul.msk.bf16.vlgmr.msra.gmra.mxu3 %vm938_vm0, %v1988_v47  ;;  %v8096_v11 = vadd.f32 %v1620_v26, %v1386_v40 }
 0x1ef   : > { %v1566_v0 = vpop.f32.mrf.mxu2  ;;  %v1623_v48 = vpop.f32.mrf.mxu3 }
 0x1f0   : > { %v8099_v52 = vadd.f32 %v1566_v0, %v7872_v20 }
 0x1f1   : > { %v1388_v57 = vpop.f32.mrf.mxu1 }
 0x1f2   : > { %v1389_v59 = vadd.f32 %v1388_v57, %v7886_v29  ;;  %v1974_v57 = vld [vmem:[#allocation2 + $0x24] sm:$0xff] }
 0x1f4   : > { %5864 = vmatmul.msk.bf16.vlgmr.msra.gmra.mxu1 %vm938_vm0, %v7669_v44  ;;  %5933 = vmatmul.msk.bf16.vlgmr.msra.gmra.mxu2 %vm938_vm0, %v1988_v47  ;;  %v8105_v9 = vadd.f32 %v1623_v48, %v1389_v59  ;;  %v1975_v47 = vld [vmem:[#allocation2 + $0x2c] sm:$0xff] }
 0x1f5   : > { %v1990_v59 = vpack.c.bf16 %v1975_v47, %v1974_v57  ;;  %v1979_v57 = vld [vmem:[#allocation2 + $0x4c] sm:$0xff] }
 0x1f7   : > { %v1569_v25 = vpop.f32.mrf.mxu2  ;;  %v1625_v60 = vpop.f32.mrf.mxu3 }
 0x1f8   : > { %v8108_v15 = vadd.f32 %v1569_v25, %v7881_v28 }
 0x1f9   : > { %v1390_v16 = vpop.f32.mrf.mxu1 }
 0x1fa   : > { %v1391_v20 = vadd.f32 %v1390_v16, %v7891_v39 }
 0x1fc   : > { %5943 = vmatmul.msk.bf16.gmra.mxu3 %vm938_vm0, %v1989_v4  ;;  %v8112_v29 = vadd.f32 %v1625_v60, %v1391_v20  ;;  %v1977_v20 = vld [vmem:[#allocation2 + $0x3c] sm:$0xff] }
 0x1ff   : > { %v1571_v44 = vpop.f32.mrf.mxu2  ;;  %v1628_v26 = vpop.f32.mrf.mxu3 }
 0x200   : > { %v8115_v30 = vadd.f32 %v1571_v44, %v7888_v37 }
 0x201   : > { %v1393_v31 = vpop.f32.mrf.mxu1 }
 0x202   : > { %v1394_v34 = vadd.f32 %v1393_v31, %v7898_v33 }
 0x204   : > { %5865 = vmatmul.msk.bf16.gmra.mxu1 %vm938_vm0, %v7681_v55  ;;  %5934 = vmatmul.msk.bf16.gmra.mxu2 %vm938_vm0, %v1989_v4  ;;  %v8121_v28 = vadd.f32 %v1628_v26, %v1394_v34  ;;  %v1976_v26 = vld [vmem:[#allocation2 + $0x34] sm:$0xff] }
 0x205   : > { %v1991_v31 = vpack.c.bf16 %v1977_v20, %v1976_v26 }
 0x207   : > { %v1574_v39 = vpop.f32.mrf.mxu2  ;;  %v1630_v40 = vpop.f32.mrf.mxu3 }
 0x208   : > { %v8124_v0 = vadd.f32 %v1574_v39, %v7893_v46 }
 0x209   : > { %v1395_v48 = vpop.f32.mrf.mxu1 }
 0x20a   : > { %v1396_v37 = vadd.f32 %v1395_v48, %v7903_v53 }
 0x20c   : > { %5944 = vmatmul.msk.bf16.gmra.mxu3 %vm938_vm0, %v1990_v59  ;;  %v8128_v33 = vadd.f32 %v1630_v40, %v1396_v37 }
 0x20f   : > { %v1576_v55 = vpop.f32.mrf.mxu2  ;;  %v1633_v25 = vpop.f32.mrf.mxu3 }
 0x210   : > { %v8131_v60 = vadd.f32 %v1576_v55, %v7900_v51  ;;  %v1978_v55 = vld [vmem:[#allocation2 + $0x44] sm:$0xff] }
 0x211   : > { %v1398_v10 = vpop.f32.mrf.mxu1 }
 0x212   : > { %v1399_v16 = vadd.f32 %v1398_v10, %v7910_v43 }
 0x214   : > { %5866 = vmatmul.msk.bf16.gmra.mxu1 %vm938_vm0, %v7693_v2  ;;  %5935 = vmatmul.msk.bf16.gmra.mxu2 %vm938_vm0, %v1990_v59  ;;  %v8137_v46 = vadd.f32 %v1633_v25, %v1399_v16  ;;  %v1992_v25 = vpack.c.bf16 %v1979_v57, %v1978_v55  ;;  %v1982_v55 = vld [vmem:[#allocation2 + $0x64] sm:$0xff] }
 0x217   : > { %v1579_v53 = vpop.f32.mrf.mxu2  ;;  %v1635_v18 = vpop.f32.mrf.mxu3 }
 0x218   : > { %v8140_v4 = vadd.f32 %v1579_v53, %v7905_v58 }
 0x219   : > { %v1400_v44 = vpop.f32.mrf.mxu1 }
 0x21a   : > { %v1401_v51 = vadd.f32 %v1400_v44, %v7915_v5  ;;  %v1981_v44 = vld [vmem:[#allocation2 + $0x5c] sm:$0xff] }
 0x21c   : > { %5945 = vmatmul.msk.bf16.gmra.mxu3 %vm938_vm0, %v1991_v31  ;;  %v8144_v43 = vadd.f32 %v1635_v18, %v1401_v51 }
 0x21f   : > { %v1581_v2 = vpop.f32.mrf.mxu2  ;;  %v1638_v34 = vpop.f32.mrf.mxu3 }
 0x220   : > { %v8147_v39 = vadd.f32 %v1581_v2, %v7912_v63 }
 0x221   : > { %v1403_v40 = vpop.f32.mrf.mxu1 }
 0x222   : > { %v1404_v47 = vadd.f32 %v1403_v40, %v7922_v54 }
 0x224   : > { %5867 = vmatmul.msk.bf16.gmra.mxu1 %vm938_vm0, %v7705_v13  ;;  %5936 = vmatmul.msk.bf16.gmra.mxu2 %vm938_vm0, %v1991_v31  ;;  %v8153_v58 = vadd.f32 %v1638_v34, %v1404_v47  ;;  %v1980_v31 = vld [vmem:[#allocation2 + $0x54] sm:$0xff] }
 0x225   : > { %v1993_v2 = vpack.c.bf16 %v1981_v44, %v1980_v31  ;;  %v7112_v31 = vld [vmem:[%s9897_s2 + $0x60] sm:$0xff] }
 0x227   : > { %v1584_v5 = vpop.f32.mrf.mxu2  ;;  %v1640_v48 = vpop.f32.mrf.mxu3 }
 0x228   : > { %v8156_v37 = vadd.f32 %v1584_v5, %v7917_v8 }
 0x229   : > { %v1405_v59 = vpop.f32.mrf.mxu1 }
 0x22a   : > { %v1406_v63 = vadd.f32 %v1405_v59, %v7927_v19 }
 0x22c   : > { %5946 = vmatmul.msk.bf16.gmra.mxu3 %vm938_vm0, %v1992_v25  ;;  %v8160_v54 = vadd.f32 %v1640_v48, %v1406_v63  ;;  %v7107_v63 = vld [vmem:[%s9897_s2 + $0x38] sm:$0xff] }
 0x22d   : > { %2683 = vmatpush.bf16.msrb.mxu2 %v7107_v63 }
 0x22f   : > { %v1586_v13 = vpop.f32.mrf.mxu2  ;;  %v1643_v10 = vpop.f32.mrf.mxu3 }
 0x230   : > { %v8163_v16 = vadd.f32 %v1586_v13, %v7924_v17  ;;  %v7113_v13 = vld [vmem:[%s9897_s2 + $0x68] sm:$0xff] }
 0x231   : > { %v1408_v53 = vpop.f32.mrf.mxu1 }
 0x232   : > { %v1409_v18 = vadd.f32 %v1408_v53, %v7934_v1 }
 0x234   : > { %5868 = vmatmul.msk.bf16.gmra.mxu1 %vm938_vm0, %v7717_v24  ;;  %5937 = vmatmul.msk.bf16.gmra.mxu2 %vm938_vm0, %v1992_v25  ;;  %v8169_v8 = vadd.f32 %v1643_v10, %v1409_v18  ;;  %v7114_v25 = vld [vmem:[%s9897_s2 + $0x70] sm:$0xff] }
 0x237   : > { %v1589_v19 = vpop.f32.mrf.mxu2  ;;  %v1645_v20 = vpop.f32.mrf.mxu3 }
 0x238   : > { %v8172_v26 = vadd.f32 %v1589_v19, %v7929_v27  ;;  %v7115_v27 = vld [vmem:[%s9897_s2 + $0x78] sm:$0xff] }
 0x239   : > { %v1410_v51 = vpop.f32.mrf.mxu1  ;;  %2737 = vmatpush.bf16.msrb.mxu3 %v7115_v27 }
 0x23a   : > { %v1411_v17 = vadd.f32 %v1410_v51, %v7939_v45  ;;  %v7105_v51 = vld [vmem:[%s9897_s2 + $0x28] sm:$0xff] }
 0x23c   : > { %5947 = vmatmul.msk.bf16.gmra.mxu3 %vm938_vm0, %v1993_v2  ;;  %v8176_v1 = vadd.f32 %v1645_v20, %v1411_v17  ;;  %v8213_v20 = vpop.f32.mrf.mxu0  ;;  %v7111_v17 = vld [vmem:[%s9897_s2 + $0x58] sm:$0xff] }
 0x23d   : > { %2738 = vmatpush.bf16.msrb.mxu3 %v7114_v25 }
 0x23f   : > { %v1591_v24 = vpop.f32.mrf.mxu2  ;;  %v1648_v34 = vpop.f32.mrf.mxu3 }
 0x240   : > { %v8179_v40 = vadd.f32 %v1591_v24, %v7936_v38  ;;  %v1983_v38 = vld [vmem:[#allocation2 + $0x6c] sm:$0xff] }
 0x241   : > { %v1413_v47 = vpop.f32.mrf.mxu1  ;;  %2739 = vmatpush.bf16.msrb.mxu3 %v7113_v13 }
 0x242   : > { %v1414_v5 = vadd.f32 %v1413_v47, %v7952_v56 }
 0x244   : > { %5869 = vmatmul.msk.bf16.gmra.mxu1 %vm938_vm0, %v7741_v42  ;;  %5938 = vmatmul.msk.bf16.gmra.mxu2 %vm938_vm0, %v1993_v2  ;;  %v8188_v45 = vadd.f32 %v1648_v34, %v1414_v5  ;;  %v1994_v42 = vpack.c.bf16 %v1983_v38, %v1982_v55  ;;  %v1985_v34 = vld [vmem:[#allocation2 + $0x7c] sm:$0xff]  ;;  %v1984_v5 = vld [vmem:[#allocation2 + $0x74] sm:$0xff]  ;;  %v7110_v38 = vld [vmem:[%s9897_s2 + $0x50] sm:$0xff]  ;;  %v1837_v55 = vpop.f32.mrf.mxu0 }
 0x245   : > { %2740 = vmatpush.bf16.msrb.mxu3 %v7112_v31  ;;  %v1995_v27 = vpack.c.bf16 %v1985_v34, %v1984_v5 }
 0x247   : > { %v1594_v48 = vpop.f32.mrf.mxu2  ;;  %v8190_v57 = vpop.f32.mrf.mxu3 }
 0x248   : > { %v8193_v59 = vadd.f32 %v1594_v48, %v7941_v49  ;;  %v7106_v49 = vld [vmem:[%s9897_s2 + $0x30] sm:$0xff]  ;;  %v7103_v48 = vld [vmem:[%s9897_s2 + $0x18] sm:$0xff] }
 0x249   : > { %v8195_v56 = vpop.f32.mrf.mxu1  ;;  %2684 = vmatpush.bf16.msrb.mxu2 %v7106_v49  ;;  %2741 = vmatpush.bf16.msrb.mxu3 %v7111_v17 }
 0x24c   : > { %5948 = vmatmul.msk.bf16.gmra.mxu3 %vm938_vm0, %v1994_v42 }
 0x24d   : > { %2685 = vmatpush.bf16.msrb.mxu2 %v7105_v51  ;;  %2742 = vmatpush.bf16.msrb.mxu3 %v7110_v38 }
 0x24f   : > { %v1596_v10 = vpop.f32.mrf.mxu2  ;;  %v1653_v53 = vpop.f32.mrf.mxu3 }
 0x250   : > { %v8211_v18 = vadd.f32 %v1596_v10, %v7960_v23 }
 0x251   : > { %v1418_v19 = vpop.f32.mrf.mxu1 }
 0x252   : > { %v1419_v44 = vadd.f32 %v1418_v19, %v8024_v41  ;;  %v7104_v41 = vld [vmem:[%s9897_s2 + $0x20] sm:$0xff] }
 0x253   : > { %2686 = vmatpush.bf16.msrb.mxu2 %v7104_v41  ;;  %v7108_v19 = vld [vmem:[%s9897_s2 + $0x40] sm:$0xff]  ;;  %v1987_v41 = vld [vmem:[#allocation2 + $0x8c] sm:$0xff] }
 0x254   : > { %5870 = vmatmul.msk.bf16.gmra.mxu1 %vm938_vm0, %v7825_v36  ;;  %5939 = vmatmul.msk.bf16.gmra.mxu2 %vm938_vm0, %v1994_v42  ;;  %v8225_v23 = vadd.f32 %v1653_v53, %v1419_v44  ;;  %v7109_v42 = vld [vmem:[%s9897_s2 + $0x48] sm:$0xff]  ;;  %v1840_v44 = vpop.f32.mrf.mxu0 }
 0x255   : > { %2743 = vmatpush.bf16.msrb.mxu3 %v7109_v42  ;;  %v7101_v53 = vld [vmem:[%s9897_s2 + $0x8] sm:$0xff] }
 0x257   : > { %v1599_v2 = vpop.f32.mrf.mxu2  ;;  %v8233_v24 = vpop.f32.mrf.mxu3  ;;  %2687 = vmatpush.bf16.msrb.mxu2 %v7103_v48 }
 0x258   : > { %v8236_v36 = vadd.f32 %v1599_v2, %v8001_v62  ;;  %v7102_v62 = vld [vmem:[%s9897_s2 + $0x10] sm:$0xff] }
 0x259   : > { %v8238_v47 = vpop.f32.mrf.mxu1  ;;  %2744 = vmatpush.bf16.msrb.mxu3 %v7108_v19  ;;  %v1934_v19 = vadd.f32 %v8213_v20, %v8092_v7 }
 0x25b   : > { %2688 = vmatpush.bf16.msrb.mxu2 %v7102_v62 }
 0x25c   : > { %5949 = vmatmul.msk.bf16.gmra.mxu3 %vm938_vm0, %v1995_v27  ;;  %v1842_v48 = vpop.f32.mrf.mxu0 }
 0x25f   : > { %v1601_v63 = vpop.f32.mrf.mxu2  ;;  %v1658_v25 = vpop.f32.mrf.mxu3  ;;  %2689 = vmatpush.bf16.msrb.mxu2 %v7101_v53 }
 0x260   : > { %v8254_v49 = vadd.f32 %v1601_v63, %v8044_v61 }
 0x261   : > { %v1423_v13 = vpop.f32.mrf.mxu1 }
 0x262   : > { %v1424_v10 = vadd.f32 %v1423_v13, %v8078_v50  ;;  %v7100_v50 = vld [vmem:[%s9897_s2] sm:$0xff] }
 0x263   : > { %2690 = vmatpush.bf16.msrb.mxu2 %v7100_v50 }
 0x264   : > { %5871 = vmatmul.msk.bf16.gmra.mxu1 %vm938_vm0, %v7860_v3  ;;  %5940 = vmatmul.msk.bf16.gmra.mxu2 %vm938_vm0, %v1995_v27  ;;  %v8266_v61 = vadd.f32 %v1658_v25, %v1424_v10  ;;  %v1986_v3 = vld [vmem:[#allocation2 + $0x84] sm:$0xff] }
 0x265   : > { %v1996_v34 = vpack.c.bf16 %v1987_v41, %v1986_v3 }
 0x267   : > { %v1604_v51 = vpop.f32.mrf.mxu2  ;;  %v8271_v31 = vpop.f32.mrf.mxu3 }
 0x268   : > { %v8274_v17 = vadd.f32 %v1604_v51, %v8073_v12  ;;  %v2241_v12 = vld [vmem:[%s9900_s7] sm:$0x3] }
 0x269   : > { %v8276_v2 = vpop.f32.mrf.mxu1  ;;  %v8289_v10 = vperm.slane %v2241_v12, 1  ;;  %v8295_v51 = vperm.slane %v2241_v12, 0 }
 0x26a   : > { %9898 = vst [vmem:[#allocation5_spill] sm:$0xff] %v8274_v17 }
 0x26c   : > { %5950 = vmatmul.msk.bf16.gmra.mxu3 %vm938_vm0, %v1996_v34 }
 0x26f   : > { %v1606_v5 = vpop.f32.mrf.mxu2  ;;  %v2160_v27 = vpop.f32.mrf.mxu3 }
 0x270   : > { %v8280_v38 = vadd.f32 %v1606_v5, %v8080_v6  ;;  %v1845_v6 = vpop.f32.mrf.mxu0 }
 0x271   : > { %v1889_v62 = vpop.f32.mrf.mxu1 }
 0x272   : > { %9899 = vst [vmem:[#allocation6_spill] sm:$0xff] %v8280_v38  ;;  %v1935_v42 = vadd.f32 %v1889_v62, %v8089_v35 }
 0x274   : > { %5872 = vmatmul.msk.bf16.gmra.mxu1 %vm938_vm0, %v7874_v22  ;;  %5941 = vmatmul.msk.bf16.gmra.mxu2 %vm938_vm0, %v1996_v34  ;;  %v2206_v13 = vadd.f32 %v2160_v27, %v1935_v42  ;;  %v1936_v34 = vadd.f32 %v1837_v55, %v8099_v52 }
 0x276   : > { %v2248_v22 = vadd.f32 %v8289_v10, %v2206_v13 }
 0x277   : > { %v2106_v63 = vpop.f32.mrf.mxu2  ;;  %v2162_v25 = vpop.f32.mrf.mxu3 }
 0x278   : > { %v2205_v50 = vadd.f32 %v2106_v63, %v1934_v19  ;;  %v2284_v62 = vmax.f32 %v2248_v22, 0.0  ;;  %v1847_v63 = vpop.f32.mrf.mxu0 }
 0x279   : > { %v1891_v53 = vpop.f32.mrf.mxu1 }
 0x27a   : > { %v1937_v35 = vadd.f32 %v1891_v53, %v8096_v11  ;;  %v2247_v42 = vadd.f32 %v8295_v51, %v2205_v50 }
 0x27c   : > { %v2208_v41 = vadd.f32 %v2162_v25, %v1937_v35  ;;  %v2283_v12 = vmax.f32 %v2247_v42, 0.0 }
 0x27e   : > { %v2250_v3 = vadd.f32 %v8289_v10, %v2208_v41 }
 0x27f   : > { %v2108_v5 = vpop.f32.mrf.mxu2  ;;  %v2165_v27 = vpop.f32.mrf.mxu3 }
 0x280   : > { %v2286_v38 = vmax.f32 %v2250_v3, 0.0  ;;  %v2207_v17 = vadd.f32 %v2108_v5, %v1936_v34  ;;  %v1850_v3 = vpop.f32.mrf.mxu0  ;;  %v1940_v34 = vadd.f32 %v1842_v48, %v8115_v30 }
 0x281   : > { %v1894_v7 = vpop.f32.mrf.mxu1 }
 0x282   : > { %v8300_v20 = vpack.c.bf16 %v2286_v38, %v2284_v62  ;;  %v2249_v11 = vadd.f32 %v8295_v51, %v2207_v17  ;;  %v1939_v25 = vadd.f32 %v1894_v7, %v8105_v9  ;;  %v1938_v38 = vadd.f32 %v1840_v44, %v8108_v15 }
 0x284   : > { %v2285_v13 = vmax.f32 %v2249_v11, 0.0  ;;  %2745 = vmatmul.bf16.vlgmr.msrb.gmra.mxu3 %v8300_v20  ;;  %v2210_v19 = vadd.f32 %v2165_v27, %v1939_v25 }
 0x286   : > { %v8305_v52 = vpack.c.bf16 %v2285_v13, %v2283_v12  ;;  %v2252_v17 = vadd.f32 %v8289_v10, %v2210_v19 }
 0x287   : > { %v2111_v55 = vpop.f32.mrf.mxu2  ;;  %v2167_v53 = vpop.f32.mrf.mxu3 }
 0x288   : > { %2691 = vmatmul.bf16.vlgmr.msrb.gmra.mxu2 %v8305_v52  ;;  %v2209_v50 = vadd.f32 %v2111_v55, %v1938_v38  ;;  %v2288_v42 = vmax.f32 %v2252_v17, 0.0  ;;  %v1942_v38 = vadd.f32 %v1845_v6, %v8124_v0 }
 0x289   : > { %v1896_v35 = vpop.f32.mrf.mxu1 }
 0x28a   : > { %v1941_v22 = vadd.f32 %v1896_v35, %v8112_v29  ;;  %v2251_v27 = vadd.f32 %v8295_v51, %v2209_v50 }
 0x28c   : > { %v2212_v41 = vadd.f32 %v2167_v53, %v1941_v22  ;;  %v2287_v44 = vmax.f32 %v2251_v27, 0.0  ;;  %v1852_v53 = vpop.f32.mrf.mxu0 }
 0x28e   : > { %v2254_v9 = vadd.f32 %v8289_v10, %v2212_v41 }
 0x28f   : > { %v2113_v5 = vpop.f32.mrf.mxu2  ;;  %v2170_v62 = vpop.f32.mrf.mxu3 }
 0x290   : > { %v2211_v7 = vadd.f32 %v2113_v5, %v1940_v34  ;;  %v2290_v11 = vmax.f32 %v2254_v9, 0.0  ;;  %v1944_v9 = vadd.f32 %v1847_v63, %v8131_v60 }
 0x291   : > { %v1899_v12 = vpop.f32.mrf.mxu1 }
 0x292   : > { %v2253_v15 = vadd.f32 %v8295_v51, %v2211_v7  ;;  %v8315_v29 = vpack.c.bf16 %v2290_v11, %v2288_v42  ;;  %v1943_v25 = vadd.f32 %v1899_v12, %v8121_v28 }
 0x294   : > { %v2289_v13 = vmax.f32 %v2253_v15, 0.0  ;;  %2750 = vmatmul.bf16.gmra.mxu3 %v8315_v29  ;;  %v2214_v19 = vadd.f32 %v2170_v62, %v1943_v25  ;;  %v1855_v12 = vpop.f32.mrf.mxu0 }
 0x296   : > { %v8319_v55 = vpack.c.bf16 %v2289_v13, %v2287_v44  ;;  %v2256_v17 = vadd.f32 %v8289_v10, %v2214_v19 }
 0x297   : > { %v2116_v30 = vpop.f32.mrf.mxu2  ;;  %v2172_v48 = vpop.f32.mrf.mxu3 }
 0x298   : > { %2696 = vmatmul.bf16.gmra.mxu2 %v8319_v55  ;;  %v2213_v50 = vadd.f32 %v2116_v30, %v1942_v38  ;;  %v2292_v42 = vmax.f32 %v2256_v17, 0.0 }
 0x299   : > { %v1901_v35 = vpop.f32.mrf.mxu1 }
 0x29a   : > { %v1945_v22 = vadd.f32 %v1901_v35, %v8128_v33  ;;  %v2255_v62 = vadd.f32 %v8295_v51, %v2213_v50  ;;  %v1948_v50 = vadd.f32 %v1852_v53, %v8147_v39 }
 0x29c   : > { %v2216_v41 = vadd.f32 %v2172_v48, %v1945_v22  ;;  %v2291_v6 = vmax.f32 %v2255_v62, 0.0  ;;  %v1946_v48 = vadd.f32 %v1850_v3, %v8140_v4  ;;  %v1857_v35 = vpop.f32.mrf.mxu0 }
 0x29e   : > { %v2258_v28 = vadd.f32 %v8289_v10, %v2216_v41 }
 0x29f   : > { %v2118_v34 = vpop.f32.mrf.mxu2  ;;  %v2175_v5 = vpop.f32.mrf.mxu3 }
 0x2a0   : > { %v2215_v27 = vadd.f32 %v2118_v34, %v1944_v9  ;;  %v2294_v7 = vmax.f32 %v2258_v28, 0.0 }
 0x2a1   : > { %v1904_v11 = vpop.f32.mrf.mxu1 }
 0x2a2   : > { %v2257_v0 = vadd.f32 %v8295_v51, %v2215_v27  ;;  %v8329_v33 = vpack.c.bf16 %v2294_v7, %v2292_v42  ;;  %v1947_v44 = vadd.f32 %v1904_v11, %v8137_v46 }
 0x2a4   : > { %v2293_v15 = vmax.f32 %v2257_v0, 0.0  ;;  %2755 = vmatmul.bf16.gmra.mxu3 %v8329_v33  ;;  %v2218_v25 = vadd.f32 %v2175_v5, %v1947_v44  ;;  %v1860_v11 = vpop.f32.mrf.mxu0  ;;  %v1950_v44 = vadd.f32 %v1855_v12, %v8156_v37 }
 0x2a6   : > { %v8333_v60 = vpack.c.bf16 %v2293_v15, %v2291_v6  ;;  %v2260_v38 = vadd.f32 %v8289_v10, %v2218_v25 }
 0x2a7   : > { %v2121_v63 = vpop.f32.mrf.mxu2  ;;  %v2177_v13 = vpop.f32.mrf.mxu3 }
 0x2a8   : > { %2701 = vmatmul.bf16.gmra.mxu2 %v8333_v60  ;;  %v2217_v22 = vadd.f32 %v2121_v63, %v1946_v48  ;;  %v2296_v9 = vmax.f32 %v2260_v38, 0.0  ;;  %v1952_v48 = vadd.f32 %v1857_v35, %v8163_v16 }
 0x2a9   : > { %v1906_v30 = vpop.f32.mrf.mxu1 }
 0x2aa   : > { %v1949_v19 = vadd.f32 %v1906_v30, %v8144_v43  ;;  %v2259_v34 = vadd.f32 %v8295_v51, %v2217_v22 }
 0x2ac   : > { %v2220_v17 = vadd.f32 %v2177_v13, %v1949_v19  ;;  %v2295_v3 = vmax.f32 %v2259_v34, 0.0  ;;  %v1862_v22 = vpop.f32.mrf.mxu0 }
 0x2ae   : > { %v2262_v46 = vadd.f32 %v8289_v10, %v2220_v17 }
 0x2af   : > { %v2123_v41 = vpop.f32.mrf.mxu2  ;;  %v2180_v28 = vpop.f32.mrf.mxu3 }
 0x2b0   : > { %v2219_v5 = vadd.f32 %v2123_v41, %v1948_v50  ;;  %v2298_v42 = vmax.f32 %v2262_v46, 0.0 }
 0x2b1   : > { %v1909_v62 = vpop.f32.mrf.mxu1 }
 0x2b2   : > { %v2261_v4 = vadd.f32 %v8295_v51, %v2219_v5  ;;  %v8343_v43 = vpack.c.bf16 %v2298_v42, %v2296_v9  ;;  %v1951_v7 = vadd.f32 %v1909_v62, %v8153_v58 }
 0x2b4   : > { %v2297_v27 = vmax.f32 %v2261_v4, 0.0  ;;  %2760 = vmatmul.bf16.gmra.mxu3 %v8343_v43  ;;  %v2222_v6 = vadd.f32 %v2180_v28, %v1951_v7  ;;  %v1865_v4 = vpop.f32.mrf.mxu0 }
 0x2b6   : > { %v8347_v39 = vpack.c.bf16 %v2297_v27, %v2295_v3  ;;  %v2264_v13 = vadd.f32 %v8289_v10, %v2222_v6  ;;  %v1954_v3 = vadd.f32 %v1860_v11, %v8172_v26  ;;  %v1956_v6 = vadd.f32 %v1862_v22, %v8179_v40 }
 0x2b7   : > { %v2126_v53 = vpop.f32.mrf.mxu2  ;;  %v2182_v0 = vpop.f32.mrf.mxu3 }
 0x2b8   : > { %2706 = vmatmul.bf16.gmra.mxu2 %v8347_v39  ;;  %v2221_v25 = vadd.f32 %v2126_v53, %v1950_v44  ;;  %v2300_v17 = vmax.f32 %v2264_v13, 0.0 }
 0x2b9   : > { %v1911_v15 = vpop.f32.mrf.mxu1 }
 0x2ba   : > { %v1953_v63 = vadd.f32 %v1911_v15, %v8160_v54  ;;  %v2263_v46 = vadd.f32 %v8295_v51, %v2221_v25 }
 0x2bc   : > { %v2224_v30 = vadd.f32 %v2182_v0, %v1953_v63  ;;  %v2299_v12 = vmax.f32 %v2263_v46, 0.0 }
 0x2be   : > { %v2266_v58 = vadd.f32 %v8289_v10, %v2224_v30 }
 0x2bf   : > { %v2128_v19 = vpop.f32.mrf.mxu2  ;;  %v2185_v38 = vpop.f32.mrf.mxu3 }
 0x2c0   : > { %v2223_v50 = vadd.f32 %v2128_v19, %v1952_v48  ;;  %v2302_v41 = vmax.f32 %v2266_v58, 0.0  ;;  %v1416_v48 = vadd.f32 %v8195_v56, %v7981_v32 }
 0x2c1   : > { %v1914_v28 = vpop.f32.mrf.mxu1 }
 0x2c2   : > { %v2265_v37 = vadd.f32 %v8295_v51, %v2223_v50  ;;  %v8357_v54 = vpack.c.bf16 %v2302_v41, %v2300_v17  ;;  %v1955_v34 = vadd.f32 %v1914_v28, %v8169_v8  ;;  %v1690_v41 = vadd.f32 %v8190_v57, %v1416_v48 }
 0x2c4   : > { %v2301_v9 = vmax.f32 %v2265_v37, 0.0  ;;  %2765 = vmatmul.bf16.gmra.mxu3 %v8357_v54  ;;  %v2226_v42 = vadd.f32 %v2185_v38, %v1955_v34  ;;  %v1958_v37 = vadd.f32 %v1865_v4, %v8193_v59 }
 0x2c6   : > { %v8361_v16 = vpack.c.bf16 %v2301_v9, %v2299_v12  ;;  %v2268_v7 = vadd.f32 %v8289_v10, %v2226_v42 }
 0x2c7   : > { %v2131_v35 = vpop.f32.mrf.mxu2  ;;  %v2187_v5 = vpop.f32.mrf.mxu3 }
 0x2c8   : > { %2711 = vmatmul.bf16.gmra.mxu2 %v8361_v16  ;;  %v2225_v53 = vadd.f32 %v2131_v35, %v1954_v3  ;;  %v2304_v63 = vmax.f32 %v2268_v7, 0.0 }
 0x2c9   : > { %v1916_v62 = vpop.f32.mrf.mxu1 }
 0x2ca   : > { %v1957_v27 = vadd.f32 %v1916_v62, %v8176_v1  ;;  %v2267_v13 = vadd.f32 %v8295_v51, %v2225_v53  ;;  %v1867_v1 = vpop.f32.mrf.mxu0  ;;  %v1421_v53 = vadd.f32 %v8238_v47, %v8059_v21 }
 0x2cb   : > { %v1960_v35 = vadd.f32 %v1867_v1, %v8211_v18 }
 0x2cc   : > { %v2228_v0 = vadd.f32 %v2187_v5, %v1957_v27  ;;  %v2303_v19 = vmax.f32 %v2267_v13, 0.0  ;;  %v1694_v13 = vadd.f32 %v8233_v24, %v1421_v53 }
 0x2ce   : > { %v2270_v8 = vadd.f32 %v8289_v10, %v2228_v0 }
 0x2cf   : > { %v2133_v15 = vpop.f32.mrf.mxu2  ;;  %v2190_v44 = vpop.f32.mrf.mxu3 }
 0x2d0   : > { %v2227_v25 = vadd.f32 %v2133_v15, %v1956_v6  ;;  %v2306_v30 = vmax.f32 %v2270_v8, 0.0 }
 0x2d1   : > { %v1919_v58 = vpop.f32.mrf.mxu1 }
 0x2d2   : > { %v2269_v26 = vadd.f32 %v8295_v51, %v2227_v25  ;;  %v8371_v11 = vpack.c.bf16 %v2306_v30, %v2304_v63  ;;  %v1959_v40 = vadd.f32 %v1919_v58, %v8188_v45  ;;  %v1870_v45 = vpop.f32.mrf.mxu0 }
 0x2d3   : > { %v1962_v58 = vadd.f32 %v1870_v45, %v8236_v36  ;;  %v2337_v36 = vld [vmem:[%s9901_s4] sm:$0xf] }
 0x2d4   : > { %v2305_v38 = vmax.f32 %v2269_v26, 0.0  ;;  %2770 = vmatmul.bf16.gmra.mxu3 %v8371_v11  ;;  %v2230_v50 = vadd.f32 %v2190_v44, %v1959_v40  ;;  %2339 = vst [vmem:[#allocation1] ss:$4 sm:$0xff] %v2337_v36 }
 0x2d6   : > { %v8377_v22 = vpack.c.bf16 %v2305_v38, %v2303_v19  ;;  %v2272_v32 = vadd.f32 %v8289_v10, %v2230_v50 }
 0x2d7   : > { %v2136_v17 = vpop.f32.mrf.mxu2  ;;  %v2192_v46 = vpop.f32.mrf.mxu3 }
 0x2d8   : > { %2716 = vmatmul.bf16.gmra.mxu2 %v8377_v22  ;;  %v2229_v56 = vadd.f32 %v2136_v17, %v1958_v37  ;;  %v2308_v62 = vmax.f32 %v2272_v32, 0.0 }
 0x2d9   : > { %v1921_v28 = vpop.f32.mrf.mxu1 }
 0x2da   : > { %v1961_v12 = vadd.f32 %v1921_v28, %v1690_v41  ;;  %v2271_v3 = vadd.f32 %v8295_v51, %v2229_v56  ;;  %v1872_v25 = vpop.f32.mrf.mxu0 }
 0x2db   : > { %v1964_v48 = vadd.f32 %v1872_v25, %v8254_v49  ;;  %v1426_v49 = vadd.f32 %v8276_v2, %v8083_v14 }
 0x2dc   : > { %v2232_v9 = vadd.f32 %v2192_v46, %v1961_v12  ;;  %v2307_v0 = vmax.f32 %v2271_v3, 0.0 }
 0x2de   : > { %v2274_v34 = vadd.f32 %v8289_v10, %v2232_v9 }
 0x2df   : > { %v2138_v5 = vpop.f32.mrf.mxu2  ;;  %v2195_v42 = vpop.f32.mrf.mxu3 }
 0x2e0   : > { %v2231_v27 = vadd.f32 %v2138_v5, %v1960_v35  ;;  %v2310_v57 = vmax.f32 %v2274_v34, 0.0  ;;  %v1698_v35 = vadd.f32 %v8271_v31, %v1426_v49 }
 0x2e1   : > { %v1924_v7 = vpop.f32.mrf.mxu1 }
 0x2e2   : > { %v2273_v59 = vadd.f32 %v8295_v51, %v2231_v27  ;;  %v8387_v4 = vpack.c.bf16 %v2310_v57, %v2308_v62  ;;  %v1963_v6 = vadd.f32 %v1924_v7, %v8225_v23  ;;  %v1875_v37 = vpop.f32.mrf.mxu0 }
 0x2e4   : > { %v2309_v8 = vmax.f32 %v2273_v59, 0.0  ;;  %2775 = vmatmul.bf16.gmra.mxu3 %v8387_v4  ;;  %v2234_v63 = vadd.f32 %v2195_v42, %v1963_v6  ;;  %v9902_v42 = vld [vmem:[#allocation5_spill] sm:$0xff]  ;;  %v9903_v59 = vld [vmem:[#allocation6_spill] sm:$0xff] }
 0x2e5   : > { %v1966_v62 = vadd.f32 %v1875_v37, %v9902_v42  ;;  %v7089_v42 = vld [vmem:[%s9909_s28 + $0x28] sm:$0xff] }
 0x2e6   : > { %v8393_v18 = vpack.c.bf16 %v2309_v8, %v2307_v0  ;;  %v2276_v47 = vadd.f32 %v8289_v10, %v2234_v63 }
 0x2e7   : > { %v2141_v15 = vpop.f32.mrf.mxu2  ;;  %v2197_v44 = vpop.f32.mrf.mxu3 }
 0x2e8   : > { %2721 = vmatmul.bf16.gmra.mxu2 %v8393_v18  ;;  %v2233_v26 = vadd.f32 %v2141_v15, %v1962_v58  ;;  %v2312_v38 = vmax.f32 %v2276_v47, 0.0 }
 0x2e9   : > { %v1926_v30 = vpop.f32.mrf.mxu1 }
 0x2ea   : > { %v1965_v21 = vadd.f32 %v1926_v30, %v1694_v13  ;;  %v2275_v40 = vadd.f32 %v8295_v51, %v2233_v26  ;;  %v1877_v57 = vpop.f32.mrf.mxu0  ;;  %v2340_v26 = vld.sshfl [vmem:[#allocation1] sm:$0xff pattern:$0x73625140] }
 0x2eb   : > { %v1968_v53 = vadd.f32 %v1877_v57, %v9903_v59  ;;  %v7099_v57 = vld [vmem:[%s9909_s28 + $0x78] sm:$0xff]  ;;  %v7098_v59 = vld [vmem:[%s9909_s28 + $0x70] sm:$0xff] }
 0x2ec   : > { %v2236_v23 = vadd.f32 %v2197_v44, %v1965_v21  ;;  %v2311_v12 = vmax.f32 %v2275_v40, 0.0  ;;  %v2341_v40 = vld.sshfl [vmem:[#allocation1 + $0x8] sm:$0xff pattern:$0x73625140]  ;;  %2541 = vmatpush.bf16.msrb.mxu1 %v7099_v57 }
 0x2ee   : > { %v2278_v1 = vadd.f32 %v8289_v10, %v2236_v23 }
 0x2ef   : > { %v2143_v19 = vpop.f32.mrf.mxu2  ;;  %v2200_v24 = vpop.f32.mrf.mxu3 }
 0x2f0   : > { %v2235_v17 = vadd.f32 %v2143_v19, %v1964_v48  ;;  %v2314_v46 = vmax.f32 %v2278_v1, 0.0  ;;  %2542 = vmatpush.bf16.msrb.mxu1 %v7098_v59 }
 0x2f1   : > { %v1929_v50 = vpop.f32.mrf.mxu1 }
 0x2f2   : > { %v2277_v41 = vadd.f32 %v8295_v51, %v2235_v17  ;;  %v8406_v28 = vpack.c.bf16 %v2314_v46, %v2312_v38  ;;  %v1967_v56 = vadd.f32 %v1929_v50, %v8266_v61 }
 0x2f4   : > { %v2313_v32 = vmax.f32 %v2277_v41, 0.0  ;;  %2780 = vmatmul.bf16.gmra.mxu3 %v8406_v28  ;;  %v2238_v34 = vadd.f32 %v2200_v24, %v1967_v56 }
 0x2f6   : > { %v8412_v9 = vpack.c.bf16 %v2313_v32, %v2311_v12  ;;  %v2280_v3 = vadd.f32 %v8289_v10, %v2238_v34 }
 0x2f7   : > { %v2146_v45 = vpop.f32.mrf.mxu2  ;;  %v2202_v2 = vpop.f32.mrf.mxu3 }
 0x2f8   : > { %2346 = vmatpush.bf16.msra.mxu0 %v8412_v9  ;;  %2726 = vmatmul.bf16.gmra.mxu2 %v8412_v9  ;;  %v2237_v61 = vadd.f32 %v2146_v45, %v1966_v62  ;;  %v2316_v8 = vmax.f32 %v2280_v3, 0.0  ;;  %v7088_v62 = vld [vmem:[%s9909_s28 + $0x20] sm:$0xff]  ;;  %v7085_v3 = vld [vmem:[%s9909_s28 + $0x8] sm:$0xff] }
 0x2f9   : > { %v1931_v5 = vpop.f32.mrf.mxu1 }
 0x2fa   : > { %v1969_v14 = vadd.f32 %v1931_v5, %v1698_v35  ;;  %v2279_v31 = vadd.f32 %v8295_v51, %v2237_v61  ;;  %v7091_v35 = vld [vmem:[%s9909_s28 + $0x38] sm:$0xff]  ;;  %v7090_v5 = vld [vmem:[%s9909_s28 + $0x30] sm:$0xff]  ;;  %v7084_v61 = vld [vmem:[%s9909_s28] sm:$0xff] }
 0x2fc   : > { %v2240_v27 = vadd.f32 %v2202_v2, %v1969_v14  ;;  %2347 = vmatpush.bf16.msra.mxu0 %v8393_v18  ;;  %v2315_v13 = vmax.f32 %v2279_v31, 0.0  ;;  %v7087_v14 = vld [vmem:[%s9909_s28 + $0x18] sm:$0xff]  ;;  %v7086_v2 = vld [vmem:[%s9909_s28 + $0x10] sm:$0xff]  ;;  %v7096_v31 = vld [vmem:[%s9909_s28 + $0x60] sm:$0xff] }
 0x2fe   : > { %v2282_v7 = vadd.f32 %v8289_v10, %v2240_v27  ;;  %v7123_v27 = vld [vmem:[%s9910_s3 + $0x38] sm:$0xff] }
 0x2ff   : > { %v2148_v0 = vpop.f32.mrf.mxu2 }
 0x300   : > { %v2239_v6 = vadd.f32 %v2148_v0, %v1968_v53  ;;  %2348 = vmatpush.bf16.msra.mxu0 %v8377_v22  ;;  %v2318_v15 = vmax.f32 %v2282_v7, 0.0  ;;  %v7122_v7 = vld [vmem:[%s9910_s3 + $0x30] sm:$0xff]  ;;  %v7121_v53 = vld [vmem:[%s9910_s3 + $0x28] sm:$0xff] }
 0x301   : > { %v7097_v0 = vld [vmem:[%s9909_s28 + $0x68] sm:$0xff] }
 0x302   : > { %v2281_v44 = vadd.f32 %v8295_v51, %v2239_v6  ;;  %v8425_v63 = vpack.c.bf16 %v2318_v15, %v2316_v8  ;;  %v7120_v8 = vld [vmem:[%s9910_s3 + $0x20] sm:$0xff]  ;;  %2543 = vmatpush.bf16.msrb.mxu1 %v7097_v0  ;;  %v7119_v6 = vld [vmem:[%s9910_s3 + $0x18] sm:$0xff] }
 0x303   : > { %v7095_v15 = vld [vmem:[%s9909_s28 + $0x58] sm:$0xff] }
 0x304   : > { %v2317_v25 = vmax.f32 %v2281_v44, 0.0  ;;  %2349 = vmatpush.bf16.msra.mxu0 %v8361_v16  ;;  %2785 = vmatmul.bf16.gmra.mxu3 %v8425_v63  ;;  %v7118_v44 = vld [vmem:[%s9910_s3 + $0x10] sm:$0xff] }
 0x306   : > { %v8429_v10 = vpack.c.bf16 %v2317_v25, %v2315_v13  ;;  %2544 = vmatpush.bf16.msrb.mxu1 %v7096_v31  ;;  %v7094_v13 = vld [vmem:[%s9909_s28 + $0x50] sm:$0xff]  ;;  %v7117_v25 = vld [vmem:[%s9910_s3 + $0x8] sm:$0xff] }
 0x307   : > { %v2746_v30 = vpop.f32.mrf.mxu3 }
 0x308   : > { %2350 = vmatpush.bf16.msra.mxu0 %v8347_v39  ;;  %2731 = vmatmul.bf16.gmra.mxu2 %v8429_v10 }
 0x30a   : > { %2545 = vmatpush.bf16.msrb.mxu1 %v7095_v15 }
 0x30b   : > { %v2692_v58 = vpop.f32.mrf.mxu2 }
 0x30c   : > { %v8433_v21 = vadd.f32 %v2746_v30, %v2692_v58  ;;  %2351 = vmatpush.bf16.msra.mxu0 %v8333_v60  ;;  %v7093_v58 = vld [vmem:[%s9909_s28 + $0x48] sm:$0xff] }
 0x30e   : > { %9904 = vst [vmem:[#allocation5_spill] sm:$0xff] %v8433_v21  ;;  %2546 = vmatpush.bf16.msrb.mxu1 %v7094_v13 }
 0x30f   : > { %v8436_v51 = vpop.f32.mrf.mxu3 }
 0x310   : > { %9905 = vst [vmem:[#allocation6_spill] sm:$0xff] %v8436_v51  ;;  %2352 = vmatpush.bf16.msra.mxu0 %v8319_v55 }
 0x312   : > { %2547 = vmatpush.bf16.msrb.mxu1 %v7093_v58 }
 0x313   : > { %v8439_v47 = vpop.f32.mrf.mxu2 }
 0x314   : > { %9906 = vst [vmem:[#allocation7_spill] sm:$0xff] %v8439_v47  ;;  %2353 = vmatpush.bf16.msra.mxu0 %v8305_v52 }
 0x317   : > { %2354 = vmatmul.bf16.vlgmr.msra.gmra.mxu0 %v2340_v26  ;;  %v2751_v23 = vpop.f32.mrf.mxu3 }
 0x318   : > { %2366 = vmatpush.bf16.msrb.mxu0 %v8429_v10 }
 0x31b   : > { %v2697_v1 = vpop.f32.mrf.mxu2 }
 0x31c   : > { %2372 = vmatpush.bf16.msra.mxu0 %v8406_v28  ;;  %v8444_v48 = vadd.f32 %v2751_v23, %v2697_v1  ;;  %v7092_v23 = vld [vmem:[%s9909_s28 + $0x40] sm:$0xff]  ;;  %v7131_v1 = vld [vmem:[%s9910_s3 + $0x78] sm:$0xff] }
 0x31d   : > { %2548 = vmatpush.bf16.msrb.mxu1 %v7092_v23 }
 0x31e   : > { %9907 = vst [vmem:[#allocation8_spill] sm:$0xff] %v8444_v48 }
 0x31f   : > { %v8447_v19 = vpop.f32.mrf.mxu3 }
 0x320   : > { %2373 = vmatpush.bf16.msra.mxu0 %v8387_v4 }
 0x321   : > { %2973 = vmatpush.bf16.msra.mxu1 %v7131_v1 }
 0x323   : > { %v8450_v38 = vpop.f32.mrf.mxu2 }
 0x324   : > { %2374 = vmatpush.bf16.msra.mxu0 %v8371_v11 }
 0x327   : > { %5951 = vmatmul.msk.bf16.vlgmr.msrb.gmra.mxu0 %vm2343_vm2, %v2341_v40  ;;  %v2756_v17 = vpop.f32.mrf.mxu3 }
 0x328   : > { %2375 = vmatpush.bf16.msra.mxu0 %v8357_v54 }
 0x32b   : > { %v2702_v46 = vpop.f32.mrf.mxu2 }
 0x32c   : > { %2376 = vmatpush.bf16.msra.mxu0 %v8343_v43  ;;  %v8455_v24 = vadd.f32 %v2756_v17, %v2702_v46  ;;  %v7130_v17 = vld [vmem:[%s9910_s3 + $0x70] sm:$0xff]  ;;  %v7129_v46 = vld [vmem:[%s9910_s3 + $0x68] sm:$0xff] }
 0x32d   : > { %2974 = vmatpush.bf16.msra.mxu1 %v7130_v17 }
 0x32e   : > { %9908 = vst [vmem:[#allocation9_spill] sm:$0xff] %v8455_v24 }
 0x32f   : > { %v8458_v50 = vpop.f32.mrf.mxu3 }
 0x330   : > { %2377 = vmatpush.bf16.msra.mxu0 %v8329_v33 }
 0x331   : > { %2975 = vmatpush.bf16.msra.mxu1 %v7129_v46 }
 0x333   : > { %v8461_v36 = vpop.f32.mrf.mxu2 }
 0x334   : > { %2378 = vmatpush.bf16.msra.mxu0 %v8315_v29 }
 0x337   : > { %v2761_v41 = vpop.f32.mrf.mxu3 }
 0x338   : > { %2379 = vmatpush.bf16.msra.mxu0 %v8300_v20 }
 0x33b   : > { %2380 = vmatmul.bf16.vlgmr.msra.gmra.mxu0 %v2340_v26  ;;  %v2707_v37 = vpop.f32.mrf.mxu2  ;;  %v7116_v26 = vld [vmem:[%s9910_s3] sm:$0xff] }
 0x33c   : > { %2392 = vmatpush.bf16.msrb.mxu0 %v8425_v63  ;;  %v8465_v49 = vadd.f32 %v2761_v41, %v2707_v37 }
 0x33f   : > { %v8467_v12 = vpop.f32.mrf.mxu3 }
 0x340   : > { %2528 = vmatpush.bf16.msra.mxu0 %v7091_v35  ;;  %v7127_v35 = vld [vmem:[%s9910_s3 + $0x58] sm:$0xff] }
 0x343   : > { %v8469_v32 = vpop.f32.mrf.mxu2 }
 0x344   : > { %2529 = vmatpush.bf16.msra.mxu0 %v7090_v5 }
 0x347   : > { %v2766_v56 = vpop.f32.mrf.mxu3 }
 0x348   : > { %2530 = vmatpush.bf16.msra.mxu0 %v7089_v42  ;;  %v7126_v42 = vld [vmem:[%s9910_s3 + $0x50] sm:$0xff] }
 0x34b   : > { %5952 = vmatmul.msk.bf16.vlgmr.msrb.gmra.mxu0 %vm2343_vm2, %v2341_v40  ;;  %v2712_v45 = vpop.f32.mrf.mxu2 }
 0x34c   : > { %v8472_v34 = vadd.f32 %v2766_v56, %v2712_v45  ;;  %2531 = vmatpush.bf16.msra.mxu0 %v7088_v62  ;;  %v7128_v45 = vld [vmem:[%s9910_s3 + $0x60] sm:$0xff]  ;;  %v7125_v62 = vld [vmem:[%s9910_s3 + $0x48] sm:$0xff] }
 0x34d   : > { %2976 = vmatpush.bf16.msra.mxu1 %v7128_v45 }
 0x350   : > { %2532 = vmatpush.bf16.msra.mxu0 %v7087_v14 }
 0x351   : > { %2977 = vmatpush.bf16.msra.mxu1 %v7127_v35 }
 0x353   : > { %v2714_v58 = vpop.f32.mrf.mxu2 }
 0x354   : > { %2533 = vmatpush.bf16.msra.mxu0 %v7086_v2  ;;  %v7124_v2 = vld [vmem:[%s9910_s3 + $0x40] sm:$0xff] }
 0x355   : > { %2978 = vmatpush.bf16.msra.mxu1 %v7126_v42 }
 0x358   : > { %2534 = vmatpush.bf16.msra.mxu0 %v7085_v3 }
 0x359   : > { %2979 = vmatpush.bf16.msra.mxu1 %v7125_v62 }
 0x35c   : > { %2535 = vmatpush.bf16.msra.mxu0 %v7084_v61 }
 0x35d   : > { %2980 = vmatpush.bf16.msra.mxu1 %v7124_v2 }
 0x360   : > { %2919 = vmatpush.bf16.msrb.mxu0 %v7123_v27 }
 0x364   : > { %2920 = vmatpush.bf16.msrb.mxu0 %v7122_v7 }
 0x368   : > { %2921 = vmatpush.bf16.msrb.mxu0 %v7121_v53 }
 0x36c   : > { %2922 = vmatpush.bf16.msrb.mxu0 %v7120_v8 }
 0x370   : > { %2923 = vmatpush.bf16.msrb.mxu0 %v7119_v6 }
 0x374   : > { %2924 = vmatpush.bf16.msrb.mxu0 %v7118_v44 }
 0x378   : > { %2925 = vmatpush.bf16.msrb.mxu0 %v7117_v25 }
 0x37c   : > { %2926 = vmatpush.bf16.msrb.mxu0 %v7116_v26  ;;  %v2768_v26 = vpop.f32.mrf.mxu3 }
 0x384   : > { %v2771_v46 = vpop.f32.mrf.mxu3 }
 0x394   : > { %v2355_v30 = vpop.f32.mrf.mxu0 }
 0x39c   : > { %v2357_v40 = vpop.f32.mrf.mxu0 }
 0x39d   : > { %v2717_v40 = vpop.f32.mrf.mxu2 }
 0x3a4   : > { %v2368_v41 = vpop.f32.mrf.mxu0 }
 0x3a5   : > { %v2369_v37 = vadd.f32 %v2368_v41, %v2355_v30  ;;  %v2719_v35 = vpop.f32.mrf.mxu2 }
 0x3a7   : > { %v2398_v56 = vpack.c.bf16 %v2369_v37, %v2369_v37 }
 0x3a9   : > { %2536 = vmatmul.bf16.vlgmr.msra.gmra.mxu0 %v2398_v56 }
 0x3ac   : > { %v2370_v5 = vpop.f32.mrf.mxu0 }
 0x3ad   : > { %v2773_v5 = vpop.f32.mrf.mxu3 }
 0x3b5   : > { %v2776_v2 = vpop.f32.mrf.mxu3 }
 0x3b8   : > { %v2381_v14 = vpop.f32.mrf.mxu0 }
 0x3b9   : > { %2927 = vmatmul.bf16.vlgmr.msrb.gmra.mxu0 %v8305_v52 }
 0x3c0   : > { %v2383_v3 = vpop.f32.mrf.mxu0 }
 0x3c8   : > { %v2394_v61 = vpop.f32.mrf.mxu0 }
 0x3c9   : > { %v2395_v27 = vadd.f32 %v2394_v61, %v2381_v14  ;;  %2932 = vmatmul.bf16.gmra.mxu0 %v8319_v55  ;;  %v2722_v14 = vpop.f32.mrf.mxu2 }
 0x3cb   : > { %v2399_v57 = vpack.c.bf16 %v2395_v27, %v2395_v27 }
 0x3cd   : > { %2549 = vmatmul.bf16.vlgmr.msrb.gmra.mxu1 %v2399_v57  ;;  %v2778_v57 = vpop.f32.mrf.mxu3 }
 0x3d0   : > { %v2396_v7 = vpop.f32.mrf.mxu0 }
 0x3d1   : > { %v2724_v27 = vpop.f32.mrf.mxu2 }
 0x3d9   : > { %2937 = vmatmul.bf16.gmra.mxu0 %v8333_v60 }
 0x3dd   : > { %2981 = vmatmul.bf16.vlgmr.msra.gmra.mxu1 %v8300_v20 }
 0x3e9   : > { %2942 = vmatmul.bf16.gmra.mxu0 %v8347_v39 }
 0x3ed   : > { %2986 = vmatmul.bf16.gmra.mxu1 %v8315_v29 }
 0x3f9   : > { %2947 = vmatmul.bf16.gmra.mxu0 %v8361_v16 }
 0x3fd   : > { %2991 = vmatmul.bf16.gmra.mxu1 %v8329_v33 }
 0x409   : > { %2952 = vmatmul.bf16.gmra.mxu0 %v8377_v22 }
 0x40d   : > { %2996 = vmatmul.bf16.gmra.mxu1 %v8343_v43 }
 0x419   : > { %2957 = vmatmul.bf16.gmra.mxu0 %v8393_v18 }
 0x41d   : > { %3001 = vmatmul.bf16.gmra.mxu1 %v8357_v54 }
 0x426   : > { %v2537_v52 = vpop.f32.mrf.mxu0 }
 0x429   : > { %2962 = vmatmul.bf16.gmra.mxu0 %v8412_v9 }
 0x42d   : > { %3006 = vmatmul.bf16.gmra.mxu1 %v8371_v11 }
 0x42e   : > { %v2539_v20 = vpop.f32.mrf.mxu0 }
 0x42f   : > { %v2727_v20 = vpop.f32.mrf.mxu2 }
 0x436   : > { %v2928_v55 = vpop.f32.mrf.mxu0 }
 0x439   : > { %2967 = vmatmul.bf16.gmra.mxu0 %v8429_v10 }
 0x43d   : > { %3011 = vmatmul.bf16.gmra.mxu1 %v8387_v4 }
 0x43e   : > { %v8586_v29 = vpop.f32.mrf.mxu0 }
 0x446   : > { %v2933_v43 = vpop.f32.mrf.mxu0 }
 0x44a   : > { %v2550_v33 = vpop.f32.mrf.mxu1 }
 0x44b   : > { %v8588_v60 = vadd.f32 %v2550_v33, %v2537_v52  ;;  %v2781_v33 = vpop.f32.mrf.mxu3 }
 0x44d   : > { %9911 = vst [vmem:[#allocation10_spill] sm:$0xff] %v8588_v60  ;;  %3016 = vmatmul.bf16.gmra.mxu1 %v8406_v28  ;;  %v2779_v28 = vadd.f32 %v2778_v57, %v2724_v27  ;;  %v2769_v57 = vadd.f32 %v2768_v26, %v2714_v58 }
 0x44e   : > { %v8591_v54 = vpop.f32.mrf.mxu0 }
 0x452   : > { %v2552_v39 = vpop.f32.mrf.mxu1 }
 0x456   : > { %v2938_v4 = vpop.f32.mrf.mxu0 }
 0x45a   : > { %v2982_v16 = vpop.f32.mrf.mxu1 }
 0x45b   : > { %v8593_v22 = vadd.f32 %v2982_v16, %v2928_v55  ;;  %v2729_v16 = vpop.f32.mrf.mxu2 }
 0x45d   : > { %9912 = vst [vmem:[#allocation11_spill] sm:$0xff] %v8593_v22  ;;  %3021 = vmatmul.bf16.gmra.mxu1 %v8425_v63  ;;  %v2777_v22 = vadd.f32 %v2776_v2, %v2722_v14 }
 0x45e   : > { %v8600_v9 = vpop.f32.mrf.mxu0 }
 0x462   : > { %v8598_v18 = vpop.f32.mrf.mxu1 }
 0x463   : > { %9913 = vst [vmem:[#allocation12_spill] sm:$0xff] %v8598_v18  ;;  %v2732_v63 = vpop.f32.mrf.mxu2 }
 0x466   : > { %v2943_v0 = vpop.f32.mrf.mxu0 }
 0x46a   : > { %v2987_v10 = vpop.f32.mrf.mxu1 }
 0x46b   : > { %v8602_v59 = vadd.f32 %v2987_v10, %v2933_v43 }
 0x46d   : > { %9914 = vst [vmem:[#allocation13_spill] sm:$0xff] %v8602_v59 }
 0x46e   : > { %v8612_v6 = vpop.f32.mrf.mxu0 }
 0x472   : > { %v8606_v53 = vpop.f32.mrf.mxu1 }
 0x474   : > { %v9927_v2 = vld [vmem:[#allocation13_spill] sm:$0xff] }
 0x476   : > { %v2948_v44 = vpop.f32.mrf.mxu0 }
 0x47a   : > { %v2992_v8 = vpop.f32.mrf.mxu1 }
 0x47b   : > { %v8608_v31 = vadd.f32 %v2992_v8, %v2938_v4  ;;  %v2783_v4 = vpop.f32.mrf.mxu3 }
 0x47d   : > { %9915 = vst [vmem:[#allocation14_spill] sm:$0xff] %v8608_v31  ;;  %v2774_v31 = vadd.f32 %v2773_v5, %v2719_v35 }
 0x47e   : > { %v2950_v23 = vpop.f32.mrf.mxu0 }
 0x482   : > { %v8614_v15 = vpop.f32.mrf.mxu1 }
 0x483   : > { %v2786_v21 = vpop.f32.mrf.mxu3 }
 0x486   : > { %v2953_v37 = vpop.f32.mrf.mxu0 }
 0x48a   : > { %v2997_v13 = vpop.f32.mrf.mxu1 }
 0x48b   : > { %v8616_v25 = vadd.f32 %v2997_v13, %v2943_v0  ;;  %v2784_v13 = vadd.f32 %v2783_v4, %v2729_v16  ;;  %v7143_v16 = vld [vmem:[%s9918_s9 + $0x4] sm:$0xf0]  ;;  %v9929_v4 = vld [vmem:[#allocation5_spill] sm:$0xff] }
 0x48d   : > { %v9919_v26 = vmax.f32 %v8465_v49, %v8616_v25  ;;  %v9924_v49 = vld [vmem:[#allocation7_spill] sm:$0xff]  ;;  %v9925_v25 = vld [vmem:[#allocation6_spill] sm:$0xff] }
 0x48e   : > { %v2955_v42 = vpop.f32.mrf.mxu0  ;;  %v2749_v14 = vadd.f32 %v9925_v25, %v9924_v49 }
 0x492   : > { %v2999_v1 = vpop.f32.mrf.mxu1 }
 0x496   : > { %v2958_v3 = vpop.f32.mrf.mxu0 }
 0x49a   : > { %v3002_v17 = vpop.f32.mrf.mxu1 }
 0x49b   : > { %v8620_v41 = vadd.f32 %v3002_v17, %v2948_v44  ;;  %v2782_v44 = vadd.f32 %v2781_v33, %v2727_v20  ;;  %v2772_v33 = vadd.f32 %v2771_v46, %v2717_v40  ;;  %v2754_v46 = vadd.f32 %v8447_v19, %v8450_v38  ;;  %v9926_v38 = vld [vmem:[#allocation8_spill] sm:$0xff] }
 0x49e   : > { %v2960_v7 = vpop.f32.mrf.mxu0 }
 0x4a2   : > { %v3004_v45 = vpop.f32.mrf.mxu1 }
 0x4a6   : > { %v2963_v43 = vpop.f32.mrf.mxu0 }
 0x4aa   : > { %v3007_v62 = vpop.f32.mrf.mxu1 }
 0x4ab   : > { %v3008_v24 = vadd.f32 %v3007_v62, %v2953_v37  ;;  %v2764_v37 = vadd.f32 %v8467_v12, %v8469_v32  ;;  %v2759_v12 = vadd.f32 %v8458_v50, %v8461_v36  ;;  %v6194_v50 = vld [vmem:[%s9918_s9 + $0x8] sm:$0xf0]  ;;  %v2990_v36 = vadd.f32 %v8606_v53, %v8591_v54  ;;  %v9921_v54 = vld [vmem:[#allocation9_spill] sm:$0xff] }
 0x4ac   : > { %v9922_v53 = vld [vmem:[#allocation14_spill] sm:$0xff] }
 0x4ad   : > { %v3030_v35 = vmax.f32 %v2754_v46, %v2990_v36  ;;  %v9923_v5 = vmax.f32 %v9921_v54, %v9922_v53  ;;  %v7139_v36 = vld [vmem:[%s9917_s30 + $0x34] sm:$0xf0]  ;;  %v6181_v46 = vld [vmem:[%s9917_s30 + $0x48] sm:$0x10]  ;;  %v6179_v54 = vld [vmem:[%s9917_s30 + $0x40] sm:$0xf] }
 0x4ae   : > { %v2965_v10 = vpop.f32.mrf.mxu0  ;;  %v7141_v53 = vld [vmem:[%s9917_s30 + $0x44] sm:$0x10] }
 0x4af   : > { %v6180_v49 = vor.u32 %v7141_v53, %v6179_v54  ;;  %v6327_v54 = vld [vmem:[%s9854_s10 + $0x18] sm:$0xf0] }
 0x4b2   : > { %v3009_v61 = vpop.f32.mrf.mxu1 }
 0x4b3   : > { %v3010_v59 = vadd.f32 %v3009_v61, %v2955_v42  ;;  %v3000_v42 = vadd.f32 %v2999_v1, %v8612_v6  ;;  %v9916_v6 = vmax.f32 %v8472_v34, %v8620_v41  ;;  %v7142_v34 = vld [vmem:[%s9918_s9 + $0x4] sm:$0xf]  ;;  %v9928_v61 = vmax.f32 %v9926_v38, %v9927_v2  ;;  %v7166_v38 = vld [vmem:[%s9854_s10 + $0x74] sm:$0xf] }
 0x4b4   : > { %v6197_v41 = vor.u32 %v7142_v34, %v6194_v50  ;;  %v6171_v50 = vld [vmem:[%s9917_s30 + $0x30] sm:$0xf] }
 0x4b6   : > { %v2968_v47 = vpop.f32.mrf.mxu0 }
 0x4ba   : > { %v3012_v52 = vpop.f32.mrf.mxu1 }
 0x4bb   : > { %v3013_v30 = vadd.f32 %v3012_v52, %v2958_v3  ;;  %v3037_v3 = vmax.f32 %v2772_v33, %v3008_v24  ;;  %v2995_v24 = vadd.f32 %v8614_v15, %v8600_v9  ;;  %v6149_v9 = vld [vmem:[%s9917_s30 + $0x8] sm:$0xf0]  ;;  %v3046_v52 = vpack.c.bf16 %v3030_v35, %v9928_v61  ;;  %v7144_v33 = vld [vmem:[%s9918_s9 + $0x14] sm:$0xf]  ;;  %v6375_v61 = vld [vmem:[%s9854_s10 + $0x78] sm:$0xf0] }
 0x4bd   : > { %v3039_v18 = vmax.f32 %v2777_v22, %v3013_v30  ;;  %v2788_v22 = vpop.f32.mrf.mxu3 }
 0x4c2   : > { %v3014_v55 = vpop.f32.mrf.mxu1 }
 0x4c3   : > { %v3015_v17 = vadd.f32 %v3014_v55, %v2960_v7  ;;  %v3005_v7 = vadd.f32 %v3004_v45, %v2950_v23  ;;  %v3038_v55 = vmax.f32 %v2774_v31, %v3010_v59  ;;  %v2970_v59 = vpop.f32.mrf.mxu0 }
 0x4c5   : > { %v3040_v48 = vmax.f32 %v2779_v28, %v3015_v17  ;;  %v3036_v28 = vmax.f32 %v2769_v57, %v3005_v7  ;;  %v7134_v17 = vld [vmem:[%s9917_s30 + $0x14] sm:$0xf]  ;;  %v6202_v7 = vld [vmem:[%s9918_s9 + $0x18] sm:$0xf0]  ;;  %v6155_v57 = vld [vmem:[%s9917_s30 + $0x10] sm:$0xf] }
 0x4c7   : > { %v3051_v27 = vpack.c.bf16 %v3040_v48, %v3039_v18  ;;  %v3034_v18 = vmax.f32 %v2764_v37, %v3000_v42  ;;  %v3049_v58 = vpack.c.bf16 %v3036_v28, %v9916_v6  ;;  %v7145_v42 = vld [vmem:[%s9918_s9 + $0x14] sm:$0xf0]  ;;  %v7136_v37 = vld [vmem:[%s9917_s30 + $0x24] sm:$0xf] }
 0x4c9   : > { %v3048_v1 = vpack.c.bf16 %v3034_v18, %v9919_v26  ;;  %v6208_v18 = vld [vmem:[%s9918_s9 + $0x20] sm:$0xf]  ;;  %v6172_v26 = vor.u32 %v7139_v36, %v6171_v50  ;;  %v6335_v50 = vld [vmem:[%s9854_s10 + $0x28] sm:$0xf0] }
 0x4ca   : > { %v3017_v39 = vpop.f32.mrf.mxu1 }
 0x4cb   : > { %v3018_v0 = vadd.f32 %v3017_v39, %v2963_v43  ;;  %v7133_v43 = vld [vmem:[%s9917_s30 + $0x4] sm:$0xf0]  ;;  %v6192_v39 = vld [vmem:[%s9918_s9] sm:$0xf] }
 0x4cd   : > { %v3041_v56 = vmax.f32 %v2782_v44, %v3018_v0 }
 0x4d2   : > { %v3019_v8 = vpop.f32.mrf.mxu1 }
 0x4d3   : > { %v3020_v11 = vadd.f32 %v3019_v8, %v2965_v10  ;;  %v9930_v10 = vld [vmem:[#allocation11_spill] sm:$0xff] }
 0x4d4   : > { %v9931_v0 = vmax.f32 %v9929_v4, %v9930_v10  ;;  %v6367_v4 = vld [vmem:[%s9854_s10 + $0x68] sm:$0xf0] }
 0x4d5   : > { %v3042_v60 = vmax.f32 %v2784_v13, %v3020_v11  ;;  %v2734_v11 = vpop.f32.mrf.mxu2  ;;  %v6193_v13 = vor.u32 %v7143_v16, %v6192_v39  ;;  %v7164_v39 = vld [vmem:[%s9854_s10 + $0x64] sm:$0xf] }
 0x4d6   : > { %v2789_v23 = vadd.f32 %v2788_v22, %v2734_v11  ;;  %v6200_v11 = vld [vmem:[%s9918_s9 + $0x10] sm:$0xf]  ;;  %v6165_v22 = vld [vmem:[%s9917_s30 + $0x28] sm:$0xf0]  ;;  %v6370_v10 = vor.u32 %v7164_v39, %v6367_v4  ;;  %v7175_v4 = vld [vmem:[%s9854_s10 + $0xb4] sm:$0xf0] }
 0x4d7   : > { %v3052_v51 = vpack.c.bf16 %v3042_v60, %v3041_v56  ;;  %v3050_v60 = vpack.c.bf16 %v3038_v55, %v3037_v3  ;;  %v9920_v56 = vld [vmem:[#allocation12_spill] sm:$0xff] }
 0x4d8   : > { %v2985_v45 = vadd.f32 %v9920_v56, %v8586_v29  ;;  %v6147_v29 = vld [vmem:[%s9917_s30] sm:$0xf]  ;;  %v7135_v3 = vld [vmem:[%s9917_s30 + $0x14] sm:$0xf0]  ;;  %v6226_v56 = vld [vmem:[%s9918_s9 + $0x48] sm:$0x10] }
 0x4d9   : > { %3124 = vmatpush.bf16.msra.mxu2 %v3052_v51  ;;  %3262 = vmatpush.bf16.msra.mxu0 %v3052_v51  ;;  %v2787_v51 = vadd.f32 %v2786_v21, %v2732_v63  ;;  %v7132_v21 = vld [vmem:[%s9917_s30 + $0x4] sm:$0xf]  ;;  %v3032_v63 = vmax.f32 %v2759_v12, %v2995_v24  ;;  %v6148_v44 = vor.u32 %v7133_v43, %v6147_v29  ;;  %v7137_v24 = vld [vmem:[%s9917_s30 + $0x24] sm:$0xf0]  ;;  %v7138_v12 = vld [vmem:[%s9917_s30 + $0x34] sm:$0xf] }
 0x4da   : > { %v3022_v20 = vpop.f32.mrf.mxu1  ;;  %v6152_v40 = vor.u32 %v7132_v21, %v6149_v9  ;;  %v3028_v19 = vmax.f32 %v2749_v14, %v2985_v45  ;;  %v6156_v28 = vor.u32 %v7135_v3, %v6155_v57  ;;  %v6218_v21 = vld [vmem:[%s9918_s9 + $0x38] sm:$0xf0]  ;;  %v6373_v14 = vld [vmem:[%s9854_s10 + $0x70] sm:$0xf]  ;;  %v6365_v29 = vld [vmem:[%s9854_s10 + $0x60] sm:$0xf] }
 0x4db   : > { %v3023_v30 = vadd.f32 %v3022_v20, %v2968_v47  ;;  %v3047_v62 = vpack.c.bf16 %v3032_v63, %v9923_v5  ;;  %v6157_v20 = vld [vmem:[%s9917_s30 + $0x18] sm:$0xf0]  ;;  %v6216_v63 = vld [vmem:[%s9918_s9 + $0x30] sm:$0xf]  ;;  %v6224_v5 = vld [vmem:[%s9918_s9 + $0x40] sm:$0xf] }
 0x4dc   : > { %v3045_v8 = vpack.c.bf16 %v3028_v19, %v9931_v0  ;;  %v6160_v55 = vor.u32 %v7134_v17, %v6157_v20  ;;  %v7167_v19 = vld [vmem:[%s9854_s10 + $0x74] sm:$0xf0]  ;;  %v7165_v43 = vld [vmem:[%s9854_s10 + $0x64] sm:$0xf0]  ;;  %v6357_v0 = vld [vmem:[%s9854_s10 + $0x50] sm:$0xf] }
 0x4dd   : > { %3125 = vmatpush.bf16.msra.mxu2 %v3051_v27  ;;  %3263 = vmatpush.bf16.msra.mxu0 %v3051_v27  ;;  %v3043_v32 = vmax.f32 %v2787_v51, %v3023_v30  ;;  %v6205_v27 = vor.u32 %v7144_v33, %v6202_v7  ;;  %v7146_v30 = vld [vmem:[%s9918_s9 + $0x24] sm:$0xf]  ;;  %v6210_v51 = vld [vmem:[%s9918_s9 + $0x28] sm:$0xf0]  ;;  %v6374_v2 = vor.u32 %v7167_v19, %v6373_v14  ;;  %v6359_v17 = vld [vmem:[%s9854_s10 + $0x58] sm:$0xf0] }
 0x4de   : > { %v6366_v16 = vor.u32 %v7165_v43, %v6365_v29  ;;  %v6349_v33 = vld [vmem:[%s9854_s10 + $0x40] sm:$0xf]  ;;  %v7161_v7 = vld [vmem:[%s9854_s10 + $0x44] sm:$0xf0]  ;;  %v6351_v57 = vld [vmem:[%s9854_s10 + $0x48] sm:$0xf0] }
 0x4df   : > { %v6287_v14 = vld [vmem:[%s9854_s10 + $0xc8] sm:$0xf0]  ;;  %v6317_v19 = vld [vmem:[%s9854_s10] sm:$0xf] }
 0x4e0   : > { %v6319_v29 = vld [vmem:[%s9854_s10 + $0x8] sm:$0xf0] }
 0x4e1   : > { %3126 = vmatpush.bf16.msra.mxu2 %v3050_v60  ;;  %3264 = vmatpush.bf16.msra.mxu0 %v3050_v60  ;;  %v6201_v60 = vor.u32 %v7145_v42, %v6200_v11  ;;  %v6309_v11 = vld [vmem:[%s9854_s10 + $0xf0] sm:$0xf]  ;;  %v7183_v42 = vld [vmem:[%s9854_s10 + $0xf4] sm:$0xf0] }
 0x4e2   : > { %v3024_v48 = vpop.f32.mrf.mxu1 }
 0x4e3   : > { %v3025_v31 = vadd.f32 %v3024_v48, %v2970_v59  ;;  %v6213_v59 = vor.u32 %v7146_v30, %v6210_v51  ;;  %v6163_v48 = vld [vmem:[%s9917_s30 + $0x20] sm:$0xf]  ;;  %v7159_v30 = vld [vmem:[%s9854_s10 + $0x34] sm:$0xf0] }
 0x4e4   : > { %v6164_v6 = vor.u32 %v7137_v24, %v6163_v48  ;;  %v6343_v48 = vld [vmem:[%s9854_s10 + $0x38] sm:$0xf0] }
 0x4e5   : > { %v3044_v47 = vmax.f32 %v2789_v23, %v3025_v31  ;;  %3127 = vmatpush.bf16.msra.mxu2 %v3049_v58  ;;  %3265 = vmatpush.bf16.msra.mxu0 %v3049_v58  ;;  %v6168_v23 = vor.u32 %v7136_v37, %v6165_v22  ;;  %v7147_v31 = vld [vmem:[%s9918_s9 + $0x24] sm:$0xf0]  ;;  %v6311_v37 = vld [vmem:[%s9854_s10 + $0xf8] sm:$0xf0]  ;;  %v6341_v22 = vld [vmem:[%s9854_s10 + $0x30] sm:$0xf] }
 0x4e6   : > { %v6209_v58 = vor.u32 %v7147_v31, %v6208_v18  ;;  %v6301_v18 = vld [vmem:[%s9854_s10 + $0xe0] sm:$0xf]  ;;  %v7181_v31 = vld [vmem:[%s9854_s10 + $0xe4] sm:$0xf0] }
 0x4e7   : > { %v3053_v15 = vpack.c.bf16 %v3044_v47, %v3043_v32  ;;  %v6173_v32 = vld [vmem:[%s9917_s30 + $0x38] sm:$0xf0]  ;;  %v7148_v47 = vld [vmem:[%s9918_s9 + $0x34] sm:$0xf] }
 0x4e8   : > { %v6176_v9 = vor.u32 %v7138_v12, %v6173_v32  ;;  %v6221_v34 = vor.u32 %v7148_v47, %v6218_v21  ;;  %v6303_v12 = vld [vmem:[%s9854_s10 + $0xe8] sm:$0xf0]  ;;  %v6333_v32 = vld [vmem:[%s9854_s10 + $0x20] sm:$0xf]  ;;  %v7157_v47 = vld [vmem:[%s9854_s10 + $0x24] sm:$0xf0] }
 0x4e9   : > { %3128 = vmatpush.bf16.msra.mxu2 %v3048_v1  ;;  %3165 = vmatpush.bf16.msra.mxu3 %v3053_v15 }
 0x4ea   : > { %3266 = vmatpush.bf16.msra.mxu0 %v3048_v1  ;;  %3303 = vmatpush.bf16.msrb.mxu1 %v3053_v15  ;;  %v7149_v15 = vld [vmem:[%s9918_s9 + $0x34] sm:$0xf0] }
 0x4eb   : > { %v6217_v1 = vor.u32 %v7149_v15, %v6216_v63  ;;  %v6293_v63 = vld [vmem:[%s9854_s10 + $0xd0] sm:$0xf]  ;;  %v7179_v15 = vld [vmem:[%s9854_s10 + $0xd4] sm:$0xf0] }
 0x4ec   : > { %6185 = vmatmul.msk.bf16.vlgmr.msra.gmra.mxu3 %vm2343_vm2, %v6152_v40  ;;  %v7140_v40 = vld [vmem:[%s9917_s30 + $0x44] sm:$0xf] }
 0x4ed   : > { %3129 = vmatpush.bf16.msra.mxu2 %v3047_v62  ;;  %6230 = vmatmul.msk.bf16.vlgmr.msrb.gmra.mxu1 %vm2343_vm2, %v6197_v41  ;;  %v7150_v41 = vld [vmem:[%s9918_s9 + $0x44] sm:$0xf]  ;;  %v6184_v45 = vor.u32 %v7140_v40, %v6181_v46  ;;  %v6295_v40 = vld [vmem:[%s9854_s10 + $0xd8] sm:$0xf0]  ;;  %v6325_v46 = vld [vmem:[%s9854_s10 + $0x10] sm:$0xf] }
 0x4ee   : > { %3267 = vmatpush.bf16.msra.mxu0 %v3047_v62  ;;  %v6229_v35 = vor.u32 %v7150_v41, %v6226_v56  ;;  %v7151_v62 = vld [vmem:[%s9918_s9 + $0x44] sm:$0x10]  ;;  %v7155_v41 = vld [vmem:[%s9854_s10 + $0x14] sm:$0xf0]  ;;  %s737_s9 = scalar_lea.vmem %s9868_s24, %s5504_s0 }
 0x4ef   : > { %v6225_v25 = vor.u32 %v7151_v62, %v6224_v5  ;;  %v6285_v5 = vld [vmem:[%s9854_s10 + $0xc0] sm:$0xf]  ;;  %v7177_v62 = vld [vmem:[%s9854_s10 + $0xc4] sm:$0xf0] }
 0x4f1   : > { %3130 = vmatpush.bf16.msra.mxu2 %v3046_v52 }
 0x4f2   : > { %3268 = vmatpush.bf16.msra.mxu0 %v3046_v52  ;;  %v6378_v52 = vor.u32 %v7166_v38, %v6375_v61  ;;  %v7153_v38 = vld [vmem:[%s9854_s10 + $0x4] sm:$0xf0] }
 0x4f3   : > { %v6318_v61 = vor.u32 %v7153_v38, %v6317_v19 }
 0x4f4   : > { %3670 = vmatpush.bf16.msra.mxu1 %v6378_v52  ;;  %v7152_v52 = vld [vmem:[%s9854_s10 + $0x4] sm:$0xf] }
 0x4f5   : > { %3131 = vmatpush.bf16.msra.mxu2 %v3045_v8  ;;  %v6322_v39 = vor.u32 %v7152_v52, %v6319_v29 }
 0x4f6   : > { %3269 = vmatpush.bf16.msra.mxu0 %v3045_v8  ;;  %v7163_v8 = vld [vmem:[%s9854_s10 + $0x54] sm:$0xf0] }
 0x4f8   : > { %3132 = vmatmul.bf16.vlgmr.msra.gmra.mxu2 %v6148_v44  ;;  %3671 = vmatpush.bf16.msra.mxu1 %v6370_v10  ;;  %v7162_v44 = vld [vmem:[%s9854_s10 + $0x54] sm:$0xf] }
 0x4f9   : > { %3270 = vmatmul.bf16.vlgmr.msra.gmra.mxu0 %v6193_v13  ;;  %v6358_v13 = vor.u32 %v7163_v8, %v6357_v0  ;;  %v6362_v20 = vor.u32 %v7162_v44, %v6359_v17  ;;  %v7174_v10 = vld [vmem:[%s9854_s10 + $0xb4] sm:$0xf]  ;;  %v6279_v8 = vld [vmem:[%s9854_s10 + $0xb8] sm:$0xf0]  ;;  %v6269_v17 = vld [vmem:[%s9854_s10 + $0xa0] sm:$0xf] }
 0x4fa   : > { %3637 = vmatpush.bf16.msrb.mxu0 %v6374_v2  ;;  %v6282_v44 = vor.u32 %v7174_v10, %v6279_v8 }
 0x4fc   : > { %6186 = vmatmul.msk.bf16.gmra.mxu3 %vm2343_vm2, %v6160_v55  ;;  %3672 = vmatpush.bf16.msra.mxu1 %v6362_v20  ;;  %v7160_v55 = vld [vmem:[%s9854_s10 + $0x44] sm:$0xf]  ;;  %v7173_v20 = vld [vmem:[%s9854_s10 + $0xa4] sm:$0xf0] }
 0x4fd   : > { %6231 = vmatmul.msk.bf16.gmra.mxu1 %vm2343_vm2, %v6205_v27  ;;  %v6350_v27 = vor.u32 %v7161_v7, %v6349_v33  ;;  %v6354_v3 = vor.u32 %v7160_v55, %v6351_v57  ;;  %v7172_v33 = vld [vmem:[%s9854_s10 + $0xa4] sm:$0xf]  ;;  %v6270_v7 = vor.u32 %v7173_v20, %v6269_v17  ;;  %v6271_v55 = vld [vmem:[%s9854_s10 + $0xa8] sm:$0xf0] }
 0x4fe   : > { %3638 = vmatpush.bf16.msrb.mxu0 %v6366_v16  ;;  %v6277_v16 = vld [vmem:[%s9854_s10 + $0xb0] sm:$0xf] }
 0x4ff   : > { %v6278_v0 = vor.u32 %v7175_v4, %v6277_v16 }
 0x500   : > { %3673 = vmatpush.bf16.msra.mxu1 %v6354_v3  ;;  %v6261_v3 = vld [vmem:[%s9854_s10 + $0x90] sm:$0xf] }
 0x502   : > { %3639 = vmatpush.bf16.msrb.mxu0 %v6358_v13 }
 0x506   : > { %3640 = vmatpush.bf16.msrb.mxu0 %v6350_v27  ;;  %v6274_v27 = vor.u32 %v7172_v33, %v6271_v55 }
 0x508   : > { %3137 = vmatmul.bf16.gmra.mxu2 %v6156_v28  ;;  %v7182_v28 = vld [vmem:[%s9854_s10 + $0xf4] sm:$0xf] }
 0x509   : > { %3275 = vmatmul.bf16.gmra.mxu0 %v6201_v60  ;;  %v6310_v60 = vor.u32 %v7183_v42, %v6309_v11  ;;  %v6314_v51 = vor.u32 %v7182_v28, %v6311_v37  ;;  %v7171_v11 = vld [vmem:[%s9854_s10 + $0x94] sm:$0xf0]  ;;  %v7170_v42 = vld [vmem:[%s9854_s10 + $0x94] sm:$0xf] }
 0x50a   : > { %v6262_v28 = vor.u32 %v7171_v11, %v6261_v3  ;;  %v6453_v3 = vld [vmem:[%s9854_s10 + $0x170] sm:$0xf]  ;;  %v7199_v11 = vld [vmem:[%s9854_s10 + $0x174] sm:$0xf0] }
 0x50b   : > { %3491 = vmatpush.bf16.msrb.mxu2 %v6310_v60  ;;  %3524 = vmatpush.bf16.msrb.mxu3 %v6314_v51  ;;  %v6263_v60 = vld [vmem:[%s9854_s10 + $0x98] sm:$0xf0]  ;;  %v6253_v51 = vld [vmem:[%s9854_s10 + $0x80] sm:$0xf] }
 0x50c   : > { %6187 = vmatmul.msk.bf16.gmra.mxu3 %vm2343_vm2, %v6168_v23  ;;  %v6342_v23 = vor.u32 %v7159_v30, %v6341_v22  ;;  %v6266_v37 = vor.u32 %v7170_v42, %v6263_v60  ;;  %v7198_v42 = vld [vmem:[%s9854_s10 + $0x174] sm:$0xf]  ;;  %v6454_v60 = vor.u32 %v7199_v11, %v6453_v3  ;;  %v6397_v3 = vld [vmem:[%s9854_s10 + $0x100] sm:$0xf]  ;;  %v7185_v11 = vld [vmem:[%s9854_s10 + $0x104] sm:$0xf0] }
 0x50d   : > { %6232 = vmatmul.msk.bf16.gmra.mxu1 %vm2343_vm2, %v6213_v59  ;;  %v7158_v59 = vld [vmem:[%s9854_s10 + $0x34] sm:$0xf] }
 0x50e   : > { %v6346_v24 = vor.u32 %v7158_v59, %v6343_v48  ;;  %3641 = vmatpush.bf16.msrb.mxu0 %v6342_v23  ;;  %v7169_v23 = vld [vmem:[%s9854_s10 + $0x84] sm:$0xf0]  ;;  %v7168_v59 = vld [vmem:[%s9854_s10 + $0x84] sm:$0xf] }
 0x50f   : > { %v6254_v48 = vor.u32 %v7169_v23, %v6253_v51 }
 0x510   : > { %3674 = vmatpush.bf16.msra.mxu1 %v6346_v24  ;;  %v6255_v24 = vld [vmem:[%s9854_s10 + $0x88] sm:$0xf0] }
 0x518   : > { %3142 = vmatmul.bf16.gmra.mxu2 %v6164_v6  ;;  %v7180_v6 = vld [vmem:[%s9854_s10 + $0xe4] sm:$0xf] }
 0x519   : > { %3280 = vmatmul.bf16.gmra.mxu0 %v6209_v58  ;;  %v6302_v58 = vor.u32 %v7181_v31, %v6301_v18  ;;  %v6306_v21 = vor.u32 %v7180_v6, %v6303_v12  ;;  %v6258_v18 = vor.u32 %v7168_v59, %v6255_v24  ;;  %v7196_v59 = vld [vmem:[%s9854_s10 + $0x164] sm:$0xf] }
 0x51b   : > { %3492 = vmatpush.bf16.msrb.mxu2 %v6302_v58  ;;  %3525 = vmatpush.bf16.msrb.mxu3 %v6306_v21 }
 0x51c   : > { %6188 = vmatmul.msk.bf16.gmra.mxu3 %vm2343_vm2, %v6176_v9  ;;  %v6334_v9 = vor.u32 %v7157_v47, %v6333_v32 }
 0x51d   : > { %6233 = vmatmul.msk.bf16.gmra.mxu1 %vm2343_vm2, %v6221_v34  ;;  %v7156_v34 = vld [vmem:[%s9854_s10 + $0x24] sm:$0xf] }
 0x51e   : > { %v6338_v36 = vor.u32 %v7156_v34, %v6335_v50  ;;  %3642 = vmatpush.bf16.msrb.mxu0 %v6334_v9 }
 0x520   : > { %3675 = vmatpush.bf16.msra.mxu1 %v6338_v36 }
 0x528   : > { %3147 = vmatmul.bf16.gmra.mxu2 %v6172_v26  ;;  %v7178_v26 = vld [vmem:[%s9854_s10 + $0xd4] sm:$0xf] }
 0x529   : > { %3285 = vmatmul.bf16.gmra.mxu0 %v6217_v1  ;;  %v6294_v1 = vor.u32 %v7179_v15, %v6293_v63  ;;  %v6298_v56 = vor.u32 %v7178_v26, %v6295_v40 }
 0x52b   : > { %3493 = vmatpush.bf16.msrb.mxu2 %v6294_v1  ;;  %3526 = vmatpush.bf16.msrb.mxu3 %v6298_v56 }
 0x52c   : > { %6189 = vmatmul.msk.bf16.gmra.mxu3 %vm2343_vm2, %v6184_v45  ;;  %v6326_v45 = vor.u32 %v7155_v41, %v6325_v46 }
 0x52d   : > { %6234 = vmatmul.msk.bf16.gmra.mxu1 %vm2343_vm2, %v6229_v35  ;;  %v7154_v35 = vld [vmem:[%s9854_s10 + $0x14] sm:$0xf] }
 0x52e   : > { %v6330_v53 = vor.u32 %v7154_v35, %v6327_v54  ;;  %3643 = vmatpush.bf16.msrb.mxu0 %v6326_v45 }
 0x530   : > { %3676 = vmatpush.bf16.msra.mxu1 %v6330_v53 }
 0x532   : > { %3644 = vmatpush.bf16.msrb.mxu0 %v6318_v61 }
 0x534   : > { %3677 = vmatpush.bf16.msra.mxu1 %v6322_v39 }
 0x538   : > { %3152 = vmatmul.bf16.gmra.mxu2 %v6180_v49  ;;  %v7176_v49 = vld [vmem:[%s9854_s10 + $0xc4] sm:$0xf] }
 0x539   : > { %3290 = vmatmul.bf16.gmra.mxu0 %v6225_v25  ;;  %v6286_v25 = vor.u32 %v7177_v62, %v6285_v5  ;;  %v6290_v2 = vor.u32 %v7176_v49, %v6287_v14 }
 0x53b   : > { %3494 = vmatpush.bf16.msrb.mxu2 %v6286_v25  ;;  %3527 = vmatpush.bf16.msrb.mxu3 %v6290_v2 }
 0x53f   : > { %3495 = vmatpush.bf16.msrb.mxu2 %v6278_v0  ;;  %3528 = vmatpush.bf16.msrb.mxu3 %v6282_v44 }
 0x543   : > { %3496 = vmatpush.bf16.msrb.mxu2 %v6270_v7  ;;  %3529 = vmatpush.bf16.msrb.mxu3 %v6274_v27 }
 0x547   : > { %3497 = vmatpush.bf16.msrb.mxu2 %v6262_v28  ;;  %3530 = vmatpush.bf16.msrb.mxu3 %v6266_v37  ;;  %v6455_v37 = vld [vmem:[%s9854_s10 + $0x178] sm:$0xf0] }
 0x548   : > { %v6458_v23 = vor.u32 %v7198_v42, %v6455_v37 }
 0x54b   : > { %3498 = vmatpush.bf16.msrb.mxu2 %v6254_v48  ;;  %3531 = vmatpush.bf16.msrb.mxu3 %v6258_v18  ;;  %v6447_v48 = vld [vmem:[%s9854_s10 + $0x168] sm:$0xf0] }
 0x54f   : > { %3814 = vmatpush.bf16.msra.mxu2 %v6454_v60  ;;  %3847 = vmatpush.bf16.msra.mxu3 %v6458_v23  ;;  %v6398_v23 = vor.u32 %v7185_v11, %v6397_v3  ;;  %v7230_v3 = vld [vmem:[%s9858_s14 + $0x70] sm:$0xff] }
 0x550   : > { %v7238_v11 = vld [vmem:[%s9859_s15 + $0x30] sm:$0xff] }
 0x56a   : > { %v3305_v43 = vpop.f32.mrf.mxu1 }
 0x56f   : > { %v3167_v13 = vpop.f32.mrf.mxu3 }
 0x572   : > { %v3307_v57 = vpop.f32.mrf.mxu1 }
 0x576   : > { %v3271_v22 = vpop.f32.mrf.mxu0 }
 0x577   : > { %v3169_v30 = vpop.f32.mrf.mxu3  ;;  %v3306_v31 = vadd.f32 %v3305_v43, %v3271_v22  ;;  %v6445_v22 = vld [vmem:[%s9854_s10 + $0x160] sm:$0xf] }
 0x57a   : > { %v3310_v12 = vpop.f32.mrf.mxu1 }
 0x57b   : > { %v3133_v6 = vpop.f32.mrf.mxu2 }
 0x57c   : > { %v3168_v58 = vadd.f32 %v3167_v13, %v3133_v6 }
 0x57e   : > { %v3330_v32 = vmax.f32 %v3168_v58, %v3306_v31  ;;  %v3273_v47 = vpop.f32.mrf.mxu0  ;;  %v6450_v58 = vor.u32 %v7196_v59, %v6447_v48 }
 0x57f   : > { %v3172_v21 = vpop.f32.mrf.mxu3  ;;  %v3308_v50 = vadd.f32 %v3307_v57, %v3273_v47 }
 0x580   : > { %3340 = vst [vmem:[#allocation3] sm:$0xff] %v3330_v32  ;;  %3848 = vmatpush.bf16.msra.mxu3 %v6450_v58 }
 0x582   : > { %v3312_v15 = vpop.f32.mrf.mxu1 }
 0x583   : > { %v3135_v9 = vpop.f32.mrf.mxu2 }
 0x584   : > { %v3170_v34 = vadd.f32 %v3169_v30, %v3135_v9  ;;  %v7197_v30 = vld [vmem:[%s9854_s10 + $0x164] sm:$0xf0]  ;;  %v6439_v9 = vld [vmem:[%s9854_s10 + $0x158] sm:$0xf0] }
 0x585   : > { %v6446_v24 = vor.u32 %v7197_v30, %v6445_v22  ;;  %v7184_v30 = vld [vmem:[%s9854_s10 + $0x104] sm:$0xf] }
 0x586   : > { %v3331_v36 = vmax.f32 %v3170_v34, %v3308_v50  ;;  %v3276_v63 = vpop.f32.mrf.mxu0 }
 0x587   : > { %v3174_v26 = vpop.f32.mrf.mxu3  ;;  %v3311_v40 = vadd.f32 %v3310_v12, %v3276_v63  ;;  %v6437_v12 = vld [vmem:[%s9854_s10 + $0x150] sm:$0xf]  ;;  %3815 = vmatpush.bf16.msra.mxu2 %v6446_v24  ;;  %v7193_v63 = vld [vmem:[%s9854_s10 + $0x144] sm:$0xf0] }
 0x588   : > { %3341 = vst [vmem:[#allocation3 + $0x8] sm:$0xff] %v3331_v36  ;;  %v3359_v1 = vpack.c.bf16 %v3331_v36, %v3330_v32  ;;  %v7195_v32 = vld [vmem:[%s9854_s10 + $0x154] sm:$0xf0]  ;;  %v6429_v36 = vld [vmem:[%s9854_s10 + $0x140] sm:$0xf] }
 0x589   : > { %v6438_v34 = vor.u32 %v7195_v32, %v6437_v12 }
 0x58a   : > { %3645 = vmatmul.bf16.vlgmr.msrb.gmra.mxu0 %v3359_v1  ;;  %3678 = vmatmul.bf16.vlgmr.msra.gmra.mxu1 %v3359_v1  ;;  %v3315_v35 = vpop.f32.mrf.mxu1 }
 0x58b   : > { %v3138_v46 = vpop.f32.mrf.mxu2  ;;  %3816 = vmatpush.bf16.msra.mxu2 %v6438_v34 }
 0x58c   : > { %v3173_v41 = vadd.f32 %v3172_v21, %v3138_v46  ;;  %v7194_v21 = vld [vmem:[%s9854_s10 + $0x154] sm:$0xf]  ;;  %v6431_v46 = vld [vmem:[%s9854_s10 + $0x148] sm:$0xf0] }
 0x58d   : > { %v6442_v50 = vor.u32 %v7194_v21, %v6439_v9 }
 0x58e   : > { %v3332_v56 = vmax.f32 %v3173_v41, %v3311_v40  ;;  %v3278_v45 = vpop.f32.mrf.mxu0  ;;  %v7192_v40 = vld [vmem:[%s9854_s10 + $0x144] sm:$0xf]  ;;  %v6430_v41 = vor.u32 %v7193_v63, %v6429_v36 }
 0x58f   : > { %v3177_v54 = vpop.f32.mrf.mxu3  ;;  %v3313_v62 = vadd.f32 %v3312_v15, %v3278_v45  ;;  %v3380_v14 = vld [vmem:[#allocation3 + $0x1] sm:$0xff]  ;;  %3849 = vmatpush.bf16.msra.mxu3 %v6442_v50 }
 0x590   : > { %3342 = vst [vmem:[#allocation3 + $0x10] sm:$0xff] %v3332_v56  ;;  %3817 = vmatpush.bf16.msra.mxu2 %v6430_v41 }
 0x592   : > { %v3317_v52 = vpop.f32.mrf.mxu1 }
 0x593   : > { %v3140_v53 = vpop.f32.mrf.mxu2 }
 0x594   : > { %v3175_v5 = vadd.f32 %v3174_v26, %v3140_v53  ;;  %v6434_v53 = vor.u32 %v7192_v40, %v6431_v46 }
 0x596   : > { %v3333_v49 = vmax.f32 %v3175_v5, %v3313_v62  ;;  %v3281_v25 = vpop.f32.mrf.mxu0  ;;  %3850 = vmatpush.bf16.msra.mxu3 %v6434_v53 }
 0x597   : > { %v3381_v19 = vld [vmem:[#allocation3 + $0x9] sm:$0xff]  ;;  %v3316_v61 = vadd.f32 %v3315_v35, %v3281_v25  ;;  %v3179_v43 = vpop.f32.mrf.mxu3 }
 0x598   : > { %3343 = vst [vmem:[#allocation3 + $0x18] sm:$0xff] %v3333_v49  ;;  %v3389_v38 = vpack.c.bf16 %v3381_v19, %v3380_v14  ;;  %v3360_v2 = vpack.c.bf16 %v3333_v49, %v3332_v56  ;;  %v6421_v19 = vld [vmem:[%s9854_s10 + $0x130] sm:$0xf] }
 0x599   : > { %v3704_v32 = vld [vmem:[#allocation3 + $0xa] sm:$0xff] }
 0x59a   : > { %3499 = vmatmul.bf16.vlgmr.msrb.gmra.mxu2 %v3389_v38  ;;  %3532 = vmatmul.bf16.vlgmr.msrb.gmra.mxu3 %v3389_v38  ;;  %v3320_v44 = vpop.f32.mrf.mxu1  ;;  %v7191_v38 = vld [vmem:[%s9854_s10 + $0x134] sm:$0xf0] }
 0x59b   : > { %v3143_v29 = vpop.f32.mrf.mxu2  ;;  %3650 = vmatmul.bf16.gmra.mxu0 %v3360_v2  ;;  %3683 = vmatmul.bf16.gmra.mxu1 %v3360_v2  ;;  %v7190_v2 = vld [vmem:[%s9854_s10 + $0x134] sm:$0xf] }
 0x59c   : > { %v3178_v39 = vadd.f32 %v3177_v54, %v3143_v29  ;;  %v6423_v29 = vld [vmem:[%s9854_s10 + $0x138] sm:$0xf0] }
 0x59e   : > { %v3334_v16 = vmax.f32 %v3178_v39, %v3316_v61  ;;  %v3283_v4 = vpop.f32.mrf.mxu0  ;;  %v7189_v39 = vld [vmem:[%s9854_s10 + $0x124] sm:$0xf0] }
 0x59f   : > { %v3318_v8 = vadd.f32 %v3317_v52, %v3283_v4  ;;  %v3182_v13 = vpop.f32.mrf.mxu3  ;;  %v3382_v33 = vld [vmem:[#allocation3 + $0x11] sm:$0xff]  ;;  %v6422_v52 = vor.u32 %v7191_v38, %v6421_v19  ;;  %v6426_v4 = vor.u32 %v7190_v2, %v6423_v29 }
 0x5a0   : > { %3344 = vst [vmem:[#allocation3 + $0x20] sm:$0xff] %v3334_v16  ;;  %v3705_v34 = vld [vmem:[#allocation3 + $0x12] sm:$0xff] }
 0x5a1   : > { %3818 = vmatpush.bf16.msra.mxu2 %v6422_v52  ;;  %3851 = vmatpush.bf16.msra.mxu3 %v6426_v4 }
 0x5a2   : > { %v3322_v6 = vpop.f32.mrf.mxu1 }
 0x5a3   : > { %v3145_v10 = vpop.f32.mrf.mxu2 }
 0x5a4   : > { %v3180_v0 = vadd.f32 %v3179_v43, %v3145_v10  ;;  %v6413_v43 = vld [vmem:[%s9854_s10 + $0x120] sm:$0xf]  ;;  %v7188_v10 = vld [vmem:[%s9854_s10 + $0x124] sm:$0xf] }
 0x5a6   : > { %v3335_v17 = vmax.f32 %v3180_v0, %v3318_v8  ;;  %v3286_v20 = vpop.f32.mrf.mxu0  ;;  %v6415_v0 = vld [vmem:[%s9854_s10 + $0x128] sm:$0xf0]  ;;  %v6414_v8 = vor.u32 %v7189_v39, %v6413_v43 }
 0x5a7   : > { %v3383_v7 = vld [vmem:[#allocation3 + $0x19] sm:$0xff]  ;;  %v3321_v57 = vadd.f32 %v3320_v44, %v3286_v20  ;;  %v3184_v47 = vpop.f32.mrf.mxu3  ;;  %v6418_v20 = vor.u32 %v7188_v10, %v6415_v0 }
 0x5a8   : > { %3345 = vst [vmem:[#allocation3 + $0x28] sm:$0xff] %v3335_v17  ;;  %v3390_v55 = vpack.c.bf16 %v3383_v7, %v3382_v33  ;;  %v3361_v27 = vpack.c.bf16 %v3335_v17, %v3334_v16  ;;  %v7187_v17 = vld [vmem:[%s9854_s10 + $0x114] sm:$0xf0]  ;;  %v7186_v33 = vld [vmem:[%s9854_s10 + $0x114] sm:$0xf]  ;;  %3819 = vmatpush.bf16.msra.mxu2 %v6414_v8 }
 0x5a9   : > { %v6407_v7 = vld [vmem:[%s9854_s10 + $0x118] sm:$0xf0]  ;;  %3852 = vmatpush.bf16.msra.mxu3 %v6418_v20 }
 0x5aa   : > { %3504 = vmatmul.bf16.gmra.mxu2 %v3390_v55  ;;  %3537 = vmatmul.bf16.gmra.mxu3 %v3390_v55  ;;  %v3325_v62 = vpop.f32.mrf.mxu1  ;;  %v6410_v60 = vor.u32 %v7186_v33, %v6407_v7  ;;  %v3706_v9 = vld [vmem:[#allocation3 + $0x1a] sm:$0xff] }
 0x5ab   : > { %v3148_v28 = vpop.f32.mrf.mxu2  ;;  %3655 = vmatmul.bf16.gmra.mxu0 %v3361_v27  ;;  %3688 = vmatmul.bf16.gmra.mxu1 %v3361_v27  ;;  %v3713_v50 = vpack.c.bf16 %v3706_v9, %v3705_v34  ;;  %v7231_v7 = vld [vmem:[%s9858_s14 + $0x78] sm:$0xff]  ;;  %v7234_v9 = vld [vmem:[%s9859_s15 + $0x10] sm:$0xff] }
 0x5ac   : > { %v3183_v51 = vadd.f32 %v3182_v13, %v3148_v28  ;;  %v6405_v13 = vld [vmem:[%s9854_s10 + $0x110] sm:$0xf] }
 0x5ad   : > { %v6406_v27 = vor.u32 %v7187_v17, %v6405_v13  ;;  %3853 = vmatpush.bf16.msra.mxu3 %v6410_v60 }
 0x5ae   : > { %v3336_v18 = vmax.f32 %v3183_v51, %v3321_v57  ;;  %v3288_v31 = vpop.f32.mrf.mxu0  ;;  %v6399_v51 = vld [vmem:[%s9854_s10 + $0x108] sm:$0xf0] }
 0x5af   : > { %v3323_v1 = vadd.f32 %v3322_v6, %v3288_v31  ;;  %v3384_v45 = vld [vmem:[#allocation3 + $0x21] sm:$0xff]  ;;  %v3187_v25 = vpop.f32.mrf.mxu3  ;;  %3820 = vmatpush.bf16.msra.mxu2 %v6406_v27 }
 0x5b0   : > { %3346 = vst [vmem:[#allocation3 + $0x30] sm:$0xff] %v3336_v18  ;;  %v3707_v63 = vld [vmem:[#allocation3 + $0x22] sm:$0xff] }
 0x5b2   : > { %v3327_v57 = vpop.f32.mrf.mxu1 }
 0x5b3   : > { %v3150_v15 = vpop.f32.mrf.mxu2  ;;  %3821 = vmatpush.bf16.msra.mxu2 %v6398_v23  ;;  %v7236_v23 = vld [vmem:[%s9859_s15 + $0x20] sm:$0xff] }
 0x5b4   : > { %v3185_v26 = vadd.f32 %v3184_v47, %v3150_v15  ;;  %v3703_v47 = vld [vmem:[#allocation3 + $0x2] sm:$0xff] }
 0x5b5   : > { %v3712_v21 = vpack.c.bf16 %v3704_v32, %v3703_v47 }
 0x5b6   : > { %v3337_v56 = vmax.f32 %v3185_v26, %v3323_v1  ;;  %v3291_v54 = vpop.f32.mrf.mxu0 }
 0x5b7   : > { %v3385_v35 = vld [vmem:[#allocation3 + $0x29] sm:$0xff]  ;;  %v3326_v14 = vadd.f32 %v3325_v62, %v3291_v54  ;;  %v3189_v28 = vpop.f32.mrf.mxu3  ;;  %4306 = vmatpush.bf16.msrb.mxu2 %v7231_v7 }
 0x5b8   : > { %3347 = vst [vmem:[#allocation3 + $0x38] sm:$0xff] %v3337_v56  ;;  %v3391_v5 = vpack.c.bf16 %v3385_v35, %v3384_v45  ;;  %v3362_v49 = vpack.c.bf16 %v3337_v56, %v3336_v18  ;;  %v6402_v18 = vor.u32 %v7184_v30, %v6399_v51  ;;  %v3708_v36 = vld [vmem:[#allocation3 + $0x2a] sm:$0xff]  ;;  %v7228_v51 = vld [vmem:[%s9858_s14 + $0x60] sm:$0xff] }
 0x5b9   : > { %v3714_v1 = vpack.c.bf16 %v3708_v36, %v3707_v63  ;;  %v7237_v30 = vld [vmem:[%s9859_s15 + $0x28] sm:$0xff] }
 0x5ba   : > { %3509 = vmatmul.bf16.gmra.mxu2 %v3391_v5  ;;  %3542 = vmatmul.bf16.gmra.mxu3 %v3391_v5  ;;  %v7225_v36 = vld [vmem:[%s9858_s14 + $0x48] sm:$0xff] }
 0x5bb   : > { %v3153_v61 = vpop.f32.mrf.mxu2  ;;  %3660 = vmatmul.bf16.gmra.mxu0 %v3362_v49  ;;  %3693 = vmatmul.bf16.gmra.mxu1 %v3362_v49  ;;  %v7233_v63 = vld [vmem:[%s9859_s15 + $0x8] sm:$0xff] }
 0x5bc   : > { %v3188_v16 = vadd.f32 %v3187_v25, %v3153_v61  ;;  %3854 = vmatpush.bf16.msra.mxu3 %v6402_v18  ;;  %4307 = vmatpush.bf16.msrb.mxu2 %v7230_v3 }
 0x5be   : > { %v3338_v44 = vmax.f32 %v3188_v16, %v3326_v14  ;;  %v3293_v55 = vpop.f32.mrf.mxu0 }
 0x5bf   : > { %v3328_v22 = vadd.f32 %v3327_v57, %v3293_v55  ;;  %v3386_v48 = vld [vmem:[#allocation3 + $0x31] sm:$0xff] }
 0x5c0   : > { %3348 = vst [vmem:[#allocation3 + $0x40] sm:$0xff] %v3338_v44  ;;  %v3363_v6 = vpack.c.bf16 %v3338_v44, %v3338_v44  ;;  %v3709_v56 = vld [vmem:[#allocation3 + $0x32] sm:$0xff] }
 0x5c1   : > { %v7239_v55 = vld [vmem:[%s9859_s15 + $0x38] sm:$0xff] }
 0x5c2   : > { %4467 = vmatpush.bf16.msrb.mxu3 %v7239_v55 }
 0x5c3   : > { %v3155_v42 = vpop.f32.mrf.mxu2 }
 0x5c4   : > { %v3190_v37 = vadd.f32 %v3189_v28, %v3155_v42 }
 0x5c6   : > { %v3339_v59 = vmax.f32 %v3190_v37, %v3328_v22  ;;  %4468 = vmatpush.bf16.msrb.mxu3 %v7238_v11  ;;  %v7229_v22 = vld [vmem:[%s9858_s14 + $0x68] sm:$0xff] }
 0x5c7   : > { %v3387_v24 = vld [vmem:[#allocation3 + $0x39] sm:$0xff]  ;;  %4308 = vmatpush.bf16.msrb.mxu2 %v7229_v22 }
 0x5c8   : > { %v3392_v31 = vpack.c.bf16 %v3387_v24, %v3386_v48  ;;  %3349 = vst [vmem:[#allocation3 + $0x48] sm:$0x3] %v3339_v59  ;;  %v3710_v41 = vld [vmem:[#allocation3 + $0x3a] sm:$0xff] }
 0x5c9   : > { %v3715_v45 = vpack.c.bf16 %v3710_v41, %v3709_v56 }
 0x5ca   : > { %3514 = vmatmul.bf16.gmra.mxu2 %v3392_v31  ;;  %3547 = vmatmul.bf16.gmra.mxu3 %v3392_v31 }
 0x5cb   : > { %3665 = vmatmul.bf16.gmra.mxu0 %v3363_v6  ;;  %3698 = vmatmul.bf16.gmra.mxu1 %v3363_v6 }
 0x5cc   : > { %4469 = vmatpush.bf16.msrb.mxu3 %v7237_v30  ;;  %4309 = vmatpush.bf16.msrb.mxu2 %v7228_v51 }
 0x5cf   : > { %v3388_v58 = vld [vmem:[#allocation3 + $0x41] sm:$0xff] }
 0x5d0   : > { %v3393_v12 = vpack.c.bf16 %v3388_v58, %v3388_v58  ;;  %v3711_v2 = vld [vmem:[#allocation3 + $0x42] sm:$0xff]  ;;  %4470 = vmatpush.bf16.msrb.mxu3 %v7236_v23  ;;  %v7227_v58 = vld [vmem:[%s9858_s14 + $0x58] sm:$0xff] }
 0x5d1   : > { %v3716_v61 = vpack.c.bf16 %v3711_v2, %v3711_v2  ;;  %4310 = vmatpush.bf16.msrb.mxu2 %v7227_v58  ;;  %v3898_v2 = vld [vmem:[%s9855_s11] sm:$0x3] }
 0x5da   : > { %3519 = vmatmul.bf16.gmra.mxu2 %v3393_v12  ;;  %3552 = vmatmul.bf16.gmra.mxu3 %v3393_v12  ;;  %v7235_v12 = vld [vmem:[%s9859_s15 + $0x18] sm:$0xff] }
 0x5db   : > { %4471 = vmatpush.bf16.msrb.mxu3 %v7235_v12 }
 0x5df   : > { %4472 = vmatpush.bf16.msrb.mxu3 %v7234_v9 }
 0x5e3   : > { %4473 = vmatpush.bf16.msrb.mxu3 %v7233_v63 }
 0x5ea   : > { %3822 = vmatmul.bf16.vlgmr.msra.gmra.mxu2 %v3712_v21  ;;  %3855 = vmatmul.bf16.vlgmr.msra.gmra.mxu3 %v3712_v21  ;;  %v7226_v21 = vld [vmem:[%s9858_s14 + $0x50] sm:$0xff] }
 0x5eb   : > { %4311 = vmatpush.bf16.msrb.mxu2 %v7226_v21 }
 0x5ef   : > { %4312 = vmatpush.bf16.msrb.mxu2 %v7225_v36 }
 0x5fa   : > { %3827 = vmatmul.bf16.gmra.mxu2 %v3713_v50  ;;  %3860 = vmatmul.bf16.gmra.mxu3 %v3713_v50 }
 0x607   : > { %v3646_v15 = vpop.f32.mrf.mxu0  ;;  %v3679_v26 = vpop.f32.mrf.mxu1 }
 0x60a   : > { %3832 = vmatmul.bf16.gmra.mxu2 %v3714_v1  ;;  %3865 = vmatmul.bf16.gmra.mxu3 %v3714_v1 }
 0x60f   : > { %v9072_v40 = vpop.f32.mrf.mxu0  ;;  %v9074_v46 = vpop.f32.mrf.mxu1 }
 0x618   : > { %v3651_v35 = vpop.f32.mrf.mxu0  ;;  %v3684_v54 = vpop.f32.mrf.mxu1 }
 0x61a   : > { %3837 = vmatmul.bf16.gmra.mxu2 %v3715_v45  ;;  %3870 = vmatmul.bf16.gmra.mxu3 %v3715_v45 }
 0x61d   : > { %v3500_v53 = vpop.f32.mrf.mxu2  ;;  %v3533_v5 = vpop.f32.mrf.mxu3 }
 0x61e   : > { %v9076_v62 = vadd.f32 %v3646_v15, %v3500_v53  ;;  %v9078_v49 = vadd.f32 %v3679_v26, %v3533_v5  ;;  %v7224_v15 = vld [vmem:[%s9858_s14 + $0x40] sm:$0xff] }
 0x61f   : > { %v7232_v26 = vld [vmem:[%s9859_s15] sm:$0xff]  ;;  %4313 = vmatpush.bf16.msrb.mxu2 %v7224_v15 }
 0x620   : > { %v9080_v25 = vpop.f32.mrf.mxu0  ;;  %v9082_v14 = vpop.f32.mrf.mxu1  ;;  %4474 = vmatpush.bf16.msrb.mxu3 %v7232_v26 }
 0x625   : > { %v9084_v19 = vpop.f32.mrf.mxu2  ;;  %v9086_v38 = vpop.f32.mrf.mxu3 }
 0x628   : > { %v3656_v52 = vpop.f32.mrf.mxu0  ;;  %v3689_v29 = vpop.f32.mrf.mxu1 }
 0x62a   : > { %3842 = vmatmul.bf16.gmra.mxu2 %v3716_v61  ;;  %3875 = vmatmul.bf16.gmra.mxu3 %v3716_v61 }
 0x62d   : > { %v3505_v43 = vpop.f32.mrf.mxu2  ;;  %v3538_v39 = vpop.f32.mrf.mxu3 }
 0x62e   : > { %v9088_v16 = vadd.f32 %v3651_v35, %v3505_v43  ;;  %v9090_v4 = vadd.f32 %v3684_v54, %v3538_v39  ;;  %v9179_v43 = vperm.slane %v3898_v2, 1  ;;  %v3649_v39 = vadd.f32 %v9072_v40, %v9084_v19 }
 0x630   : > { %v9092_v10 = vpop.f32.mrf.mxu0  ;;  %v9094_v0 = vpop.f32.mrf.mxu1 }
 0x635   : > { %v9096_v8 = vpop.f32.mrf.mxu2  ;;  %v9098_v44 = vpop.f32.mrf.mxu3 }
 0x638   : > { %v3661_v13 = vpop.f32.mrf.mxu0  ;;  %v3694_v17 = vpop.f32.mrf.mxu1 }
 0x63d   : > { %v3510_v20 = vpop.f32.mrf.mxu2  ;;  %v3543_v33 = vpop.f32.mrf.mxu3 }
 0x63e   : > { %v9106_v27 = vadd.f32 %v3656_v52, %v3510_v20  ;;  %v9108_v57 = vadd.f32 %v3689_v29, %v3543_v33  ;;  %v9176_v52 = vperm.slane %v3898_v2, 0 }
 0x640   : > { %v9116_v42 = vpop.f32.mrf.mxu0  ;;  %v9118_v28 = vpop.f32.mrf.mxu1 }
 0x645   : > { %v9120_v60 = vpop.f32.mrf.mxu2  ;;  %v9122_v37 = vpop.f32.mrf.mxu3 }
 0x648   : > { %v3666_v59 = vpop.f32.mrf.mxu0  ;;  %v3699_v48 = vpop.f32.mrf.mxu1 }
 0x64d   : > { %v3515_v24 = vpop.f32.mrf.mxu2  ;;  %v3548_v18 = vpop.f32.mrf.mxu3 }
 0x64e   : > { %v9136_v31 = vadd.f32 %v3661_v13, %v3515_v24  ;;  %v9138_v6 = vadd.f32 %v3694_v17, %v3548_v18  ;;  %v3682_v13 = vadd.f32 %v9074_v46, %v9086_v38  ;;  %v3687_v24 = vadd.f32 %v9082_v14, %v9098_v44 }
 0x650   : > { %v3668_v32 = vpop.f32.mrf.mxu0  ;;  %v3701_v47 = vpop.f32.mrf.mxu1 }
 0x655   : > { %v9152_v34 = vpop.f32.mrf.mxu2  ;;  %v9154_v50 = vpop.f32.mrf.mxu3 }
 0x65d   : > { %v3520_v1 = vpop.f32.mrf.mxu2  ;;  %v3553_v41 = vpop.f32.mrf.mxu3 }
 0x65e   : > { %v9168_v56 = vadd.f32 %v3666_v59, %v3520_v1  ;;  %v9170_v45 = vadd.f32 %v3699_v48, %v3553_v41  ;;  %v3654_v48 = vadd.f32 %v9080_v25, %v9096_v8  ;;  %v3659_v41 = vadd.f32 %v9092_v10, %v9120_v60 }
 0x665   : > { %v3522_v35 = vpop.f32.mrf.mxu2  ;;  %v3555_v54 = vpop.f32.mrf.mxu3 }
 0x666   : > { %v3692_v35 = vadd.f32 %v9094_v0, %v9122_v37 }
 0x66d   : > { %v3823_v53 = vpop.f32.mrf.mxu2  ;;  %v3856_v5 = vpop.f32.mrf.mxu3 }
 0x66e   : > { %v3880_v61 = vadd.f32 %v3823_v53, %v9076_v62  ;;  %v3881_v29 = vadd.f32 %v3856_v5, %v9078_v49 }
 0x670   : > { %v3904_v33 = vadd.f32 %v9176_v52, %v3880_v61  ;;  %v3905_v7 = vadd.f32 %v9179_v43, %v3881_v29 }
 0x672   : > { %v3922_v11 = vmax.f32 %v3904_v33, 0.0  ;;  %v3923_v22 = vmax.f32 %v3905_v7, 0.0 }
 0x675   : > { %v3825_v17 = vpop.f32.mrf.mxu2  ;;  %v3858_v20 = vpop.f32.mrf.mxu3 }
 0x676   : > { %v3882_v55 = vadd.f32 %v3825_v17, %v3649_v39  ;;  %v3883_v62 = vadd.f32 %v3858_v20, %v3682_v13 }
 0x678   : > { %v3906_v3 = vadd.f32 %v9176_v52, %v3882_v55  ;;  %v3907_v49 = vadd.f32 %v9179_v43, %v3883_v62  ;;  %v3664_v55 = vadd.f32 %v9116_v42, %v9152_v34  ;;  %v3697_v62 = vadd.f32 %v9118_v28, %v9154_v50 }
 0x67a   : > { %v3924_v30 = vmax.f32 %v3906_v3, 0.0  ;;  %v3925_v51 = vmax.f32 %v3907_v49, 0.0 }
 0x67c   : > { %v9189_v40 = vpack.c.bf16 %v3924_v30, %v3922_v11  ;;  %v9191_v19 = vpack.c.bf16 %v3925_v51, %v3923_v22 }
 0x67d   : > { %v3828_v46 = vpop.f32.mrf.mxu2  ;;  %v3861_v38 = vpop.f32.mrf.mxu3 }
 0x67e   : > { %4314 = vmatmul.bf16.vlgmr.msrb.gmra.mxu2 %v9191_v19  ;;  %4475 = vmatmul.bf16.vlgmr.msrb.gmra.mxu3 %v9189_v40  ;;  %v3884_v23 = vadd.f32 %v3828_v46, %v9088_v16  ;;  %v3885_v59 = vadd.f32 %v3861_v38, %v9090_v4 }
 0x680   : > { %v3908_v12 = vadd.f32 %v9176_v52, %v3884_v23  ;;  %v3909_v32 = vadd.f32 %v9179_v43, %v3885_v59 }
 0x682   : > { %v3926_v36 = vmax.f32 %v3908_v12, 0.0  ;;  %v3927_v4 = vmax.f32 %v3909_v32, 0.0 }
 0x685   : > { %v3830_v18 = vpop.f32.mrf.mxu2  ;;  %v3863_v58 = vpop.f32.mrf.mxu3 }
 0x686   : > { %v3886_v47 = vadd.f32 %v3830_v18, %v3654_v48  ;;  %v3887_v21 = vadd.f32 %v3863_v58, %v3687_v24 }
 0x688   : > { %v3910_v9 = vadd.f32 %v9176_v52, %v3886_v47  ;;  %v3911_v16 = vadd.f32 %v9179_v43, %v3887_v21 }
 0x68a   : > { %v3928_v63 = vmax.f32 %v3910_v9, 0.0  ;;  %v3929_v15 = vmax.f32 %v3911_v16, 0.0  ;;  %v7207_v16 = vld [vmem:[%s9857_s13 + $0x38] sm:$0xff] }
 0x68b   : > { %4118 = vmatpush.bf16.msrb.mxu1 %v7207_v16 }
 0x68c   : > { %v9205_v25 = vpack.c.bf16 %v3929_v15, %v3927_v4  ;;  %v9207_v8 = vpack.c.bf16 %v3928_v63, %v3926_v36  ;;  %v7206_v63 = vld [vmem:[%s9857_s13 + $0x30] sm:$0xff]  ;;  %v7205_v15 = vld [vmem:[%s9857_s13 + $0x28] sm:$0xff] }
 0x68d   : > { %v3833_v14 = vpop.f32.mrf.mxu2  ;;  %v3866_v44 = vpop.f32.mrf.mxu3 }
 0x68e   : > { %4319 = vmatmul.bf16.gmra.mxu2 %v9205_v25  ;;  %4480 = vmatmul.bf16.gmra.mxu3 %v9207_v8  ;;  %v3888_v26 = vadd.f32 %v3833_v14, %v9106_v27  ;;  %v3889_v1 = vadd.f32 %v3866_v44, %v9108_v57 }
 0x68f   : > { %4119 = vmatpush.bf16.msrb.mxu1 %v7206_v63 }
 0x690   : > { %v3912_v5 = vadd.f32 %v9176_v52, %v3888_v26  ;;  %v3913_v2 = vadd.f32 %v9179_v43, %v3889_v1  ;;  %v7204_v26 = vld [vmem:[%s9857_s13 + $0x20] sm:$0xff]  ;;  %v7215_v1 = vld [vmem:[%s9857_s13 + $0x78] sm:$0xff] }
 0x692   : > { %v3930_v13 = vmax.f32 %v3912_v5, 0.0  ;;  %v3931_v57 = vmax.f32 %v3913_v2, 0.0  ;;  %v7214_v5 = vld [vmem:[%s9857_s13 + $0x70] sm:$0xff]  ;;  %v7201_v2 = vld [vmem:[%s9857_s13 + $0x8] sm:$0xff] }
 0x693   : > { %4120 = vmatpush.bf16.msrb.mxu1 %v7205_v15 }
 0x695   : > { %v3835_v54 = vpop.f32.mrf.mxu2  ;;  %v3868_v53 = vpop.f32.mrf.mxu3 }
 0x696   : > { %v3890_v61 = vadd.f32 %v3835_v54, %v3659_v41  ;;  %v3891_v29 = vadd.f32 %v3868_v53, %v3692_v35  ;;  %v7203_v41 = vld [vmem:[%s9857_s13 + $0x18] sm:$0xff]  ;;  %v7202_v53 = vld [vmem:[%s9857_s13 + $0x10] sm:$0xff] }
 0x697   : > { %4121 = vmatpush.bf16.msrb.mxu1 %v7204_v26 }
 0x698   : > { %v3914_v39 = vadd.f32 %v9176_v52, %v3890_v61  ;;  %v3915_v27 = vadd.f32 %v9179_v43, %v3891_v29  ;;  %v7213_v61 = vld [vmem:[%s9857_s13 + $0x68] sm:$0xff] }
 0x69a   : > { %v3932_v17 = vmax.f32 %v3914_v39, 0.0  ;;  %v3933_v20 = vmax.f32 %v3915_v27, 0.0  ;;  %v7200_v27 = vld [vmem:[%s9857_s13] sm:$0xff] }
 0x69b   : > { %4122 = vmatpush.bf16.msrb.mxu1 %v7203_v41 }
 0x69c   : > { %v9221_v10 = vpack.c.bf16 %v3933_v20, %v3931_v57  ;;  %v9223_v60 = vpack.c.bf16 %v3932_v17, %v3930_v13  ;;  %v7212_v13 = vld [vmem:[%s9857_s13 + $0x60] sm:$0xff]  ;;  %v7223_v57 = vld [vmem:[%s9858_s14 + $0x38] sm:$0xff]  ;;  %v7222_v20 = vld [vmem:[%s9858_s14 + $0x30] sm:$0xff] }
 0x69d   : > { %v3838_v0 = vpop.f32.mrf.mxu2  ;;  %v3871_v37 = vpop.f32.mrf.mxu3  ;;  %v7211_v17 = vld [vmem:[%s9857_s13 + $0x58] sm:$0xff] }
 0x69e   : > { %4324 = vmatmul.bf16.gmra.mxu2 %v9221_v10  ;;  %4485 = vmatmul.bf16.gmra.mxu3 %v9223_v60  ;;  %v3892_v33 = vadd.f32 %v3838_v0, %v9136_v31  ;;  %v3893_v7 = vadd.f32 %v3871_v37, %v9138_v6 }
 0x69f   : > { %4123 = vmatpush.bf16.msrb.mxu1 %v7202_v53 }
 0x6a0   : > { %v3916_v11 = vadd.f32 %v9176_v52, %v3892_v33  ;;  %v3917_v22 = vadd.f32 %v9179_v43, %v3893_v7  ;;  %v7210_v33 = vld [vmem:[%s9857_s13 + $0x50] sm:$0xff]  ;;  %v7221_v7 = vld [vmem:[%s9858_s14 + $0x28] sm:$0xff] }
 0x6a2   : > { %v3934_v38 = vmax.f32 %v3916_v11, 0.0  ;;  %v3935_v6 = vmax.f32 %v3917_v22, 0.0  ;;  %v7208_v11 = vld [vmem:[%s9857_s13 + $0x40] sm:$0xff]  ;;  %v7219_v22 = vld [vmem:[%s9858_s14 + $0x18] sm:$0xff] }
 0x6a3   : > { %4124 = vmatpush.bf16.msrb.mxu1 %v7201_v2 }
 0x6a5   : > { %v3840_v3 = vpop.f32.mrf.mxu2  ;;  %v3873_v49 = vpop.f32.mrf.mxu3 }
 0x6a6   : > { %v3894_v30 = vadd.f32 %v3840_v3, %v3664_v55  ;;  %v3895_v51 = vadd.f32 %v3873_v49, %v3697_v62  ;;  %v7209_v55 = vld [vmem:[%s9857_s13 + $0x48] sm:$0xff]  ;;  %v7220_v62 = vld [vmem:[%s9858_s14 + $0x20] sm:$0xff] }
 0x6a7   : > { %4125 = vmatpush.bf16.msrb.mxu1 %v7200_v27 }
 0x6a8   : > { %v3918_v46 = vadd.f32 %v9176_v52, %v3894_v30  ;;  %v3919_v31 = vadd.f32 %v9179_v43, %v3895_v51  ;;  %v7247_v30 = vld [vmem:[%s9859_s15 + $0x78] sm:$0xff]  ;;  %v7218_v51 = vld [vmem:[%s9858_s14 + $0x10] sm:$0xff] }
 0x6aa   : > { %v3936_v23 = vmax.f32 %v3918_v46, 0.0  ;;  %v3937_v59 = vmax.f32 %v3919_v31, 0.0  ;;  %v7246_v46 = vld [vmem:[%s9859_s15 + $0x70] sm:$0xff] }
 0x6ab   : > { %4273 = vmatpush.bf16.msra.mxu1 %v7223_v57 }
 0x6ac   : > { %v9237_v42 = vpack.c.bf16 %v3937_v59, %v3935_v6  ;;  %v9239_v34 = vpack.c.bf16 %v3936_v23, %v3934_v38  ;;  %v7217_v6 = vld [vmem:[%s9858_s14 + $0x8] sm:$0xff]  ;;  %v7216_v59 = vld [vmem:[%s9858_s14] sm:$0xff] }
 0x6ad   : > { %v3843_v28 = vpop.f32.mrf.mxu2  ;;  %v3876_v50 = vpop.f32.mrf.mxu3  ;;  %v7245_v23 = vld [vmem:[%s9859_s15 + $0x68] sm:$0xff] }
 0x6ae   : > { %v3896_v48 = vadd.f32 %v3843_v28, %v9168_v56  ;;  %v3897_v24 = vadd.f32 %v3876_v50, %v9170_v45  ;;  %4329 = vmatmul.bf16.gmra.mxu2 %v9237_v42  ;;  %4490 = vmatmul.bf16.gmra.mxu3 %v9239_v34 }
 0x6af   : > { %4274 = vmatpush.bf16.msra.mxu1 %v7222_v20 }
 0x6b0   : > { %v3920_v18 = vadd.f32 %v9176_v52, %v3896_v48  ;;  %v3921_v58 = vadd.f32 %v9179_v43, %v3897_v24  ;;  %v3950_v43 = vld [vmem:[%s9856_s12] sm:$0x3]  ;;  %v7243_v24 = vld [vmem:[%s9859_s15 + $0x58] sm:$0xff] }
 0x6b1   : > { %v7244_v48 = vld [vmem:[%s9859_s15 + $0x60] sm:$0xff] }
 0x6b2   : > { %v3938_v12 = vmax.f32 %v3920_v18, 0.0  ;;  %v3939_v56 = vmax.f32 %v3921_v58, 0.0  ;;  %v7242_v18 = vld [vmem:[%s9859_s15 + $0x50] sm:$0xff] }
 0x6b3   : > { %4275 = vmatpush.bf16.msra.mxu1 %v7221_v7 }
 0x6b4   : > { %v9247_v32 = vpack.c.bf16 %v3938_v12, %v3938_v12  ;;  %v9252_v45 = vpack.c.bf16 %v3939_v56, %v3939_v56 }
 0x6b5   : > { %v3845_v47 = vpop.f32.mrf.mxu2  ;;  %v3878_v21 = vpop.f32.mrf.mxu3 }
 0x6b6   : > { %v3957_v9 = vsel %vm3955_vm3, %v9247_v32, 0  ;;  %v3960_v52 = vsel %vm3955_vm3, %v9252_v45, 0  ;;  %v7241_v47 = vld [vmem:[%s9859_s15 + $0x48] sm:$0xff] }
 0x6b7   : > { %3965 = vmatpush.bf16.msra.mxu0 %v3957_v9  ;;  %4276 = vmatpush.bf16.msra.mxu1 %v7220_v62  ;;  %v7240_v9 = vld [vmem:[%s9859_s15 + $0x40] sm:$0xff] }
 0x6bb   : > { %3966 = vmatpush.bf16.msra.mxu0 %v9239_v34  ;;  %4277 = vmatpush.bf16.msra.mxu1 %v7219_v22 }
 0x6be   : > { %4334 = vmatmul.bf16.gmra.mxu2 %v9252_v45  ;;  %4495 = vmatmul.bf16.gmra.mxu3 %v9247_v32 }
 0x6bf   : > { %3967 = vmatpush.bf16.msra.mxu0 %v9223_v60  ;;  %4278 = vmatpush.bf16.msra.mxu1 %v7218_v51 }
 0x6c3   : > { %3968 = vmatpush.bf16.msra.mxu0 %v9207_v8  ;;  %4279 = vmatpush.bf16.msra.mxu1 %v7217_v6 }
 0x6c7   : > { %3969 = vmatpush.bf16.msra.mxu0 %v9189_v40  ;;  %4280 = vmatpush.bf16.msra.mxu1 %v7216_v59 }
 0x6ca   : > { %6459 = vmatmul.msk.bf16.vlgmr.msra.gmra.mxu0 %vm3951_vm4, %v3950_v43 }
 0x6cb   : > { %3978 = vmatpush.bf16.msrb.mxu0 %v3960_v52 }
 0x6cf   : > { %3979 = vmatpush.bf16.msrb.mxu0 %v9237_v42 }
 0x6d3   : > { %3980 = vmatpush.bf16.msrb.mxu0 %v9221_v10 }
 0x6d7   : > { %3981 = vmatpush.bf16.msrb.mxu0 %v9205_v25 }
 0x6db   : > { %3982 = vmatpush.bf16.msrb.mxu0 %v9191_v19 }
 0x6de   : > { %6460 = vmatmul.msk.bf16.vlgmr.msrb.gmra.mxu0 %vm3951_vm4, %v3950_v43 }
 0x6df   : > { %4131 = vmatpush.bf16.msra.mxu0 %v7215_v1 }
 0x6e3   : > { %4132 = vmatpush.bf16.msra.mxu0 %v7214_v5 }
 0x6e7   : > { %4133 = vmatpush.bf16.msra.mxu0 %v7213_v61 }
 0x6eb   : > { %4134 = vmatpush.bf16.msra.mxu0 %v7212_v13 }
 0x6ef   : > { %4135 = vmatpush.bf16.msra.mxu0 %v7211_v17 }
 0x6f3   : > { %4136 = vmatpush.bf16.msra.mxu0 %v7210_v33 }
 0x6f7   : > { %4137 = vmatpush.bf16.msra.mxu0 %v7209_v55 }
 0x6fb   : > { %4138 = vmatpush.bf16.msra.mxu0 %v7208_v11 }
 0x6ff   : > { %4500 = vmatpush.bf16.msrb.mxu0 %v7247_v30 }
 0x701   : > { %v9273_v36 = vpop.f32.mrf.mxu2  ;;  %v9275_v4 = vpop.f32.mrf.mxu3 }
 0x703   : > { %4501 = vmatpush.bf16.msrb.mxu0 %v7246_v46 }
 0x707   : > { %4502 = vmatpush.bf16.msrb.mxu0 %v7245_v23 }
 0x709   : > { %v9283_v14 = vpop.f32.mrf.mxu2  ;;  %v9285_v44 = vpop.f32.mrf.mxu3 }
 0x70b   : > { %4503 = vmatpush.bf16.msrb.mxu0 %v7244_v48 }
 0x70f   : > { %4504 = vmatpush.bf16.msrb.mxu0 %v7243_v24 }
 0x711   : > { %v9296_v35 = vpop.f32.mrf.mxu2  ;;  %v9298_v54 = vpop.f32.mrf.mxu3 }
 0x713   : > { %4505 = vmatpush.bf16.msrb.mxu0 %v7242_v18 }
 0x717   : > { %4506 = vmatpush.bf16.msrb.mxu0 %v7241_v47 }
 0x719   : > { %v9312_v29 = vpop.f32.mrf.mxu2  ;;  %v9314_v39 = vpop.f32.mrf.mxu3 }
 0x71b   : > { %4507 = vmatpush.bf16.msrb.mxu0 %v7240_v9 }
 0x721   : > { %v9331_v0 = vpop.f32.mrf.mxu2  ;;  %v9333_v37 = vpop.f32.mrf.mxu3 }
 0x729   : > { %v9347_v3 = vpop.f32.mrf.mxu2  ;;  %v9349_v49 = vpop.f32.mrf.mxu3 }
 0x731   : > { %v9366_v31 = vpop.f32.mrf.mxu2  ;;  %v9368_v38 = vpop.f32.mrf.mxu3 }
 0x739   : > { %v9379_v28 = vpop.f32.mrf.mxu2  ;;  %v9381_v50 = vpop.f32.mrf.mxu3 }
 0x741   : > { %v9392_v58 = vpop.f32.mrf.mxu2  ;;  %v9394_v12 = vpop.f32.mrf.mxu3 }
 0x747   : > { %v3971_v21 = vpop.f32.mrf.mxu0 }
 0x748   : > { %v3988_v56 = vpack.c.bf16 %v3971_v21, %v3971_v21 }
 0x749   : > { %v4337_v52 = vpop.f32.mrf.mxu2  ;;  %v4498_v43 = vpop.f32.mrf.mxu3 }
 0x74a   : > { %4126 = vmatmul.bf16.vlgmr.msrb.gmra.mxu1 %v3988_v56 }
 0x74f   : > { %v3973_v16 = vpop.f32.mrf.mxu0 }
 0x75a   : > { %4281 = vmatmul.bf16.vlgmr.msra.gmra.mxu1 %v9189_v40 }
 0x75b   : > { %v3984_v63 = vpop.f32.mrf.mxu0 }
 0x75c   : > { %v3989_v15 = vpack.c.bf16 %v3984_v63, %v3984_v63 }
 0x75e   : > { %4139 = vmatmul.bf16.vlgmr.msra.gmra.mxu0 %v3989_v15 }
 0x763   : > { %v3986_v26 = vpop.f32.mrf.mxu0 }
 0x76a   : > { %4286 = vmatmul.bf16.gmra.mxu1 %v9207_v8 }
 0x76e   : > { %4508 = vmatmul.bf16.vlgmr.msrb.gmra.mxu0 %v9191_v19  ;;  %v9932_v19 = vld [vmem:[#allocation10_spill] sm:$0xff] }
 0x76f   : > { %v2554_v5 = vmul.f32 0.0009765625, %v9932_v19  ;;  %v6678_v19 = vld [vmem:[%s9861_s17 + $0x10] sm:$0xf] }
 0x77a   : > { %4291 = vmatmul.bf16.gmra.mxu1 %v9223_v60 }
 0x77e   : > { %4513 = vmatmul.bf16.gmra.mxu0 %v9205_v25 }
 0x78a   : > { %4296 = vmatmul.bf16.gmra.mxu1 %v9239_v34 }
 0x78e   : > { %4518 = vmatmul.bf16.gmra.mxu0 %v9221_v10 }
 0x79a   : > { %4301 = vmatmul.bf16.gmra.mxu1 %v9247_v32 }
 0x79e   : > { %4523 = vmatmul.bf16.gmra.mxu0 %v9237_v42 }
 0x7ae   : > { %4528 = vmatmul.bf16.gmra.mxu0 %v9252_v45 }
 0x7c7   : > { %v4127_v40 = vpop.f32.mrf.mxu1 }
 0x7cf   : > { %v4129_v1 = vpop.f32.mrf.mxu1 }
 0x7d7   : > { %v4282_v41 = vpop.f32.mrf.mxu1 }
 0x7d8   : > { %v4316_v32 = vadd.f32 %v9273_v36, %v4282_v41 }
 0x7db   : > { %v4140_v8 = vpop.f32.mrf.mxu0 }
 0x7dc   : > { %v4141_v53 = vadd.f32 %v4140_v8, %v4127_v40  ;;  %v7252_v8 = vld [vmem:[%s9861_s17 + $0x8] sm:$0xff] }
 0x7de   : > { %v4144_v60 = vmul.f32 0.00390625, %v4141_v53  ;;  %v7249_v53 = vld [vmem:[%s9860_s16 + $0x8] sm:$0xff] }
 0x7df   : > { %v4284_v25 = vpop.f32.mrf.mxu1 }
 0x7e0   : > { %v9413_v2 = vadd.f32 %v4144_v60, %v2554_v5  ;;  %v4318_v57 = vadd.f32 %v9283_v14, %v4284_v25  ;;  %v7253_v5 = vld [vmem:[%s9861_s17 + $0x10] sm:$0x10]  ;;  %v6663_v60 = vld [vmem:[%s9860_s16 + $0x10] sm:$0xf] }
 0x7e1   : > { %v7250_v25 = vld [vmem:[%s9860_s16 + $0x10] sm:$0x10] }
 0x7e3   : > { %v4142_v34 = vpop.f32.mrf.mxu0 }
 0x7e4   : > { %v6679_v34 = vor.u32 %v7253_v5, %v6678_v19  ;;  %v6733_v19 = vld [vmem:[%s9862_s18 + $0xc0] sm:$0xf]  ;;  %v7279_v5 = vld [vmem:[%s9862_s18 + $0xc4] sm:$0xf0] }
 0x7e7   : > { %v4287_v61 = vpop.f32.mrf.mxu1 }
 0x7e8   : > { %v4321_v30 = vadd.f32 %v9296_v35, %v4287_v61  ;;  %v6664_v61 = vor.u32 %v7250_v25, %v6663_v60  ;;  %v7278_v60 = vld [vmem:[%s9862_s18 + $0xc4] sm:$0xf]  ;;  %v6734_v25 = vor.u32 %v7279_v5, %v6733_v19  ;;  %v7295_v19 = vld [vmem:[%s9862_s18 + $0x144] sm:$0xf0]  ;;  %v7296_v5 = vld [vmem:[%s9862_s18 + $0x154] sm:$0xf] }
 0x7eb   : > { %v4509_v10 = vpop.f32.mrf.mxu0 }
 0x7ec   : > { %v4510_v42 = vadd.f32 %v4509_v10, %v9275_v4  ;;  %v6821_v10 = vld [vmem:[%s9862_s18 + $0x70] sm:$0xf] }
 0x7ee   : > { %v4533_v27 = vmax.f32 %v4316_v32, %v4510_v42  ;;  %v7269_v32 = vld [vmem:[%s9862_s18 + $0x74] sm:$0xf0]  ;;  %v7268_v42 = vld [vmem:[%s9862_s18 + $0x74] sm:$0xf] }
 0x7ef   : > { %v4289_v45 = vpop.f32.mrf.mxu1 }
 0x7f0   : > { %v4323_v36 = vadd.f32 %v9312_v29, %v4289_v45  ;;  %v6823_v45 = vld [vmem:[%s9862_s18 + $0x78] sm:$0xf0] }
 0x7f3   : > { %v4511_v13 = vpop.f32.mrf.mxu0 }
 0x7f4   : > { %v4512_v17 = vadd.f32 %v4511_v13, %v9285_v44  ;;  %v6826_v13 = vor.u32 %v7268_v42, %v6823_v45  ;;  %v6765_v42 = vld [vmem:[%s9862_s18] sm:$0xf]  ;;  %v7254_v45 = vld [vmem:[%s9862_s18 + $0x4] sm:$0xf] }
 0x7f6   : > { %v4534_v20 = vmax.f32 %v4318_v57, %v4512_v17  ;;  %v6813_v57 = vld [vmem:[%s9862_s18 + $0x60] sm:$0xf]  ;;  %v7267_v17 = vld [vmem:[%s9862_s18 + $0x64] sm:$0xf0] }
 0x7f7   : > { %v4292_v7 = vpop.f32.mrf.mxu1 }
 0x7f8   : > { %v4542_v33 = vpack.c.bf16 %v4534_v20, %v4533_v27  ;;  %v6822_v27 = vor.u32 %v7269_v32, %v6821_v10  ;;  %v7266_v20 = vld [vmem:[%s9862_s18 + $0x64] sm:$0xf]  ;;  %v6735_v10 = vld [vmem:[%s9862_s18 + $0xc8] sm:$0xf0] }
 0x7f9   : > { %v6738_v32 = vor.u32 %v7278_v60, %v6735_v10  ;;  %v6887_v60 = vld [vmem:[%s9862_s18 + $0x158] sm:$0xf0] }
 0x7fb   : > { %v4514_v55 = vpop.f32.mrf.mxu0 }
 0x7fc   : > { %v4515_v62 = vadd.f32 %v4514_v55, %v9298_v54 }
 0x7fe   : > { %v4535_v51 = vmax.f32 %v4321_v30, %v4515_v62  ;;  %v6805_v62 = vld [vmem:[%s9862_s18 + $0x50] sm:$0xf] }
 0x7ff   : > { %v4294_v11 = vpop.f32.mrf.mxu1 }
 0x800   : > { %v4328_v26 = vadd.f32 %v9347_v3, %v4294_v11  ;;  %v7248_v3 = vld [vmem:[%s9860_s16] sm:$0xff]  ;;  %v7265_v11 = vld [vmem:[%s9862_s18 + $0x54] sm:$0xf0] }
 0x801   : > { %v6806_v30 = vor.u32 %v7265_v11, %v6805_v62  ;;  %v6717_v62 = vld [vmem:[%s9862_s18 + $0xa0] sm:$0xf]  ;;  %v7275_v11 = vld [vmem:[%s9862_s18 + $0xa4] sm:$0xf0] }
 0x803   : > { %v4516_v22 = vpop.f32.mrf.mxu0 }
 0x804   : > { %v4517_v4 = vadd.f32 %v4516_v22, %v9314_v39  ;;  %v7264_v22 = vld [vmem:[%s9862_s18 + $0x54] sm:$0xf] }
 0x806   : > { %v4536_v46 = vmax.f32 %v4323_v36, %v4517_v4  ;;  %v6807_v36 = vld [vmem:[%s9862_s18 + $0x58] sm:$0xf0] }
 0x807   : > { %v4297_v14 = vpop.f32.mrf.mxu1  ;;  %v6810_v4 = vor.u32 %v7264_v22, %v6807_v36  ;;  %v7274_v22 = vld [vmem:[%s9862_s18 + $0xa4] sm:$0xf]  ;;  %v6709_v36 = vld [vmem:[%s9862_s18 + $0x90] sm:$0xf] }
 0x808   : > { %v4543_v6 = vpack.c.bf16 %v4536_v46, %v4535_v51  ;;  %v4331_v43 = vadd.f32 %v9366_v31, %v4297_v14  ;;  %v6797_v51 = vld [vmem:[%s9862_s18 + $0x40] sm:$0xf]  ;;  %v7263_v46 = vld [vmem:[%s9862_s18 + $0x44] sm:$0xf0] }
 0x809   : > { %v6798_v14 = vor.u32 %v7263_v46, %v6797_v51  ;;  %v6719_v51 = vld [vmem:[%s9862_s18 + $0xa8] sm:$0xf0] }
 0x80a   : > { %v6722_v46 = vor.u32 %v7274_v22, %v6719_v51  ;;  %v7292_v22 = vld [vmem:[%s9862_s18 + $0x134] sm:$0xf] }
 0x80b   : > { %v4519_v23 = vpop.f32.mrf.mxu0 }
 0x80f   : > { %v4299_v44 = vpop.f32.mrf.mxu1 }
 0x810   : > { %v4333_v39 = vadd.f32 %v9379_v28, %v4299_v44  ;;  %v4326_v28 = vadd.f32 %v9331_v0, %v4292_v7  ;;  %v6757_v0 = vld [vmem:[%s9862_s18 + $0xf0] sm:$0xf]  ;;  %v6815_v7 = vld [vmem:[%s9862_s18 + $0x68] sm:$0xf0] }
 0x811   : > { %v6818_v55 = vor.u32 %v7266_v20, %v6815_v7  ;;  %v7276_v20 = vld [vmem:[%s9862_s18 + $0xb4] sm:$0xf] }
 0x813   : > { %v4521_v59 = vpop.f32.mrf.mxu0 }
 0x814   : > { %v4522_v16 = vadd.f32 %v4521_v59, %v9349_v49  ;;  %v7285_v49 = vld [vmem:[%s9862_s18 + $0xf4] sm:$0xf0]  ;;  %v7284_v59 = vld [vmem:[%s9862_s18 + $0xf4] sm:$0xf] }
 0x815   : > { %v6758_v41 = vor.u32 %v7285_v49, %v6757_v0  ;;  %v7257_v0 = vld [vmem:[%s9862_s18 + $0x14] sm:$0xf0]  ;;  %v7256_v49 = vld [vmem:[%s9862_s18 + $0x14] sm:$0xf] }
 0x817   : > { %v4302_v48 = vpop.f32.mrf.mxu1  ;;  %4799 = vmatpush.bf16.msra.mxu3 %v6758_v41  ;;  %v6775_v41 = vld [vmem:[%s9862_s18 + $0x18] sm:$0xf0] }
 0x818   : > { %v4336_v21 = vadd.f32 %v9392_v58, %v4302_v48  ;;  %v4520_v58 = vadd.f32 %v4519_v23, %v9333_v37  ;;  %v7251_v37 = vld [vmem:[%s9861_s17] sm:$0xff]  ;;  %v6799_v23 = vld [vmem:[%s9862_s18 + $0x48] sm:$0xf0]  ;;  %v6759_v48 = vld [vmem:[%s9862_s18 + $0xf8] sm:$0xf0] }
 0x81a   : > { %v4537_v1 = vmax.f32 %v4326_v28, %v4520_v58  ;;  %v7259_v58 = vld [vmem:[%s9862_s18 + $0x24] sm:$0xf0] }
 0x81b   : > { %v4524_v24 = vpop.f32.mrf.mxu0 }
 0x81c   : > { %v4525_v56 = vadd.f32 %v4524_v24, %v9368_v38  ;;  %v6789_v24 = vld [vmem:[%s9862_s18 + $0x30] sm:$0xf] }
 0x81f   : > { %v4304_v18 = vpop.f32.mrf.mxu1 }
 0x820   : > { %v6762_v18 = vor.u32 %v7284_v59, %v6759_v48  ;;  %v6701_v48 = vld [vmem:[%s9862_s18 + $0x80] sm:$0xf] }
 0x822   : > { %4822 = vmatpush.bf16.msra.mxu0 %v6762_v18  ;;  %v7270_v18 = vld [vmem:[%s9862_s18 + $0x84] sm:$0xf] }
 0x823   : > { %v4526_v47 = vpop.f32.mrf.mxu0 }
 0x824   : > { %v4527_v29 = vadd.f32 %v4526_v47, %v9381_v50  ;;  %v4538_v50 = vmax.f32 %v4328_v26, %v4522_v16  ;;  %v7261_v47 = vld [vmem:[%s9862_s18 + $0x34] sm:$0xf0]  ;;  %v6781_v26 = vld [vmem:[%s9862_s18 + $0x20] sm:$0xf] }
 0x825   : > { %v7281_v16 = vld [vmem:[%s9862_s18 + $0xd4] sm:$0xf0]  ;;  %v6782_v28 = vor.u32 %v7259_v58, %v6781_v26  ;;  %v7299_v58 = vld [vmem:[%s9862_s18 + $0x164] sm:$0xf0] }
 0x826   : > { %v4540_v63 = vmax.f32 %v4333_v39, %v4527_v29  ;;  %v4544_v31 = vpack.c.bf16 %v4538_v50, %v4537_v1  ;;  %v7283_v39 = vld [vmem:[%s9862_s18 + $0xe4] sm:$0xf0]  ;;  %v6783_v50 = vld [vmem:[%s9862_s18 + $0x28] sm:$0xf0]  ;;  %v6743_v1 = vld [vmem:[%s9862_s18 + $0xd8] sm:$0xf0] }
 0x82b   : > { %v4529_v54 = vpop.f32.mrf.mxu0 }
 0x82c   : > { %v4530_v35 = vadd.f32 %v4529_v54, %v9394_v12  ;;  %v4539_v12 = vmax.f32 %v4331_v43, %v4525_v56  ;;  %v7260_v54 = vld [vmem:[%s9862_s18 + $0x34] sm:$0xf]  ;;  %v7282_v56 = vld [vmem:[%s9862_s18 + $0xe4] sm:$0xf]  ;;  %v6741_v43 = vld [vmem:[%s9862_s18 + $0xd0] sm:$0xf] }
 0x82e   : > { %v4541_v9 = vmax.f32 %v4336_v21, %v4530_v35  ;;  %v4545_v38 = vpack.c.bf16 %v4540_v63, %v4539_v12  ;;  %v6791_v21 = vld [vmem:[%s9862_s18 + $0x38] sm:$0xf0]  ;;  %v6790_v35 = vor.u32 %v7261_v47, %v6789_v24  ;;  %v6751_v63 = vld [vmem:[%s9862_s18 + $0xe8] sm:$0xf0]  ;;  %v7258_v12 = vld [vmem:[%s9862_s18 + $0x24] sm:$0xf] }
 0x82f   : > { %v6794_v29 = vor.u32 %v7260_v54, %v6791_v21  ;;  %v7271_v24 = vld [vmem:[%s9862_s18 + $0x84] sm:$0xf0]  ;;  %v6703_v54 = vld [vmem:[%s9862_s18 + $0x88] sm:$0xf0] }
 0x830   : > { %v4546_v52 = vpack.c.bf16 %v4541_v9, %v4541_v9  ;;  %v6749_v9 = vld [vmem:[%s9862_s18 + $0xe0] sm:$0xf]  ;;  %v6702_v47 = vor.u32 %v7271_v24, %v6701_v48  ;;  %v6706_v21 = vor.u32 %v7270_v18, %v6703_v54  ;;  %v7287_v18 = vld [vmem:[%s9862_s18 + $0x104] sm:$0xf0]  ;;  %v6855_v54 = vld [vmem:[%s9862_s18 + $0x118] sm:$0xf0] }
 0x831   : > { %v6845_v24 = vld [vmem:[%s9862_s18 + $0x100] sm:$0xf] }
 0x832   : > { %v4578_v15 = vsel %vm3955_vm3, %v4546_v52, 0  ;;  %v6750_v52 = vor.u32 %v7283_v39, %v6749_v9 }
 0x833   : > { %v4531_v40 = vpop.f32.mrf.mxu0  ;;  %4583 = vmatpush.bf16.msrb.mxu1 %v4578_v15  ;;  %4637 = vmatpush.bf16.msra.mxu2 %v4578_v15  ;;  %v6754_v15 = vor.u32 %v7282_v56, %v6751_v63  ;;  %v7301_v63 = vld [vmem:[%s9862_s18 + $0x174] sm:$0xf0] }
 0x834   : > { %4800 = vmatpush.bf16.msra.mxu3 %v6750_v52  ;;  %v6742_v40 = vor.u32 %v7281_v16, %v6741_v43  ;;  %v6901_v16 = vld [vmem:[%s9862_s18 + $0x170] sm:$0xf] }
 0x835   : > { %4823 = vmatpush.bf16.msra.mxu0 %v6754_v15  ;;  %v6893_v15 = vld [vmem:[%s9862_s18 + $0x160] sm:$0xf]  ;;  %v6902_v26 = vor.u32 %v7301_v63, %v6901_v16  ;;  %v6847_v16 = vld [vmem:[%s9862_s18 + $0x108] sm:$0xf0] }
 0x837   : > { %4584 = vmatpush.bf16.msrb.mxu1 %v4545_v38  ;;  %4638 = vmatpush.bf16.msra.mxu2 %v4545_v38  ;;  %v7280_v38 = vld [vmem:[%s9862_s18 + $0xd4] sm:$0xf] }
 0x838   : > { %4801 = vmatpush.bf16.msra.mxu3 %v6742_v40 }
 0x83b   : > { %4585 = vmatpush.bf16.msrb.mxu1 %v4544_v31  ;;  %4639 = vmatpush.bf16.msra.mxu2 %v4544_v31  ;;  %v6786_v31 = vor.u32 %v7258_v12, %v6783_v50  ;;  %v7300_v12 = vld [vmem:[%s9862_s18 + $0x174] sm:$0xf]  ;;  %v6903_v50 = vld [vmem:[%s9862_s18 + $0x178] sm:$0xf0] }
 0x83c   : > { %4802 = vmatpush.bf16.msra.mxu3 %v6734_v25  ;;  %v6890_v25 = vor.u32 %v7296_v5, %v6887_v60 }
 0x83f   : > { %4586 = vmatpush.bf16.msrb.mxu1 %v4543_v6  ;;  %4640 = vmatpush.bf16.msra.mxu2 %v4543_v6  ;;  %v7262_v6 = vld [vmem:[%s9862_s18 + $0x44] sm:$0xf] }
 0x840   : > { %v6802_v44 = vor.u32 %v7262_v6, %v6799_v23  ;;  %v6711_v23 = vld [vmem:[%s9862_s18 + $0x98] sm:$0xf0] }
 0x843   : > { %4587 = vmatpush.bf16.msrb.mxu1 %v4542_v33  ;;  %4641 = vmatpush.bf16.msra.mxu2 %v4542_v33  ;;  %v6814_v33 = vor.u32 %v7267_v17, %v6813_v57  ;;  %v6767_v17 = vld [vmem:[%s9862_s18 + $0x8] sm:$0xf0] }
 0x844   : > { %v6770_v7 = vor.u32 %v7254_v45, %v6767_v17  ;;  %v6879_v45 = vld [vmem:[%s9862_s18 + $0x148] sm:$0xf0] }
 0x846   : > { %6680 = vmatmul.msk.bf16.vlgmr.msra.gmra.mxu2 %vm3951_vm4, %v7251_v37  ;;  %6665 = vmatmul.msk.bf16.vlgmr.msrb.gmra.mxu1 %vm3951_vm4, %v7248_v3  ;;  %v6773_v37 = vld [vmem:[%s9862_s18 + $0x10] sm:$0xf]  ;;  %v6746_v3 = vor.u32 %v7280_v38, %v6743_v1 }
 0x847   : > { %4925 = vmatpush.bf16.msra.mxu1 %v6822_v27  ;;  %4948 = vmatpush.bf16.msrb.mxu2 %v6826_v13  ;;  %v7255_v27 = vld [vmem:[%s9862_s18 + $0x4] sm:$0xf0]  ;;  %v6885_v1 = vld [vmem:[%s9862_s18 + $0x150] sm:$0xf] }
 0x848   : > { %4824 = vmatpush.bf16.msra.mxu0 %v6746_v3  ;;  %v6766_v57 = vor.u32 %v7255_v27, %v6765_v42  ;;  %v7298_v3 = vld [vmem:[%s9862_s18 + $0x164] sm:$0xf] }
 0x849   : > { %v7294_v27 = vld [vmem:[%s9862_s18 + $0x144] sm:$0xf] }
 0x84b   : > { %4926 = vmatpush.bf16.msra.mxu1 %v6814_v33  ;;  %4949 = vmatpush.bf16.msrb.mxu2 %v6818_v55  ;;  %v6727_v33 = vld [vmem:[%s9862_s18 + $0xb8] sm:$0xf0] }
 0x84c   : > { %4825 = vmatpush.bf16.msra.mxu0 %v6738_v32  ;;  %v6730_v55 = vor.u32 %v7276_v20, %v6727_v33  ;;  %v6869_v20 = vld [vmem:[%s9862_s18 + $0x130] sm:$0xf]  ;;  %v7293_v33 = vld [vmem:[%s9862_s18 + $0x134] sm:$0xf0] }
 0x84f   : > { %4927 = vmatpush.bf16.msra.mxu1 %v6806_v30  ;;  %4950 = vmatpush.bf16.msrb.mxu2 %v6810_v4  ;;  %v6718_v30 = vor.u32 %v7275_v11, %v6717_v62  ;;  %v7273_v4 = vld [vmem:[%s9862_s18 + $0x94] sm:$0xf0]  ;;  %v6870_v62 = vor.u32 %v7293_v33, %v6869_v20  ;;  %v7291_v11 = vld [vmem:[%s9862_s18 + $0x124] sm:$0xf0] }
 0x850   : > { %4826 = vmatpush.bf16.msra.mxu0 %v6730_v55  ;;  %v6710_v6 = vor.u32 %v7273_v4, %v6709_v36  ;;  %v6871_v4 = vld [vmem:[%s9862_s18 + $0x138] sm:$0xf0] }
 0x853   : > { %4928 = vmatpush.bf16.msra.mxu1 %v6798_v14  ;;  %4951 = vmatpush.bf16.msrb.mxu2 %v6802_v44  ;;  %v7272_v14 = vld [vmem:[%s9862_s18 + $0x94] sm:$0xf] }
 0x854   : > { %4827 = vmatpush.bf16.msra.mxu0 %v6722_v46  ;;  %v6714_v44 = vor.u32 %v7272_v14, %v6711_v23  ;;  %v6853_v46 = vld [vmem:[%s9862_s18 + $0x110] sm:$0xf]  ;;  %v6874_v14 = vor.u32 %v7292_v22, %v6871_v4  ;;  %v7290_v23 = vld [vmem:[%s9862_s18 + $0x124] sm:$0xf] }
 0x856   : > { %6681 = vmatmul.msk.bf16.gmra.mxu2 %vm3951_vm4, %v7252_v8  ;;  %6666 = vmatmul.msk.bf16.gmra.mxu1 %vm3951_vm4, %v7249_v53  ;;  %v6774_v8 = vor.u32 %v7257_v0, %v6773_v37  ;;  %v6778_v53 = vor.u32 %v7256_v49, %v6775_v41  ;;  %v6906_v37 = vor.u32 %v7300_v12, %v6903_v50  ;;  %v6895_v0 = vld [vmem:[%s9862_s18 + $0x168] sm:$0xf0] }
 0x857   : > { %4929 = vmatpush.bf16.msra.mxu1 %v6790_v35  ;;  %4952 = vmatpush.bf16.msrb.mxu2 %v6794_v29  ;;  %v6898_v49 = vor.u32 %v7298_v3, %v6895_v0 }
 0x858   : > { %4828 = vmatpush.bf16.msra.mxu0 %v6714_v44  ;;  %v6863_v44 = vld [vmem:[%s9862_s18 + $0x128] sm:$0xf0] }
 0x85b   : > { %4930 = vmatpush.bf16.msra.mxu1 %v6782_v28  ;;  %4953 = vmatpush.bf16.msrb.mxu2 %v6786_v31  ;;  %v6894_v28 = vor.u32 %v7299_v58, %v6893_v15  ;;  %v7297_v31 = vld [vmem:[%s9862_s18 + $0x154] sm:$0xf0] }
 0x85c   : > { %4829 = vmatpush.bf16.msra.mxu0 %v6706_v21 }
 0x85f   : > { %4931 = vmatpush.bf16.msra.mxu1 %v6774_v8  ;;  %4954 = vmatpush.bf16.msrb.mxu2 %v6778_v53  ;;  %v6886_v8 = vor.u32 %v7297_v31, %v6885_v1  ;;  %v6877_v53 = vld [vmem:[%s9862_s18 + $0x140] sm:$0xf] }
 0x860   : > { %5099 = vmatpush.bf16.msrb.mxu0 %v6906_v37 }
 0x863   : > { %4932 = vmatpush.bf16.msra.mxu1 %v6766_v57  ;;  %4955 = vmatpush.bf16.msrb.mxu2 %v6770_v7  ;;  %v6882_v57 = vor.u32 %v7294_v27, %v6879_v45  ;;  %v6861_v7 = vld [vmem:[%s9862_s18 + $0x120] sm:$0xf] }
 0x864   : > { %5100 = vmatpush.bf16.msrb.mxu0 %v6898_v49  ;;  %v6862_v36 = vor.u32 %v7291_v11, %v6861_v7 }
 0x866   : > { %6682 = vmatmul.msk.bf16.gmra.mxu2 %vm3951_vm4, %v6679_v34  ;;  %6667 = vmatmul.msk.bf16.gmra.mxu1 %vm3951_vm4, %v6664_v61  ;;  %v6725_v34 = vld [vmem:[%s9862_s18 + $0xb0] sm:$0xf]  ;;  %v7277_v61 = vld [vmem:[%s9862_s18 + $0xb4] sm:$0xf0] }
 0x867   : > { %v6726_v13 = vor.u32 %v7277_v61, %v6725_v34  ;;  %v6878_v61 = vor.u32 %v7295_v19, %v6877_v53 }
 0x868   : > { %5101 = vmatpush.bf16.msrb.mxu0 %v6890_v25 }
 0x869   : > { %4803 = vmatpush.bf16.msra.mxu3 %v6726_v13 }
 0x86c   : > { %5102 = vmatpush.bf16.msrb.mxu0 %v6882_v57 }
 0x86d   : > { %4804 = vmatpush.bf16.msra.mxu3 %v6718_v30 }
 0x870   : > { %5103 = vmatpush.bf16.msrb.mxu0 %v6874_v14  ;;  %v5132_v14 = vld [vmem:[%s9863_s19] sm:$0x3] }
 0x871   : > { %4805 = vmatpush.bf16.msra.mxu3 %v6710_v6  ;;  %v7289_v6 = vld [vmem:[%s9862_s18 + $0x114] sm:$0xf0] }
 0x872   : > { %v6854_v48 = vor.u32 %v7289_v6, %v6853_v46 }
 0x875   : > { %4806 = vmatpush.bf16.msra.mxu3 %v6702_v47  ;;  %v7288_v47 = vld [vmem:[%s9862_s18 + $0x114] sm:$0xf] }
 0x876   : > { %v6858_v21 = vor.u32 %v7288_v47, %v6855_v54  ;;  %v5134_v54 = vperm.slane %v5132_v14, 0 }
 0x879   : > { %5076 = vmatpush.bf16.msrb.mxu3 %v6902_v26 }
 0x87d   : > { %5077 = vmatpush.bf16.msrb.mxu3 %v6894_v28 }
 0x881   : > { %5078 = vmatpush.bf16.msrb.mxu3 %v6886_v8 }
 0x885   : > { %5079 = vmatpush.bf16.msrb.mxu3 %v6878_v61 }
 0x889   : > { %5080 = vmatpush.bf16.msrb.mxu3 %v6870_v62 }
 0x88d   : > { %5081 = vmatpush.bf16.msrb.mxu3 %v6862_v36 }
 0x891   : > { %5082 = vmatpush.bf16.msrb.mxu3 %v6854_v48 }
 0x8c3   : > { %v4589_v59 = vpop.f32.mrf.mxu1 }
 0x8c9   : > { %v4643_v35 = vpop.f32.mrf.mxu2 }
 0x8ca   : > { %v4658_v29 = vmax.f32 %v4589_v59, %v4643_v35  ;;  %v6866_v59 = vor.u32 %v7290_v23, %v6863_v44  ;;  %v5135_v44 = vperm.slane %v5132_v14, 1  ;;  %v7305_v14 = vld [vmem:[%s9865_s21 + $0x18] sm:$0xff] }
 0x8cb   : > { %v4591_v9 = vpop.f32.mrf.mxu1 }
 0x8cc   : > { %4664 = vst [vmem:[#allocation4] sm:$0xff] %v4658_v29  ;;  %5104 = vmatpush.bf16.msrb.mxu0 %v6866_v59 }
 0x8d0   : > { %5105 = vmatpush.bf16.msrb.mxu0 %v6858_v21 }
 0x8d1   : > { %v4645_v39 = vpop.f32.mrf.mxu2 }
 0x8d2   : > { %v4659_v56 = vmax.f32 %v4591_v9, %v4645_v39  ;;  %v6846_v9 = vor.u32 %v7287_v18, %v6845_v24 }
 0x8d3   : > { %v4594_v52 = vpop.f32.mrf.mxu1 }
 0x8d4   : > { %4665 = vst [vmem:[#allocation4 + $0x8] sm:$0xff] %v4659_v56  ;;  %v4675_v43 = vpack.c.bf16 %v4659_v56, %v4658_v29  ;;  %5083 = vmatpush.bf16.msrb.mxu3 %v6846_v9 }
 0x8d6   : > { %4933 = vmatmul.bf16.vlgmr.msra.gmra.mxu1 %v4675_v43  ;;  %4956 = vmatmul.bf16.vlgmr.msrb.gmra.mxu2 %v4675_v43  ;;  %v7286_v43 = vld [vmem:[%s9862_s18 + $0x104] sm:$0xf] }
 0x8d7   : > { %v6850_v15 = vor.u32 %v7286_v43, %v6847_v16 }
 0x8d9   : > { %v4648_v40 = vpop.f32.mrf.mxu2  ;;  %5106 = vmatpush.bf16.msrb.mxu0 %v6850_v15 }
 0x8da   : > { %v4660_v38 = vmax.f32 %v4594_v52, %v4648_v40 }
 0x8db   : > { %v4596_v41 = vpop.f32.mrf.mxu1  ;;  %v4694_v32 = vld [vmem:[#allocation4 + $0x1] sm:$0xff] }
 0x8dc   : > { %4666 = vst [vmem:[#allocation4 + $0x10] sm:$0xff] %v4660_v38  ;;  %v4971_v28 = vld [vmem:[#allocation4 + $0x2] sm:$0xff] }
 0x8e1   : > { %v4650_v34 = vpop.f32.mrf.mxu2 }
 0x8e2   : > { %v4661_v10 = vmax.f32 %v4596_v41, %v4650_v34 }
 0x8e3   : > { %v4695_v42 = vld [vmem:[#allocation4 + $0x9] sm:$0xff]  ;;  %v4599_v55 = vpop.f32.mrf.mxu1 }
 0x8e4   : > { %4667 = vst [vmem:[#allocation4 + $0x18] sm:$0xff] %v4661_v10  ;;  %v4699_v13 = vpack.c.bf16 %v4695_v42, %v4694_v32  ;;  %v4676_v17 = vpack.c.bf16 %v4661_v10, %v4660_v38  ;;  %v4972_v40 = vld [vmem:[#allocation4 + $0xa] sm:$0xff] }
 0x8e5   : > { %v4976_v50 = vpack.c.bf16 %v4972_v40, %v4971_v28 }
 0x8e6   : > { %4807 = vmatmul.bf16.vlgmr.msra.gmra.mxu3 %v4699_v13  ;;  %4830 = vmatmul.bf16.vlgmr.msra.gmra.mxu0 %v4699_v13 }
 0x8e7   : > { %4938 = vmatmul.bf16.gmra.mxu1 %v4676_v17  ;;  %4961 = vmatmul.bf16.gmra.mxu2 %v4676_v17 }
 0x8e9   : > { %v4653_v30 = vpop.f32.mrf.mxu2 }
 0x8ea   : > { %v4662_v51 = vmax.f32 %v4599_v55, %v4653_v30 }
 0x8eb   : > { %v4601_v35 = vpop.f32.mrf.mxu1  ;;  %v4696_v39 = vld [vmem:[#allocation4 + $0x11] sm:$0xff] }
 0x8ec   : > { %4668 = vst [vmem:[#allocation4 + $0x20] sm:$0xff] %v4662_v51  ;;  %v4677_v26 = vpack.c.bf16 %v4662_v51, %v4662_v51  ;;  %v4973_v1 = vld [vmem:[#allocation4 + $0x12] sm:$0xff] }
 0x8f1   : > { %v4655_v29 = vpop.f32.mrf.mxu2 }
 0x8f2   : > { %v4663_v56 = vmax.f32 %v4601_v35, %v4655_v29 }
 0x8f3   : > { %v4697_v52 = vld [vmem:[#allocation4 + $0x19] sm:$0xff] }
 0x8f4   : > { %v4700_v63 = vpack.c.bf16 %v4697_v52, %v4696_v39  ;;  %4669 = vst [vmem:[#allocation4 + $0x28] sm:$0x3] %v4663_v56  ;;  %v4974_v38 = vld [vmem:[#allocation4 + $0x1a] sm:$0xff] }
 0x8f5   : > { %v4977_v31 = vpack.c.bf16 %v4974_v38, %v4973_v1 }
 0x8f6   : > { %4812 = vmatmul.bf16.gmra.mxu3 %v4700_v63  ;;  %4835 = vmatmul.bf16.gmra.mxu0 %v4700_v63 }
 0x8f7   : > { %4943 = vmatmul.bf16.gmra.mxu1 %v4677_v26  ;;  %4966 = vmatmul.bf16.gmra.mxu2 %v4677_v26 }
 0x8fb   : > { %v4698_v58 = vld [vmem:[#allocation4 + $0x21] sm:$0xff] }
 0x8fc   : > { %v4701_v12 = vpack.c.bf16 %v4698_v58, %v4698_v58  ;;  %v4975_v37 = vld [vmem:[#allocation4 + $0x22] sm:$0xff] }
 0x8fd   : > { %v4978_v3 = vpack.c.bf16 %v4975_v37, %v4975_v37 }
 0x906   : > { %4817 = vmatmul.bf16.gmra.mxu3 %v4701_v12  ;;  %4840 = vmatmul.bf16.gmra.mxu0 %v4701_v12 }
 0x916   : > { %5084 = vmatmul.bf16.vlgmr.msrb.gmra.mxu3 %v4976_v50  ;;  %5107 = vmatmul.bf16.vlgmr.msrb.gmra.mxu0 %v4976_v50 }
 0x926   : > { %5089 = vmatmul.bf16.gmra.mxu3 %v4977_v31  ;;  %5112 = vmatmul.bf16.gmra.mxu0 %v4977_v31 }
 0x936   : > { %5094 = vmatmul.bf16.gmra.mxu3 %v4978_v3  ;;  %5117 = vmatmul.bf16.gmra.mxu0 %v4978_v3 }
 0x953   : > { %v4934_v0 = vpop.f32.mrf.mxu1 }
 0x959   : > { %v4957_v49 = vpop.f32.mrf.mxu2 }
 0x95b   : > { %v4936_v41 = vpop.f32.mrf.mxu1 }
 0x961   : > { %v4959_v8 = vpop.f32.mrf.mxu2 }
 0x963   : > { %v4831_v53 = vpop.f32.mrf.mxu0 }
 0x964   : > { %v4958_v19 = vadd.f32 %v4957_v49, %v4831_v53  ;;  %v4939_v5 = vpop.f32.mrf.mxu1 }
 0x969   : > { %v4808_v60 = vpop.f32.mrf.mxu3 }
 0x96a   : > { %v4935_v25 = vadd.f32 %v4934_v0, %v4808_v60  ;;  %v4962_v34 = vpop.f32.mrf.mxu2 }
 0x96b   : > { %v4833_v61 = vpop.f32.mrf.mxu0 }
 0x96c   : > { %v4960_v10 = vadd.f32 %v4959_v8, %v4833_v61  ;;  %v4941_v32 = vpop.f32.mrf.mxu1 }
 0x971   : > { %v4810_v42 = vpop.f32.mrf.mxu3 }
 0x972   : > { %v4937_v27 = vadd.f32 %v4936_v41, %v4810_v42  ;;  %v4964_v45 = vpop.f32.mrf.mxu2 }
 0x973   : > { %v4836_v13 = vpop.f32.mrf.mxu0 }
 0x974   : > { %v4963_v57 = vadd.f32 %v4962_v34, %v4836_v13  ;;  %v4944_v17 = vpop.f32.mrf.mxu1 }
 0x979   : > { %v4813_v20 = vpop.f32.mrf.mxu3 }
 0x97a   : > { %v4940_v33 = vadd.f32 %v4939_v5, %v4813_v20  ;;  %v4967_v7 = vpop.f32.mrf.mxu2  ;;  %v7317_v20 = vld [vmem:[%s9865_s21 + $0x78] sm:$0xff] }
 0x97b   : > { %v4838_v55 = vpop.f32.mrf.mxu0  ;;  %5344 = vmatpush.bf16.msra.mxu3 %v7317_v20 }
 0x97c   : > { %v4965_v62 = vadd.f32 %v4964_v45, %v4838_v55  ;;  %v4946_v11 = vpop.f32.mrf.mxu1 }
 0x981   : > { %v4815_v22 = vpop.f32.mrf.mxu3 }
 0x982   : > { %v4969_v30 = vpop.f32.mrf.mxu2  ;;  %v4942_v31 = vadd.f32 %v4941_v32, %v4815_v22  ;;  %v7309_v32 = vld [vmem:[%s9865_s21 + $0x38] sm:$0xff] }
 0x983   : > { %v4841_v36 = vpop.f32.mrf.mxu0  ;;  %5331 = vmatpush.bf16.msra.mxu2 %v7309_v32  ;;  %v7307_v30 = vld [vmem:[%s9865_s21 + $0x28] sm:$0xff] }
 0x989   : > { %v4818_v4 = vpop.f32.mrf.mxu3 }
 0x98b   : > { %v4843_v51 = vpop.f32.mrf.mxu0 }
 0x991   : > { %v4820_v46 = vpop.f32.mrf.mxu3 }
 0x992   : > { %v5164_v46 = vld [vmem:[%s9864_s20] sm:$0x3] }
 0x993   : > { %v5108_v6 = vpop.f32.mrf.mxu0 }
 0x994   : > { %v5123_v23 = vadd.f32 %v5108_v6, %v4958_v19  ;;  %v7306_v6 = vld [vmem:[%s9865_s21 + $0x20] sm:$0xff] }
 0x996   : > { %v5139_v24 = vadd.f32 %v5135_v44, %v5123_v23  ;;  %v7304_v23 = vld [vmem:[%s9865_s21 + $0x10] sm:$0xff] }
 0x998   : > { %v5149_v35 = vmax.f32 %v5139_v24, 0.0  ;;  %v7313_v24 = vld [vmem:[%s9865_s21 + $0x58] sm:$0xff] }
 0x999   : > { %v5085_v59 = vpop.f32.mrf.mxu3 }
 0x99a   : > { %v5122_v47 = vadd.f32 %v5085_v59, %v4935_v25  ;;  %v4945_v25 = vadd.f32 %v4944_v17, %v4818_v4  ;;  %v7308_v17 = vld [vmem:[%s9865_s21 + $0x30] sm:$0xff]  ;;  %v7314_v59 = vld [vmem:[%s9865_s21 + $0x60] sm:$0xff] }
 0x99b   : > { %v5110_v48 = vpop.f32.mrf.mxu0  ;;  %5332 = vmatpush.bf16.msra.mxu2 %v7308_v17 }
 0x99c   : > { %v5125_v18 = vadd.f32 %v5110_v48, %v4960_v10  ;;  %v5138_v39 = vadd.f32 %v5134_v54, %v5122_v47  ;;  %v4968_v10 = vadd.f32 %v4967_v7, %v4841_v36  ;;  %v7316_v7 = vld [vmem:[%s9865_s21 + $0x70] sm:$0xff]  ;;  %v7315_v36 = vld [vmem:[%s9865_s21 + $0x68] sm:$0xff]  ;;  %v7302_v48 = vld [vmem:[%s9865_s21] sm:$0xff] }
 0x99d   : > { %5345 = vmatpush.bf16.msra.mxu3 %v7316_v7  ;;  %v7311_v47 = vld [vmem:[%s9865_s21 + $0x48] sm:$0xff] }
 0x99e   : > { %v5141_v21 = vadd.f32 %v5135_v44, %v5125_v18  ;;  %v5148_v63 = vmax.f32 %v5138_v39, 0.0  ;;  %v7312_v18 = vld [vmem:[%s9865_s21 + $0x50] sm:$0xff] }
 0x99f   : > { %5333 = vmatpush.bf16.msra.mxu2 %v7307_v30 }
 0x9a0   : > { %v5151_v29 = vmax.f32 %v5141_v21, 0.0  ;;  %v7325_v21 = vld [vmem:[%s9866_s22 + $0x38] sm:$0xff] }
 0x9a1   : > { %v5087_v9 = vpop.f32.mrf.mxu3  ;;  %5346 = vmatpush.bf16.msra.mxu3 %v7315_v36  ;;  %5429 = vmatpush.bf16.msra.mxu0 %v7325_v21 }
 0x9a2   : > { %v5124_v56 = vadd.f32 %v5087_v9, %v4937_v27  ;;  %v5159_v52 = vpack.c.bf16 %v5151_v29, %v5149_v35  ;;  %v7324_v35 = vld [vmem:[%s9866_s22 + $0x30] sm:$0xff]  ;;  %v7323_v29 = vld [vmem:[%s9866_s22 + $0x28] sm:$0xff]  ;;  %v7322_v9 = vld [vmem:[%s9866_s22 + $0x20] sm:$0xff] }
 0x9a3   : > { %v5113_v43 = vpop.f32.mrf.mxu0  ;;  %5334 = vmatpush.bf16.msra.mxu2 %v7306_v6 }
 0x9a4   : > { %v5140_v16 = vadd.f32 %v5134_v54, %v5124_v56  ;;  %v5127_v26 = vadd.f32 %v5113_v43, %v4963_v57  ;;  %v7320_v43 = vld [vmem:[%s9866_s22 + $0x10] sm:$0xff] }
 0x9a5   : > { %5347 = vmatpush.bf16.msra.mxu3 %v7314_v59  ;;  %5430 = vmatpush.bf16.msra.mxu0 %v7324_v35 }
 0x9a6   : > { %v5150_v15 = vmax.f32 %v5140_v16, 0.0  ;;  %v5143_v28 = vadd.f32 %v5135_v44, %v5127_v26 }
 0x9a7   : > { %5335 = vmatpush.bf16.msra.mxu2 %v7305_v14 }
 0x9a8   : > { %v5158_v58 = vpack.c.bf16 %v5150_v15, %v5148_v63  ;;  %v5153_v37 = vmax.f32 %v5143_v28, 0.0 }
 0x9a9   : > { %v5090_v12 = vpop.f32.mrf.mxu3  ;;  %5348 = vmatpush.bf16.msra.mxu3 %v7313_v24  ;;  %5431 = vmatpush.bf16.msra.mxu0 %v7323_v29 }
 0x9aa   : > { %v5126_v38 = vadd.f32 %v5090_v12, %v4940_v33  ;;  %v7318_v12 = vld [vmem:[%s9866_s22] sm:$0xff] }
 0x9ab   : > { %v5115_v40 = vpop.f32.mrf.mxu0  ;;  %5336 = vmatpush.bf16.msra.mxu2 %v7304_v23 }
 0x9ac   : > { %v5129_v50 = vadd.f32 %v5115_v40, %v4965_v62  ;;  %v5142_v49 = vadd.f32 %v5134_v54, %v5126_v38 }
 0x9ad   : > { %5349 = vmatpush.bf16.msra.mxu3 %v7312_v18  ;;  %5432 = vmatpush.bf16.msra.mxu0 %v7322_v9 }
 0x9ae   : > { %v5145_v1 = vadd.f32 %v5135_v44, %v5129_v50  ;;  %v5152_v5 = vmax.f32 %v5142_v49, 0.0 }
 0x9b0   : > { %v5155_v3 = vmax.f32 %v5145_v1, 0.0 }
 0x9b1   : > { %v5092_v0 = vpop.f32.mrf.mxu3  ;;  %5350 = vmatpush.bf16.msra.mxu3 %v7311_v47 }
 0x9b2   : > { %v5128_v41 = vadd.f32 %v5092_v0, %v4942_v31  ;;  %v5161_v8 = vpack.c.bf16 %v5155_v3, %v5153_v37  ;;  %v7334_v0 = vld [vmem:[%s9867_s23] ss:$0 sm:$0xff] }
 0x9b3   : > { %v5118_v53 = vpop.f32.mrf.mxu0 }
 0x9b4   : > { %v5144_v19 = vadd.f32 %v5134_v54, %v5128_v41  ;;  %v5131_v27 = vadd.f32 %v5118_v53, %v4968_v10 }
 0x9b6   : > { %v5154_v60 = vmax.f32 %v5144_v19, 0.0  ;;  %v5147_v33 = vadd.f32 %v5135_v44, %v5131_v27  ;;  %v7303_v44 = vld [vmem:[%s9865_s21 + $0x8] sm:$0xff] }
 0x9b7   : > { %5337 = vmatpush.bf16.msra.mxu2 %v7303_v44 }
 0x9b8   : > { %v5160_v34 = vpack.c.bf16 %v5154_v60, %v5152_v5  ;;  %v5157_v22 = vmax.f32 %v5147_v33, 0.0 }
 0x9b9   : > { %v5095_v61 = vpop.f32.mrf.mxu3 }
 0x9ba   : > { %v5130_v42 = vadd.f32 %v5095_v61, %v4945_v25  ;;  %v5163_v4 = vpack.c.bf16 %v5157_v22, %v5157_v22 }
 0x9bb   : > { %v5120_v45 = vpop.f32.mrf.mxu0  ;;  %5338 = vmatpush.bf16.msra.mxu2 %v7302_v48 }
 0x9bc   : > { %v5146_v13 = vadd.f32 %v5134_v54, %v5130_v42  ;;  %v5173_v51 = vsel %vm3955_vm3, %v5163_v4, 0  ;;  %v7310_v54 = vld [vmem:[%s9865_s21 + $0x40] sm:$0xff] }
 0x9bd   : > { %5351 = vmatpush.bf16.msra.mxu3 %v7310_v54 }
 0x9be   : > { %v5156_v57 = vmax.f32 %v5146_v13, 0.0 }
 0x9c0   : > { %v5162_v55 = vpack.c.bf16 %v5156_v57, %v5156_v57 }
 0x9c1   : > { %v5097_v62 = vpop.f32.mrf.mxu3 }
 0x9c2   : > { %v5170_v11 = vsel %vm3955_vm3, %v5162_v55, 0 }
 0x9c3   : > { %5180 = vmatpush.bf16.msrb.mxu1 %v5170_v11 }
 0x9c7   : > { %5181 = vmatpush.bf16.msrb.mxu1 %v5160_v34 }
 0x9cb   : > { %5182 = vmatpush.bf16.msrb.mxu1 %v5158_v58  ;;  %v7319_v58 = vld [vmem:[%s9866_s22 + $0x8] sm:$0xff] }
 0x9ce   : > { %6907 = vmatmul.msk.bf16.vlgmr.msrb.gmra.mxu1 %vm5165_vm5, %v5164_v46 }
 0x9cf   : > { %5193 = vmatpush.bf16.msra.mxu1 %v5173_v51 }
 0x9d3   : > { %5194 = vmatpush.bf16.msra.mxu1 %v5161_v8 }
 0x9d7   : > { %5195 = vmatpush.bf16.msra.mxu1 %v5159_v52  ;;  %v7321_v52 = vld [vmem:[%s9866_s22 + $0x18] sm:$0xff] }
 0x9d8   : > { %5433 = vmatpush.bf16.msra.mxu0 %v7321_v52 }
 0x9dc   : > { %5434 = vmatpush.bf16.msra.mxu0 %v7320_v43 }
 0x9de   : > { %6908 = vmatmul.msk.bf16.vlgmr.msra.gmra.mxu1 %vm5165_vm5, %v5164_v46 }
 0x9e0   : > { %5435 = vmatpush.bf16.msra.mxu0 %v7319_v58 }
 0x9e4   : > { %5436 = vmatpush.bf16.msra.mxu0 %v7318_v12 }
 0xa4b   : > { %v5184_v39 = vpop.f32.mrf.mxu1 }
 0xa4c   : > { %v5201_v56 = vpack.c.bf16 %v5184_v39, %v5184_v39 }
 0xa4e   : > { %5339 = vmatmul.bf16.vlgmr.msra.gmra.mxu2 %v5201_v56 }
 0xa53   : > { %v5186_v16 = vpop.f32.mrf.mxu1 }
 0xa5b   : > { %v5197_v63 = vpop.f32.mrf.mxu1 }
 0xa5c   : > { %v5202_v15 = vpack.c.bf16 %v5197_v63, %v5197_v63 }
 0xa5e   : > { %5352 = vmatmul.bf16.vlgmr.msra.gmra.mxu3 %v5202_v15 }
 0xa63   : > { %v5199_v26 = vpop.f32.mrf.mxu1 }
 0xad1   : > { %v5340_v40 = vpop.f32.mrf.mxu2 }
 0xad9   : > { %v5342_v28 = vpop.f32.mrf.mxu2 }
 0xae1   : > { %v5353_v50 = vpop.f32.mrf.mxu3 }
 0xae2   : > { %v5354_v38 = vadd.f32 %v5353_v50, %v5340_v40 }
 0xae4   : > { %v5357_v1 = vmul.f32 0.015625, %v5354_v38 }
 0xae6   : > { %v5359_v31 = vadd.f32 %v9413_v2, %v5357_v1 }
 0xae8   : > { %v5360_v37 = vpack.c.bf16 %v5359_v31, %v5359_v31 }
 0xae9   : > { %v5355_v3 = vpop.f32.mrf.mxu3 }
 0xaea   : > { %5437 = vmatmul.bf16.vlgmr.msra.gmra.mxu0 %v5360_v37 }
 0xb67   : > { %v5438_v49 = vpop.f32.mrf.mxu0 }
 0xb68   : > { %v5439_v41 = vadd.f32 %v7334_v0, %v5438_v49 }
 0xb6a   : > { %v5442_v8 = vadd.f32 %v5439_v41, %v5359_v31 }
 0xb6c   : > { %5443 = vst [vmem:[%s737_s9] sm:$0xf] %v5442_v8 }
 0xb6f   : > { %v5440_v53 = vpop.f32.mrf.mxu0 }
 0xb70 PF: > { %s34_s5 = sadd.s32 1, %s7341_s5  }
 0xb71   : > { %p31_p5 = scmp.ge.s32.totalorder %s34_s5, 4  }
 0xb73   :  { %33 = sbr.rel (!%p31_p5) target bundleno = 11 (0xb), region = 154 }

</bundles_post_ra>
